<compile_context>
chip_gen: v7x
topology: tpu7x:2x2x1
jax: 0.10.0
libtpu: 0.0.40
codegen_flags: <defaults>
</compile_context>

<pallas_src>
import jax
import jax.numpy as jnp
from jax.experimental import pallas as pl
from jax.experimental.pallas import tpu as pltpu

EMBED = 100    # real embedding dim
HID = 80       # real hidden size
EMBED_P = 128  # padded (lane-dense) embedding dim
HID_P = 128    # padded (lane-dense) hidden size


# ----------------------------------------------------------------------------
# Recurrence kernel: one bidirectional GRU layer, both directions in one body.
# ----------------------------------------------------------------------------
def _bigru_recurrence_kernel(gx_ref, whh_ref, bhn_ref, out_ref):
    """gx_ref : (2, T, B, 3*Hp)  precomputed x@W_ih + combined biases (gate order r,z,n)
       whh_ref: (2, Hp, 3*Hp)    fused hidden->gates weights (per direction)
       bhn_ref: (2, 1, Hp)       hidden bias of n gate (must stay inside r*(...))
       out_ref: (2, T, B, Hp)    hidden states in ORIGINAL time order, both dirs
    """
    _, T, B, _ = gx_ref.shape
    Hp = out_ref.shape[-1]

    # Zero-cost static ref views per direction.
    gx_f, gx_b = gx_ref.at[0], gx_ref.at[1]
    out_f, out_b = out_ref.at[0], out_ref.at[1]

    def gru_cell(gx, h, w, bhn):
        gh = jnp.dot(h, w, preferred_element_type=jnp.float32)        # (B, 3Hp)
        r = jax.nn.sigmoid(gx[:, 0:Hp] + gh[:, 0:Hp])
        z = jax.nn.sigmoid(gx[:, Hp:2 * Hp] + gh[:, Hp:2 * Hp])
        n = jnp.tanh(gx[:, 2 * Hp:3 * Hp] + r * (gh[:, 2 * Hp:3 * Hp] + bhn))
        return (1.0 - z) * n + z * h

    def step(s, carry):
        h_f, h_b = carry
        tb = T - 1 - s                      # backward walks t = T-1 .. 0 (no flips)
        # Two independent chains: matmuls/EUP work of fwd & bwd interleave.
        h_f = gru_cell(gx_f[s], h_f, whh_ref[0], bhn_ref[0])
        h_b = gru_cell(gx_b[tb], h_b, whh_ref[1], bhn_ref[1])
        out_f[s] = h_f
        out_b[tb] = h_b
        return h_f, h_b

    h0 = jnp.zeros((B, Hp), jnp.float32)
    jax.lax.fori_loop(0, T, step, (h0, h0), unroll=True)


def bigru_layer_recurrence(gx, whh, bhn):
    """gx: (2,T,B,3Hp), whh: (2,Hp,3Hp), bhn: (2,1,Hp) -> (2,T,B,Hp)."""
    _, T, B, G = gx.shape
    Hp = G // 3
    return pl.pallas_call(
        _bigru_recurrence_kernel,
        out_shape=jax.ShapeDtypeStruct((2, T, B, Hp), jnp.float32),
        grid_spec=pltpu.PrefetchScalarGridSpec(
            num_scalar_prefetch=0,
            grid=(1,),
            in_specs=[
                pl.BlockSpec((2, T, B, G), lambda i: (0, 0, 0, 0)),   # gates(x)
                pl.BlockSpec((2, Hp, G), lambda i: (0, 0, 0)),        # W_hh fused
                pl.BlockSpec((2, 1, Hp), lambda i: (0, 0, 0)),        # b_hn
            ],
            out_specs=pl.BlockSpec((2, T, B, Hp), lambda i: (0, 0, 0, 0)),
        ),
        compiler_params=pltpu.CompilerParams(
            dimension_semantics=("arbitrary",),
        ),
    )(gx, whh, bhn)


# ----------------------------------------------------------------------------
# Full forward pass.
# ----------------------------------------------------------------------------
def bi_gru_layer_2_forward(tokens, params):
    B = tokens.shape[0]
    emb = params["embedding"][tokens]                        # (B, T, EMBED_P), pads 0
    x = jnp.transpose(emb, (1, 0, 2)).astype(jnp.float32)    # time-major (T, B, EMBED_P)

    # Pad batch to a multiple of 8 so every per-step tile is a full (8,128) vreg
    # (unmasked vst) and the recurrent matmul M-dim is sublane-aligned.
    Bp = max(8, ((B + 7) // 8) * 8)
    if Bp != B:
        x = jnp.pad(x, ((0, 0), (0, Bp - B), (0, 0)))

    def bidir_layer(x_seq, lp):
        # Hoisted input projection: one batched matmul for all timesteps,
        # all gates, both directions; input-side biases pre-combined into bx.
        gx = (jnp.einsum("tbd,zdg->ztbg", x_seq, lp["wih"])
              + lp["bx"][:, None, None, :])                  # (2, T, Bp, 3Hp)
        return bigru_layer_recurrence(gx, lp["whh"], lp["bhn"])   # (2, T, Bp, Hp)

    out0 = bidir_layer(x, params["layer0"])
    h1 = jnp.concatenate([out0[0], out0[1]], axis=-1)        # (T, Bp, 2*Hp) padded concat
    out1 = bidir_layer(h1, params["layer1"])

    # gru_out[:, -1, :] == [fwd hidden at t=T-1, bwd hidden at t=T-1]
    last = jnp.concatenate([out1[0, -1, :B], out1[1, -1, :B]], axis=-1)   # (B, 2*Hp)
    # Tiny output head kept in XLA (fusing a launch is not worth it).
    return jax.nn.sigmoid(last @ params["w_out"] + params["b_out"])       # (B, 1)


# ----------------------------------------------------------------------------
# Raw (PyTorch-layout, unpadded) parameter init; gate order (r, z, n).
# ----------------------------------------------------------------------------
def init_raw_params(key, vocab_size, embed_dim=EMBED, hidden=HID):
    keys = iter(jax.random.split(key, 64))
    bound = 1.0 / jnp.sqrt(hidden)

    def u(shape):
        return jax.random.uniform(next(keys), shape, jnp.float32, -bound, bound)

    def gru_dir(d_in):
        # per-gate: W_ih (3, d_in, H), W_hh (3, H, H), b_ih/b_hh (3, H)
        return (u((3, d_in, hidden)), u((3, hidden, hidden)),
                u((3, hidden)), u((3, hidden)))

    return {
        "embedding": jax.random.normal(next(keys), (vocab_size, embed_dim), jnp.float32),
        "layer0": {"fwd": gru_dir(embed_dim), "bwd": gru_dir(embed_dim)},
        "layer1": {"fwd": gru_dir(2 * hidden), "bwd": gru_dir(2 * hidden)},
        "w_out": u((2 * hidden, 1)),
        "b_out": u((1,)),
    }


# ----------------------------------------------------------------------------
# Pack raw params into the fused, lane-dense (padded) kernel layout.
# Pad columns of W_ih/W_hh and pad bias lanes are zero, so padded hidden lanes
# stay exactly zero through the recurrence (z=0.5, n=0 -> h stays 0).
# ----------------------------------------------------------------------------
def pack_params(raw, hidden=HID, hp=HID_P, embed_dim=EMBED, ep=EMBED_P):
    def pad_rows_cols(w, row_segs, rows_pad):
        out = jnp.zeros((rows_pad, hp), jnp.float32)
        for src, length, dst in row_segs:
            out = out.at[dst:dst + length, :w.shape[1]].set(w[src:src + length])
        return out

    def pad_vec(v):
        return jnp.zeros((hp,), jnp.float32).at[:v.shape[0]].set(v)

    def pack_dir(wih, whh, bih, bhh, in_segs, in_pad):
        wih_p = jnp.concatenate(
            [pad_rows_cols(wih[g], in_segs, in_pad) for g in range(3)], axis=1)
        whh_p = jnp.concatenate(
            [pad_rows_cols(whh[g], [(0, hidden, 0)], hp) for g in range(3)], axis=1)
        # b_ir+b_hr, b_iz+b_hz, b_in fold into the input projection; b_hn stays.
        bx = jnp.concatenate([pad_vec(bih[0] + bhh[0]),
                              pad_vec(bih[1] + bhh[1]),
                              pad_vec(bih[2])])
        bhn = pad_vec(bhh[2])
        return wih_p, whh_p, bx, bhn

    def pack_layer(lp, in_segs, in_pad):
        f = pack_dir(*lp["fwd"], in_segs, in_pad)
        b = pack_dir(*lp["bwd"], in_segs, in_pad)
        return {
            "wih": jnp.stack([f[0], b[0]]),              # (2, in_pad, 3*hp)
            "whh": jnp.stack([f[1], b[1]]),              # (2, hp, 3*hp)
            "bx": jnp.stack([f[2], b[2]]),               # (2, 3*hp)
            "bhn": jnp.stack([f[3], b[3]])[:, None, :],  # (2, 1, hp)
        }

    segs0 = [(0, embed_dim, 0)]                          # layer0 input: [emb | pad]
    segs1 = [(0, hidden, 0), (hidden, hidden, hp)]       # layer1 input: [fwd|pad|bwd|pad]

    emb_p = jnp.zeros((raw["embedding"].shape[0], ep), jnp.float32)
    emb_p = emb_p.at[:, :embed_dim].set(raw["embedding"])

    w_out_p = jnp.zeros((2 * hp, 1), jnp.float32)
    w_out_p = w_out_p.at[0:hidden].set(raw["w_out"][0:hidden])
    w_out_p = w_out_p.at[hp:hp + hidden].set(raw["w_out"][hidden:2 * hidden])

    return {
        "embedding": emb_p,
        "layer0": pack_layer(raw["layer0"], segs0, ep),
        "layer1": pack_layer(raw["layer1"], segs1, 2 * hp),
        "w_out": w_out_p,
        "b_out": raw["b_out"],
    }


# ----------------------------------------------------------------------------
# Pure-JAX reference (unpadded) for correctness checking.
# ----------------------------------------------------------------------------
def _ref_gru_direction(x_seq, wih, whh, bih, bhh, reverse):
    B = x_seq.shape[1]
    H = whh.shape[-1]
    xs = x_seq[::-1] if reverse else x_seq

    def cell(h, x):
        r = jax.nn.sigmoid(x @ wih[0] + bih[0] + h @ whh[0] + bhh[0])
        z = jax.nn.sigmoid(x @ wih[1] + bih[1] + h @ whh[1] + bhh[1])
        n = jnp.tanh(x @ wih[2] + bih[2] + r * (h @ whh[2] + bhh[2]))
        h_new = (1.0 - z) * n + z * h
        return h_new, h_new

    _, hs = jax.lax.scan(cell, jnp.zeros((B, H), jnp.float32), xs)
    return hs[::-1] if reverse else hs


def ref_forward(tokens, raw):
    emb = raw["embedding"][tokens]
    x = jnp.transpose(emb, (1, 0, 2)).astype(jnp.float32)

    def layer(x_seq, lp):
        f = _ref_gru_direction(x_seq, *lp["fwd"], reverse=False)
        b = _ref_gru_direction(x_seq, *lp["bwd"], reverse=True)
        return jnp.concatenate([f, b], axis=-1)

    h1 = layer(x, raw["layer0"])
    h2 = layer(h1, raw["layer1"])
    return jax.nn.sigmoid(h2[-1] @ raw["w_out"] + raw["b_out"])


if __name__ == "__main__":
    vocab_size = 50
    B, T = 2, 8

    key = jax.random.PRNGKey(0)
    k_tok, k_par = jax.random.split(key)
    tokens = jax.random.randint(k_tok, (B, T), 0, vocab_size, dtype=jnp.int32)

    raw = init_raw_params(k_par, vocab_size)
    params = pack_params(raw)

    fwd = jax.jit(bi_gru_layer_2_forward)
    out = jax.block_until_ready(fwd(tokens, params))

    assert out.shape == (B, 1), out.shape
    assert bool(jnp.all(jnp.isfinite(out)))

    ref = ref_forward(tokens, raw)
    assert bool(jnp.allclose(out, ref, atol=1e-4, rtol=1e-4)), (out, ref)

    print("KERNEL_OK")
</pallas_src>

<mosaic_0001>
module attributes {stable_mosaic.version = 11 : i64} {
  func.func @_bigru_recurrence_kernel(%arg0: i32, %arg1: memref<2x8x8x384xf32, #tpu.memory_space<vmem>>, %arg2: memref<2x128x384xf32, #tpu.memory_space<vmem>>, %arg3: memref<2x1x128xf32, #tpu.memory_space<vmem>>, %arg4: memref<2x8x8x128xf32, #tpu.memory_space<vmem>>) attributes {dimension_semantics = [#tpu.dimension_semantics<arbitrary>], iteration_bounds = array<i64: 1>, scalar_prefetch = 0 : i64, scratch_operands = 0 : i64, tpu.core_type = #tpu.core_type<tc>, window_params = [{pipeline_mode = #tpu.pipeline_mode<synchronous>, transform_indices = @transform_0, window_bounds = array<i64: 2, 8, 8, 384>}, {pipeline_mode = #tpu.pipeline_mode<synchronous>, transform_indices = @transform_1, window_bounds = array<i64: 2, 128, 384>}, {pipeline_mode = #tpu.pipeline_mode<synchronous>, transform_indices = @transform_2, window_bounds = array<i64: 2, 1, 128>}, {pipeline_mode = #tpu.pipeline_mode<synchronous>, transform_indices = @transform_3, window_bounds = array<i64: 2, 8, 8, 128>}]} {
    %cst = arith.constant 0.000000e+00 : f32
    %0 = vector.broadcast %cst : f32 to vector<8x128xf32>
    %c0_i32 = arith.constant 0 : i32
    %c1_i32 = arith.constant 1 : i32
    %c0_i32_0 = arith.constant 0 : i32
    %c1_i32_1 = arith.constant 1 : i32
    %c0_i32_2 = arith.constant 0 : i32
    %c7_i32 = arith.constant 7 : i32
    %1 = arith.subi %c7_i32, %c0_i32_2 : i32
    %c0_i32_3 = arith.constant 0 : i32
    %c0_i32_4 = arith.constant 0 : i32
    %c0_i32_5 = arith.constant 0 : i32
    %2 = tpu.memref_slice %arg1[%c0_i32, %c0_i32_3, %c0_i32_4, %c0_i32_5] : memref<2x8x8x384xf32, #tpu.memory_space<vmem>> -> memref<1x8x8x384xf32, #tpu.memory_space<vmem>>
    %3 = tpu.memref_squeeze %2 : memref<1x8x8x384xf32, #tpu.memory_space<vmem>> -> memref<8x8x384xf32, #tpu.memory_space<vmem>>
    %4 = arith.index_cast %c0_i32_2 : i32 to index
    %c0 = arith.constant 0 : index
    %c0_6 = arith.constant 0 : index
    %5 = vector.load %3[%4, %c0, %c0_6] : memref<8x8x384xf32, #tpu.memory_space<vmem>>, vector<1x8x384xf32>
    %6 = vector.shape_cast %5 : vector<1x8x384xf32> to vector<8x384xf32>
    %c0_7 = arith.constant 0 : index
    %c0_8 = arith.constant 0 : index
    %c0_9 = arith.constant 0 : index
    %7 = vector.load %arg2[%c0_7, %c0_8, %c0_9] : memref<2x128x384xf32, #tpu.memory_space<vmem>>, vector<1x128x384xf32>
    %8 = vector.shape_cast %7 : vector<1x128x384xf32> to vector<128x384xf32>
    %c0_10 = arith.constant 0 : index
    %c0_11 = arith.constant 0 : index
    %c0_12 = arith.constant 0 : index
    %9 = vector.load %arg3[%c0_10, %c0_11, %c0_12] : memref<2x1x128xf32, #tpu.memory_space<vmem>>, vector<1x1x128xf32>
    %10 = vector.shape_cast %9 : vector<1x1x128xf32> to vector<1x128xf32>
    %cst_13 = arith.constant dense<0.000000e+00> : vector<8x384xf32>
    %11 = tpu.matmul %0, %8, %cst_13 {dimension_numbers = #tpu.dot_dimension_numbers<[1], [0], [0], [1], [0, 0, 1, 1], [], []>} : vector<8x128xf32>, vector<128x384xf32>, vector<8x384xf32> -> vector<8x384xf32>
    %12 = vector.extract_strided_slice %6 {offsets = [0, 0], sizes = [8, 128], strides = [1, 1]} : vector<8x384xf32> to vector<8x128xf32>
    %13 = vector.extract_strided_slice %11 {offsets = [0, 0], sizes = [8, 128], strides = [1, 1]} : vector<8x384xf32> to vector<8x128xf32>
    %14 = arith.addf %12, %13 : vector<8x128xf32>
    %15 = arith.negf %14 : vector<8x128xf32>
    %16 = math.exp %15 : vector<8x128xf32>
    %cst_14 = arith.constant 1.000000e+00 : f32
    %17 = vector.broadcast %cst_14 : f32 to vector<8x128xf32>
    %18 = arith.addf %17, %16 : vector<8x128xf32>
    %19 = arith.divf %17, %18 : vector<8x128xf32>
    %20 = vector.extract_strided_slice %6 {offsets = [0, 128], sizes = [8, 128], strides = [1, 1]} : vector<8x384xf32> to vector<8x128xf32>
    %21 = vector.extract_strided_slice %11 {offsets = [0, 128], sizes = [8, 128], strides = [1, 1]} : vector<8x384xf32> to vector<8x128xf32>
    %22 = arith.addf %20, %21 : vector<8x128xf32>
    %23 = arith.negf %22 : vector<8x128xf32>
    %24 = math.exp %23 : vector<8x128xf32>
    %cst_15 = arith.constant 1.000000e+00 : f32
    %25 = vector.broadcast %cst_15 : f32 to vector<8x128xf32>
    %26 = arith.addf %25, %24 : vector<8x128xf32>
    %27 = arith.divf %25, %26 : vector<8x128xf32>
    %28 = vector.extract_strided_slice %6 {offsets = [0, 256], sizes = [8, 128], strides = [1, 1]} : vector<8x384xf32> to vector<8x128xf32>
    %29 = vector.extract_strided_slice %11 {offsets = [0, 256], sizes = [8, 128], strides = [1, 1]} : vector<8x384xf32> to vector<8x128xf32>
    %30 = vector.broadcast %10 : vector<1x128xf32> to vector<8x128xf32>
    %31 = arith.addf %29, %30 : vector<8x128xf32>
    %32 = arith.mulf %19, %31 : vector<8x128xf32>
    %33 = arith.addf %28, %32 : vector<8x128xf32>
    %34 = math.tanh %33 : vector<8x128xf32>
    %cst_16 = arith.constant 1.000000e+00 : f32
    %35 = vector.broadcast %cst_16 : f32 to vector<8x128xf32>
    %36 = arith.subf %35, %27 : vector<8x128xf32>
    %37 = arith.mulf %36, %34 : vector<8x128xf32>
    %38 = arith.mulf %27, %0 : vector<8x128xf32>
    %39 = arith.addf %37, %38 : vector<8x128xf32>
    %c0_i32_17 = arith.constant 0 : i32
    %c0_i32_18 = arith.constant 0 : i32
    %c0_i32_19 = arith.constant 0 : i32
    %40 = tpu.memref_slice %arg1[%c1_i32, %c0_i32_17, %c0_i32_18, %c0_i32_19] : memref<2x8x8x384xf32, #tpu.memory_space<vmem>> -> memref<1x8x8x384xf32, #tpu.memory_space<vmem>>
    %41 = tpu.memref_squeeze %40 : memref<1x8x8x384xf32, #tpu.memory_space<vmem>> -> memref<8x8x384xf32, #tpu.memory_space<vmem>>
    %42 = arith.index_cast %1 : i32 to index
    %c0_20 = arith.constant 0 : index
    %c0_21 = arith.constant 0 : index
    %43 = vector.load %41[%42, %c0_20, %c0_21] : memref<8x8x384xf32, #tpu.memory_space<vmem>>, vector<1x8x384xf32>
    %44 = vector.shape_cast %43 : vector<1x8x384xf32> to vector<8x384xf32>
    %c1 = arith.constant 1 : index
    %c0_22 = arith.constant 0 : index
    %c0_23 = arith.constant 0 : index
    %45 = vector.load %arg2[%c1, %c0_22, %c0_23] : memref<2x128x384xf32, #tpu.memory_space<vmem>>, vector<1x128x384xf32>
    %46 = vector.shape_cast %45 : vector<1x128x384xf32> to vector<128x384xf32>
    %c1_24 = arith.constant 1 : index
    %c0_25 = arith.constant 0 : index
    %c0_26 = arith.constant 0 : index
    %47 = vector.load %arg3[%c1_24, %c0_25, %c0_26] : memref<2x1x128xf32, #tpu.memory_space<vmem>>, vector<1x1x128xf32>
    %48 = vector.shape_cast %47 : vector<1x1x128xf32> to vector<1x128xf32>
    %cst_27 = arith.constant dense<0.000000e+00> : vector<8x384xf32>
    %49 = tpu.matmul %0, %46, %cst_27 {dimension_numbers = #tpu.dot_dimension_numbers<[1], [0], [0], [1], [0, 0, 1, 1], [], []>} : vector<8x128xf32>, vector<128x384xf32>, vector<8x384xf32> -> vector<8x384xf32>
    %50 = vector.extract_strided_slice %44 {offsets = [0, 0], sizes = [8, 128], strides = [1, 1]} : vector<8x384xf32> to vector<8x128xf32>
    %51 = vector.extract_strided_slice %49 {offsets = [0, 0], sizes = [8, 128], strides = [1, 1]} : vector<8x384xf32> to vector<8x128xf32>
    %52 = arith.addf %50, %51 : vector<8x128xf32>
    %53 = arith.negf %52 : vector<8x128xf32>
    %54 = math.exp %53 : vector<8x128xf32>
    %cst_28 = arith.constant 1.000000e+00 : f32
    %55 = vector.broadcast %cst_28 : f32 to vector<8x128xf32>
    %56 = arith.addf %55, %54 : vector<8x128xf32>
    %57 = arith.divf %55, %56 : vector<8x128xf32>
    %58 = vector.extract_strided_slice %44 {offsets = [0, 128], sizes = [8, 128], strides = [1, 1]} : vector<8x384xf32> to vector<8x128xf32>
    %59 = vector.extract_strided_slice %49 {offsets = [0, 128], sizes = [8, 128], strides = [1, 1]} : vector<8x384xf32> to vector<8x128xf32>
    %60 = arith.addf %58, %59 : vector<8x128xf32>
    %61 = arith.negf %60 : vector<8x128xf32>
    %62 = math.exp %61 : vector<8x128xf32>
    %cst_29 = arith.constant 1.000000e+00 : f32
    %63 = vector.broadcast %cst_29 : f32 to vector<8x128xf32>
    %64 = arith.addf %63, %62 : vector<8x128xf32>
    %65 = arith.divf %63, %64 : vector<8x128xf32>
    %66 = vector.extract_strided_slice %44 {offsets = [0, 256], sizes = [8, 128], strides = [1, 1]} : vector<8x384xf32> to vector<8x128xf32>
    %67 = vector.extract_strided_slice %49 {offsets = [0, 256], sizes = [8, 128], strides = [1, 1]} : vector<8x384xf32> to vector<8x128xf32>
    %68 = vector.broadcast %48 : vector<1x128xf32> to vector<8x128xf32>
    %69 = arith.addf %67, %68 : vector<8x128xf32>
    %70 = arith.mulf %57, %69 : vector<8x128xf32>
    %71 = arith.addf %66, %70 : vector<8x128xf32>
    %72 = math.tanh %71 : vector<8x128xf32>
    %cst_30 = arith.constant 1.000000e+00 : f32
    %73 = vector.broadcast %cst_30 : f32 to vector<8x128xf32>
    %74 = arith.subf %73, %65 : vector<8x128xf32>
    %75 = arith.mulf %74, %72 : vector<8x128xf32>
    %76 = arith.mulf %65, %0 : vector<8x128xf32>
    %77 = arith.addf %75, %76 : vector<8x128xf32>
    %c0_i32_31 = arith.constant 0 : i32
    %c0_i32_32 = arith.constant 0 : i32
    %c0_i32_33 = arith.constant 0 : i32
    %78 = tpu.memref_slice %arg4[%c0_i32_0, %c0_i32_31, %c0_i32_32, %c0_i32_33] : memref<2x8x8x128xf32, #tpu.memory_space<vmem>> -> memref<1x8x8x128xf32, #tpu.memory_space<vmem>>
    %79 = tpu.memref_squeeze %78 : memref<1x8x8x128xf32, #tpu.memory_space<vmem>> -> memref<8x8x128xf32, #tpu.memory_space<vmem>>
    %80 = arith.index_cast %c0_i32_2 : i32 to index
    %c0_34 = arith.constant 0 : index
    %c0_35 = arith.constant 0 : index
    %81 = vector.load %79[%80, %c0_34, %c0_35] : memref<8x8x128xf32, #tpu.memory_space<vmem>>, vector<1x8x128xf32>
    %82 = vector.shape_cast %81 : vector<1x8x128xf32> to vector<8x128xf32>
    %83 = vector.shape_cast %39 : vector<8x128xf32> to vector<1x8x128xf32>
    tpu.vector_store %79[%80, %c0_34, %c0_35], %83 {strides = array<i32>} : memref<8x8x128xf32, #tpu.memory_space<vmem>>, vector<1x8x128xf32>,
    %c0_i32_36 = arith.constant 0 : i32
    %c0_i32_37 = arith.constant 0 : i32
    %c0_i32_38 = arith.constant 0 : i32
    %84 = tpu.memref_slice %arg4[%c1_i32_1, %c0_i32_36, %c0_i32_37, %c0_i32_38] : memref<2x8x8x128xf32, #tpu.memory_space<vmem>> -> memref<1x8x8x128xf32, #tpu.memory_space<vmem>>
    %85 = tpu.memref_squeeze %84 : memref<1x8x8x128xf32, #tpu.memory_space<vmem>> -> memref<8x8x128xf32, #tpu.memory_space<vmem>>
    %86 = arith.index_cast %1 : i32 to index
    %c0_39 = arith.constant 0 : index
    %c0_40 = arith.constant 0 : index
    %87 = vector.load %85[%86, %c0_39, %c0_40] : memref<8x8x128xf32, #tpu.memory_space<vmem>>, vector<1x8x128xf32>
    %88 = vector.shape_cast %87 : vector<1x8x128xf32> to vector<8x128xf32>
    %89 = vector.shape_cast %77 : vector<8x128xf32> to vector<1x8x128xf32>
    tpu.vector_store %85[%86, %c0_39, %c0_40], %89 {strides = array<i32>} : memref<8x8x128xf32, #tpu.memory_space<vmem>>, vector<1x8x128xf32>,
    %c1_i32_41 = arith.constant 1 : i32
    %c7_i32_42 = arith.constant 7 : i32
    %90 = arith.subi %c7_i32_42, %c1_i32_41 : i32
    %c0_i32_43 = arith.constant 0 : i32
    %c0_i32_44 = arith.constant 0 : i32
    %c0_i32_45 = arith.constant 0 : i32
    %91 = tpu.memref_slice %arg1[%c0_i32, %c0_i32_43, %c0_i32_44, %c0_i32_45] : memref<2x8x8x384xf32, #tpu.memory_space<vmem>> -> memref<1x8x8x384xf32, #tpu.memory_space<vmem>>
    %92 = tpu.memref_squeeze %91 : memref<1x8x8x384xf32, #tpu.memory_space<vmem>> -> memref<8x8x384xf32, #tpu.memory_space<vmem>>
    %93 = arith.index_cast %c1_i32_41 : i32 to index
    %c0_46 = arith.constant 0 : index
    %c0_47 = arith.constant 0 : index
    %94 = vector.load %92[%93, %c0_46, %c0_47] : memref<8x8x384xf32, #tpu.memory_space<vmem>>, vector<1x8x384xf32>
    %95 = vector.shape_cast %94 : vector<1x8x384xf32> to vector<8x384xf32>
    %c0_48 = arith.constant 0 : index
    %c0_49 = arith.constant 0 : index
    %c0_50 = arith.constant 0 : index
    %96 = vector.load %arg2[%c0_48, %c0_49, %c0_50] : memref<2x128x384xf32, #tpu.memory_space<vmem>>, vector<1x128x384xf32>
    %97 = vector.shape_cast %96 : vector<1x128x384xf32> to vector<128x384xf32>
    %c0_51 = arith.constant 0 : index
    %c0_52 = arith.constant 0 : index
    %c0_53 = arith.constant 0 : index
    %98 = vector.load %arg3[%c0_51, %c0_52, %c0_53] : memref<2x1x128xf32, #tpu.memory_space<vmem>>, vector<1x1x128xf32>
    %99 = vector.shape_cast %98 : vector<1x1x128xf32> to vector<1x128xf32>
    %cst_54 = arith.constant dense<0.000000e+00> : vector<8x384xf32>
    %100 = tpu.matmul %39, %97, %cst_54 {dimension_numbers = #tpu.dot_dimension_numbers<[1], [0], [0], [1], [0, 0, 1, 1], [], []>} : vector<8x128xf32>, vector<128x384xf32>, vector<8x384xf32> -> vector<8x384xf32>
    %101 = vector.extract_strided_slice %95 {offsets = [0, 0], sizes = [8, 128], strides = [1, 1]} : vector<8x384xf32> to vector<8x128xf32>
    %102 = vector.extract_strided_slice %100 {offsets = [0, 0], sizes = [8, 128], strides = [1, 1]} : vector<8x384xf32> to vector<8x128xf32>
    %103 = arith.addf %101, %102 : vector<8x128xf32>
    %104 = arith.negf %103 : vector<8x128xf32>
    %105 = math.exp %104 : vector<8x128xf32>
    %cst_55 = arith.constant 1.000000e+00 : f32
    %106 = vector.broadcast %cst_55 : f32 to vector<8x128xf32>
    %107 = arith.addf %106, %105 : vector<8x128xf32>
    %108 = arith.divf %106, %107 : vector<8x128xf32>
    %109 = vector.extract_strided_slice %95 {offsets = [0, 128], sizes = [8, 128], strides = [1, 1]} : vector<8x384xf32> to vector<8x128xf32>
    %110 = vector.extract_strided_slice %100 {offsets = [0, 128], sizes = [8, 128], strides = [1, 1]} : vector<8x384xf32> to vector<8x128xf32>
    %111 = arith.addf %109, %110 : vector<8x128xf32>
    %112 = arith.negf %111 : vector<8x128xf32>
    %113 = math.exp %112 : vector<8x128xf32>
    %cst_56 = arith.constant 1.000000e+00 : f32
    %114 = vector.broadcast %cst_56 : f32 to vector<8x128xf32>
    %115 = arith.addf %114, %113 : vector<8x128xf32>
    %116 = arith.divf %114, %115 : vector<8x128xf32>
    %117 = vector.extract_strided_slice %95 {offsets = [0, 256], sizes = [8, 128], strides = [1, 1]} : vector<8x384xf32> to vector<8x128xf32>
    %118 = vector.extract_strided_slice %100 {offsets = [0, 256], sizes = [8, 128], strides = [1, 1]} : vector<8x384xf32> to vector<8x128xf32>
    %119 = vector.broadcast %99 : vector<1x128xf32> to vector<8x128xf32>
    %120 = arith.addf %118, %119 : vector<8x128xf32>
    %121 = arith.mulf %108, %120 : vector<8x128xf32>
    %122 = arith.addf %117, %121 : vector<8x128xf32>
    %123 = math.tanh %122 : vector<8x128xf32>
    %cst_57 = arith.constant 1.000000e+00 : f32
    %124 = vector.broadcast %cst_57 : f32 to vector<8x128xf32>
    %125 = arith.subf %124, %116 : vector<8x128xf32>
    %126 = arith.mulf %125, %123 : vector<8x128xf32>
    %127 = arith.mulf %116, %39 : vector<8x128xf32>
    %128 = arith.addf %126, %127 : vector<8x128xf32>
    %c0_i32_58 = arith.constant 0 : i32
    %c0_i32_59 = arith.constant 0 : i32
    %c0_i32_60 = arith.constant 0 : i32
    %129 = tpu.memref_slice %arg1[%c1_i32, %c0_i32_58, %c0_i32_59, %c0_i32_60] : memref<2x8x8x384xf32, #tpu.memory_space<vmem>> -> memref<1x8x8x384xf32, #tpu.memory_space<vmem>>
    %130 = tpu.memref_squeeze %129 : memref<1x8x8x384xf32, #tpu.memory_space<vmem>> -> memref<8x8x384xf32, #tpu.memory_space<vmem>>
    %131 = arith.index_cast %90 : i32 to index
    %c0_61 = arith.constant 0 : index
    %c0_62 = arith.constant 0 : index
    %132 = vector.load %130[%131, %c0_61, %c0_62] : memref<8x8x384xf32, #tpu.memory_space<vmem>>, vector<1x8x384xf32>
    %133 = vector.shape_cast %132 : vector<1x8x384xf32> to vector<8x384xf32>
    %c1_63 = arith.constant 1 : index
    %c0_64 = arith.constant 0 : index
    %c0_65 = arith.constant 0 : index
    %134 = vector.load %arg2[%c1_63, %c0_64, %c0_65] : memref<2x128x384xf32, #tpu.memory_space<vmem>>, vector<1x128x384xf32>
    %135 = vector.shape_cast %134 : vector<1x128x384xf32> to vector<128x384xf32>
    %c1_66 = arith.constant 1 : index
    %c0_67 = arith.constant 0 : index
    %c0_68 = arith.constant 0 : index
    %136 = vector.load %arg3[%c1_66, %c0_67, %c0_68] : memref<2x1x128xf32, #tpu.memory_space<vmem>>, vector<1x1x128xf32>
    %137 = vector.shape_cast %136 : vector<1x1x128xf32> to vector<1x128xf32>
    %cst_69 = arith.constant dense<0.000000e+00> : vector<8x384xf32>
    %138 = tpu.matmul %77, %135, %cst_69 {dimension_numbers = #tpu.dot_dimension_numbers<[1], [0], [0], [1], [0, 0, 1, 1], [], []>} : vector<8x128xf32>, vector<128x384xf32>, vector<8x384xf32> -> vector<8x384xf32>
    %139 = vector.extract_strided_slice %133 {offsets = [0, 0], sizes = [8, 128], strides = [1, 1]} : vector<8x384xf32> to vector<8x128xf32>
    %140 = vector.extract_strided_slice %138 {offsets = [0, 0], sizes = [8, 128], strides = [1, 1]} : vector<8x384xf32> to vector<8x128xf32>
    %141 = arith.addf %139, %140 : vector<8x128xf32>
    %142 = arith.negf %141 : vector<8x128xf32>
    %143 = math.exp %142 : vector<8x128xf32>
    %cst_70 = arith.constant 1.000000e+00 : f32
    %144 = vector.broadcast %cst_70 : f32 to vector<8x128xf32>
    %145 = arith.addf %144, %143 : vector<8x128xf32>
    %146 = arith.divf %144, %145 : vector<8x128xf32>
    %147 = vector.extract_strided_slice %133 {offsets = [0, 128], sizes = [8, 128], strides = [1, 1]} : vector<8x384xf32> to vector<8x128xf32>
    %148 = vector.extract_strided_slice %138 {offsets = [0, 128], sizes = [8, 128], strides = [1, 1]} : vector<8x384xf32> to vector<8x128xf32>
    %149 = arith.addf %147, %148 : vector<8x128xf32>
    %150 = arith.negf %149 : vector<8x128xf32>
    %151 = math.exp %150 : vector<8x128xf32>
    %cst_71 = arith.constant 1.000000e+00 : f32
    %152 = vector.broadcast %cst_71 : f32 to vector<8x128xf32>
    %153 = arith.addf %152, %151 : vector<8x128xf32>
    %154 = arith.divf %152, %153 : vector<8x128xf32>
    %155 = vector.extract_strided_slice %133 {offsets = [0, 256], sizes = [8, 128], strides = [1, 1]} : vector<8x384xf32> to vector<8x128xf32>
    %156 = vector.extract_strided_slice %138 {offsets = [0, 256], sizes = [8, 128], strides = [1, 1]} : vector<8x384xf32> to vector<8x128xf32>
    %157 = vector.broadcast %137 : vector<1x128xf32> to vector<8x128xf32>
    %158 = arith.addf %156, %157 : vector<8x128xf32>
    %159 = arith.mulf %146, %158 : vector<8x128xf32>
    %160 = arith.addf %155, %159 : vector<8x128xf32>
    %161 = math.tanh %160 : vector<8x128xf32>
    %cst_72 = arith.constant 1.000000e+00 : f32
    %162 = vector.broadcast %cst_72 : f32 to vector<8x128xf32>
    %163 = arith.subf %162, %154 : vector<8x128xf32>
    %164 = arith.mulf %163, %161 : vector<8x128xf32>
    %165 = arith.mulf %154, %77 : vector<8x128xf32>
    %166 = arith.addf %164, %165 : vector<8x128xf32>
    %c0_i32_73 = arith.constant 0 : i32
    %c0_i32_74 = arith.constant 0 : i32
    %c0_i32_75 = arith.constant 0 : i32
    %167 = tpu.memref_slice %arg4[%c0_i32_0, %c0_i32_73, %c0_i32_74, %c0_i32_75] : memref<2x8x8x128xf32, #tpu.memory_space<vmem>> -> memref<1x8x8x128xf32, #tpu.memory_space<vmem>>
    %168 = tpu.memref_squeeze %167 : memref<1x8x8x128xf32, #tpu.memory_space<vmem>> -> memref<8x8x128xf32, #tpu.memory_space<vmem>>
    %169 = arith.index_cast %c1_i32_41 : i32 to index
    %c0_76 = arith.constant 0 : index
    %c0_77 = arith.constant 0 : index
    %170 = vector.load %168[%169, %c0_76, %c0_77] : memref<8x8x128xf32, #tpu.memory_space<vmem>>, vector<1x8x128xf32>
    %171 = vector.shape_cast %170 : vector<1x8x128xf32> to vector<8x128xf32>
    %172 = vector.shape_cast %128 : vector<8x128xf32> to vector<1x8x128xf32>
    tpu.vector_store %168[%169, %c0_76, %c0_77], %172 {strides = array<i32>} : memref<8x8x128xf32, #tpu.memory_space<vmem>>, vector<1x8x128xf32>,
    %c0_i32_78 = arith.constant 0 : i32
    %c0_i32_79 = arith.constant 0 : i32
    %c0_i32_80 = arith.constant 0 : i32
    %173 = tpu.memref_slice %arg4[%c1_i32_1, %c0_i32_78, %c0_i32_79, %c0_i32_80] : memref<2x8x8x128xf32, #tpu.memory_space<vmem>> -> memref<1x8x8x128xf32, #tpu.memory_space<vmem>>
    %174 = tpu.memref_squeeze %173 : memref<1x8x8x128xf32, #tpu.memory_space<vmem>> -> memref<8x8x128xf32, #tpu.memory_space<vmem>>
    %175 = arith.index_cast %90 : i32 to index
    %c0_81 = arith.constant 0 : index
    %c0_82 = arith.constant 0 : index
    %176 = vector.load %174[%175, %c0_81, %c0_82] : memref<8x8x128xf32, #tpu.memory_space<vmem>>, vector<1x8x128xf32>
    %177 = vector.shape_cast %176 : vector<1x8x128xf32> to vector<8x128xf32>
    %178 = vector.shape_cast %166 : vector<8x128xf32> to vector<1x8x128xf32>
    tpu.vector_store %174[%175, %c0_81, %c0_82], %178 {strides = array<i32>} : memref<8x8x128xf32, #tpu.memory_space<vmem>>, vector<1x8x128xf32>,
    %c2_i32 = arith.constant 2 : i32
    %c7_i32_83 = arith.constant 7 : i32
    %179 = arith.subi %c7_i32_83, %c2_i32 : i32
    %c0_i32_84 = arith.constant 0 : i32
    %c0_i32_85 = arith.constant 0 : i32
    %c0_i32_86 = arith.constant 0 : i32
    %180 = tpu.memref_slice %arg1[%c0_i32, %c0_i32_84, %c0_i32_85, %c0_i32_86] : memref<2x8x8x384xf32, #tpu.memory_space<vmem>> -> memref<1x8x8x384xf32, #tpu.memory_space<vmem>>
    %181 = tpu.memref_squeeze %180 : memref<1x8x8x384xf32, #tpu.memory_space<vmem>> -> memref<8x8x384xf32, #tpu.memory_space<vmem>>
    %182 = arith.index_cast %c2_i32 : i32 to index
    %c0_87 = arith.constant 0 : index
    %c0_88 = arith.constant 0 : index
    %183 = vector.load %181[%182, %c0_87, %c0_88] : memref<8x8x384xf32, #tpu.memory_space<vmem>>, vector<1x8x384xf32>
    %184 = vector.shape_cast %183 : vector<1x8x384xf32> to vector<8x384xf32>
    %c0_89 = arith.constant 0 : index
    %c0_90 = arith.constant 0 : index
    %c0_91 = arith.constant 0 : index
    %185 = vector.load %arg2[%c0_89, %c0_90, %c0_91] : memref<2x128x384xf32, #tpu.memory_space<vmem>>, vector<1x128x384xf32>
    %186 = vector.shape_cast %185 : vector<1x128x384xf32> to vector<128x384xf32>
    %c0_92 = arith.constant 0 : index
    %c0_93 = arith.constant 0 : index
    %c0_94 = arith.constant 0 : index
    %187 = vector.load %arg3[%c0_92, %c0_93, %c0_94] : memref<2x1x128xf32, #tpu.memory_space<vmem>>, vector<1x1x128xf32>
    %188 = vector.shape_cast %187 : vector<1x1x128xf32> to vector<1x128xf32>
    %cst_95 = arith.constant dense<0.000000e+00> : vector<8x384xf32>
    %189 = tpu.matmul %128, %186, %cst_95 {dimension_numbers = #tpu.dot_dimension_numbers<[1], [0], [0], [1], [0, 0, 1, 1], [], []>} : vector<8x128xf32>, vector<128x384xf32>, vector<8x384xf32> -> vector<8x384xf32>
    %190 = vector.extract_strided_slice %184 {offsets = [0, 0], sizes = [8, 128], strides = [1, 1]} : vector<8x384xf32> to vector<8x128xf32>
    %191 = vector.extract_strided_slice %189 {offsets = [0, 0], sizes = [8, 128], strides = [1, 1]} : vector<8x384xf32> to vector<8x128xf32>
    %192 = arith.addf %190, %191 : vector<8x128xf32>
    %193 = arith.negf %192 : vector<8x128xf32>
    %194 = math.exp %193 : vector<8x128xf32>
    %cst_96 = arith.constant 1.000000e+00 : f32
    %195 = vector.broadcast %cst_96 : f32 to vector<8x128xf32>
    %196 = arith.addf %195, %194 : vector<8x128xf32>
    %197 = arith.divf %195, %196 : vector<8x128xf32>
    %198 = vector.extract_strided_slice %184 {offsets = [0, 128], sizes = [8, 128], strides = [1, 1]} : vector<8x384xf32> to vector<8x128xf32>
    %199 = vector.extract_strided_slice %189 {offsets = [0, 128], sizes = [8, 128], strides = [1, 1]} : vector<8x384xf32> to vector<8x128xf32>
    %200 = arith.addf %198, %199 : vector<8x128xf32>
    %201 = arith.negf %200 : vector<8x128xf32>
    %202 = math.exp %201 : vector<8x128xf32>
    %cst_97 = arith.constant 1.000000e+00 : f32
    %203 = vector.broadcast %cst_97 : f32 to vector<8x128xf32>
    %204 = arith.addf %203, %202 : vector<8x128xf32>
    %205 = arith.divf %203, %204 : vector<8x128xf32>
    %206 = vector.extract_strided_slice %184 {offsets = [0, 256], sizes = [8, 128], strides = [1, 1]} : vector<8x384xf32> to vector<8x128xf32>
    %207 = vector.extract_strided_slice %189 {offsets = [0, 256], sizes = [8, 128], strides = [1, 1]} : vector<8x384xf32> to vector<8x128xf32>
    %208 = vector.broadcast %188 : vector<1x128xf32> to vector<8x128xf32>
    %209 = arith.addf %207, %208 : vector<8x128xf32>
    %210 = arith.mulf %197, %209 : vector<8x128xf32>
    %211 = arith.addf %206, %210 : vector<8x128xf32>
    %212 = math.tanh %211 : vector<8x128xf32>
    %cst_98 = arith.constant 1.000000e+00 : f32
    %213 = vector.broadcast %cst_98 : f32 to vector<8x128xf32>
    %214 = arith.subf %213, %205 : vector<8x128xf32>
    %215 = arith.mulf %214, %212 : vector<8x128xf32>
    %216 = arith.mulf %205, %128 : vector<8x128xf32>
    %217 = arith.addf %215, %216 : vector<8x128xf32>
    %c0_i32_99 = arith.constant 0 : i32
    %c0_i32_100 = arith.constant 0 : i32
    %c0_i32_101 = arith.constant 0 : i32
    %218 = tpu.memref_slice %arg1[%c1_i32, %c0_i32_99, %c0_i32_100, %c0_i32_101] : memref<2x8x8x384xf32, #tpu.memory_space<vmem>> -> memref<1x8x8x384xf32, #tpu.memory_space<vmem>>
    %219 = tpu.memref_squeeze %218 : memref<1x8x8x384xf32, #tpu.memory_space<vmem>> -> memref<8x8x384xf32, #tpu.memory_space<vmem>>
    %220 = arith.index_cast %179 : i32 to index
    %c0_102 = arith.constant 0 : index
    %c0_103 = arith.constant 0 : index
    %221 = vector.load %219[%220, %c0_102, %c0_103] : memref<8x8x384xf32, #tpu.memory_space<vmem>>, vector<1x8x384xf32>
    %222 = vector.shape_cast %221 : vector<1x8x384xf32> to vector<8x384xf32>
    %c1_104 = arith.constant 1 : index
    %c0_105 = arith.constant 0 : index
    %c0_106 = arith.constant 0 : index
    %223 = vector.load %arg2[%c1_104, %c0_105, %c0_106] : memref<2x128x384xf32, #tpu.memory_space<vmem>>, vector<1x128x384xf32>
    %224 = vector.shape_cast %223 : vector<1x128x384xf32> to vector<128x384xf32>
    %c1_107 = arith.constant 1 : index
    %c0_108 = arith.constant 0 : index
    %c0_109 = arith.constant 0 : index
    %225 = vector.load %arg3[%c1_107, %c0_108, %c0_109] : memref<2x1x128xf32, #tpu.memory_space<vmem>>, vector<1x1x128xf32>
    %226 = vector.shape_cast %225 : vector<1x1x128xf32> to vector<1x128xf32>
    %cst_110 = arith.constant dense<0.000000e+00> : vector<8x384xf32>
    %227 = tpu.matmul %166, %224, %cst_110 {dimension_numbers = #tpu.dot_dimension_numbers<[1], [0], [0], [1], [0, 0, 1, 1], [], []>} : vector<8x128xf32>, vector<128x384xf32>, vector<8x384xf32> -> vector<8x384xf32>
    %228 = vector.extract_strided_slice %222 {offsets = [0, 0], sizes = [8, 128], strides = [1, 1]} : vector<8x384xf32> to vector<8x128xf32>
    %229 = vector.extract_strided_slice %227 {offsets = [0, 0], sizes = [8, 128], strides = [1, 1]} : vector<8x384xf32> to vector<8x128xf32>
    %230 = arith.addf %228, %229 : vector<8x128xf32>
    %231 = arith.negf %230 : vector<8x128xf32>
    %232 = math.exp %231 : vector<8x128xf32>
    %cst_111 = arith.constant 1.000000e+00 : f32
    %233 = vector.broadcast %cst_111 : f32 to vector<8x128xf32>
    %234 = arith.addf %233, %232 : vector<8x128xf32>
    %235 = arith.divf %233, %234 : vector<8x128xf32>
    %236 = vector.extract_strided_slice %222 {offsets = [0, 128], sizes = [8, 128], strides = [1, 1]} : vector<8x384xf32> to vector<8x128xf32>
    %237 = vector.extract_strided_slice %227 {offsets = [0, 128], sizes = [8, 128], strides = [1, 1]} : vector<8x384xf32> to vector<8x128xf32>
    %238 = arith.addf %236, %237 : vector<8x128xf32>
    %239 = arith.negf %238 : vector<8x128xf32>
    %240 = math.exp %239 : vector<8x128xf32>
    %cst_112 = arith.constant 1.000000e+00 : f32
    %241 = vector.broadcast %cst_112 : f32 to vector<8x128xf32>
    %242 = arith.addf %241, %240 : vector<8x128xf32>
    %243 = arith.divf %241, %242 : vector<8x128xf32>
    %244 = vector.extract_strided_slice %222 {offsets = [0, 256], sizes = [8, 128], strides = [1, 1]} : vector<8x384xf32> to vector<8x128xf32>
    %245 = vector.extract_strided_slice %227 {offsets = [0, 256], sizes = [8, 128], strides = [1, 1]} : vector<8x384xf32> to vector<8x128xf32>
    %246 = vector.broadcast %226 : vector<1x128xf32> to vector<8x128xf32>
    %247 = arith.addf %245, %246 : vector<8x128xf32>
    %248 = arith.mulf %235, %247 : vector<8x128xf32>
    %249 = arith.addf %244, %248 : vector<8x128xf32>
    %250 = math.tanh %249 : vector<8x128xf32>
    %cst_113 = arith.constant 1.000000e+00 : f32
    %251 = vector.broadcast %cst_113 : f32 to vector<8x128xf32>
    %252 = arith.subf %251, %243 : vector<8x128xf32>
    %253 = arith.mulf %252, %250 : vector<8x128xf32>
    %254 = arith.mulf %243, %166 : vector<8x128xf32>
    %255 = arith.addf %253, %254 : vector<8x128xf32>
    %c0_i32_114 = arith.constant 0 : i32
    %c0_i32_115 = arith.constant 0 : i32
    %c0_i32_116 = arith.constant 0 : i32
    %256 = tpu.memref_slice %arg4[%c0_i32_0, %c0_i32_114, %c0_i32_115, %c0_i32_116] : memref<2x8x8x128xf32, #tpu.memory_space<vmem>> -> memref<1x8x8x128xf32, #tpu.memory_space<vmem>>
    %257 = tpu.memref_squeeze %256 : memref<1x8x8x128xf32, #tpu.memory_space<vmem>> -> memref<8x8x128xf32, #tpu.memory_space<vmem>>
    %258 = arith.index_cast %c2_i32 : i32 to index
    %c0_117 = arith.constant 0 : index
    %c0_118 = arith.constant 0 : index
    %259 = vector.load %257[%258, %c0_117, %c0_118] : memref<8x8x128xf32, #tpu.memory_space<vmem>>, vector<1x8x128xf32>
    %260 = vector.shape_cast %259 : vector<1x8x128xf32> to vector<8x128xf32>
    %261 = vector.shape_cast %217 : vector<8x128xf32> to vector<1x8x128xf32>
    tpu.vector_store %257[%258, %c0_117, %c0_118], %261 {strides = array<i32>} : memref<8x8x128xf32, #tpu.memory_space<vmem>>, vector<1x8x128xf32>,
    %c0_i32_119 = arith.constant 0 : i32
    %c0_i32_120 = arith.constant 0 : i32
    %c0_i32_121 = arith.constant 0 : i32
    %262 = tpu.memref_slice %arg4[%c1_i32_1, %c0_i32_119, %c0_i32_120, %c0_i32_121] : memref<2x8x8x128xf32, #tpu.memory_space<vmem>> -> memref<1x8x8x128xf32, #tpu.memory_space<vmem>>
    %263 = tpu.memref_squeeze %262 : memref<1x8x8x128xf32, #tpu.memory_space<vmem>> -> memref<8x8x128xf32, #tpu.memory_space<vmem>>
    %264 = arith.index_cast %179 : i32 to index
    %c0_122 = arith.constant 0 : index
    %c0_123 = arith.constant 0 : index
    %265 = vector.load %263[%264, %c0_122, %c0_123] : memref<8x8x128xf32, #tpu.memory_space<vmem>>, vector<1x8x128xf32>
    %266 = vector.shape_cast %265 : vector<1x8x128xf32> to vector<8x128xf32>
    %267 = vector.shape_cast %255 : vector<8x128xf32> to vector<1x8x128xf32>
    tpu.vector_store %263[%264, %c0_122, %c0_123], %267 {strides = array<i32>} : memref<8x8x128xf32, #tpu.memory_space<vmem>>, vector<1x8x128xf32>,
    %c3_i32 = arith.constant 3 : i32
    %c7_i32_124 = arith.constant 7 : i32
    %268 = arith.subi %c7_i32_124, %c3_i32 : i32
    %c0_i32_125 = arith.constant 0 : i32
    %c0_i32_126 = arith.constant 0 : i32
    %c0_i32_127 = arith.constant 0 : i32
    %269 = tpu.memref_slice %arg1[%c0_i32, %c0_i32_125, %c0_i32_126, %c0_i32_127] : memref<2x8x8x384xf32, #tpu.memory_space<vmem>> -> memref<1x8x8x384xf32, #tpu.memory_space<vmem>>
    %270 = tpu.memref_squeeze %269 : memref<1x8x8x384xf32, #tpu.memory_space<vmem>> -> memref<8x8x384xf32, #tpu.memory_space<vmem>>
    %271 = arith.index_cast %c3_i32 : i32 to index
    %c0_128 = arith.constant 0 : index
    %c0_129 = arith.constant 0 : index
    %272 = vector.load %270[%271, %c0_128, %c0_129] : memref<8x8x384xf32, #tpu.memory_space<vmem>>, vector<1x8x384xf32>
    %273 = vector.shape_cast %272 : vector<1x8x384xf32> to vector<8x384xf32>
    %c0_130 = arith.constant 0 : index
    %c0_131 = arith.constant 0 : index
    %c0_132 = arith.constant 0 : index
    %274 = vector.load %arg2[%c0_130, %c0_131, %c0_132] : memref<2x128x384xf32, #tpu.memory_space<vmem>>, vector<1x128x384xf32>
    %275 = vector.shape_cast %274 : vector<1x128x384xf32> to vector<128x384xf32>
    %c0_133 = arith.constant 0 : index
    %c0_134 = arith.constant 0 : index
    %c0_135 = arith.constant 0 : index
    %276 = vector.load %arg3[%c0_133, %c0_134, %c0_135] : memref<2x1x128xf32, #tpu.memory_space<vmem>>, vector<1x1x128xf32>
    %277 = vector.shape_cast %276 : vector<1x1x128xf32> to vector<1x128xf32>
    %cst_136 = arith.constant dense<0.000000e+00> : vector<8x384xf32>
    %278 = tpu.matmul %217, %275, %cst_136 {dimension_numbers = #tpu.dot_dimension_numbers<[1], [0], [0], [1], [0, 0, 1, 1], [], []>} : vector<8x128xf32>, vector<128x384xf32>, vector<8x384xf32> -> vector<8x384xf32>
    %279 = vector.extract_strided_slice %273 {offsets = [0, 0], sizes = [8, 128], strides = [1, 1]} : vector<8x384xf32> to vector<8x128xf32>
    %280 = vector.extract_strided_slice %278 {offsets = [0, 0], sizes = [8, 128], strides = [1, 1]} : vector<8x384xf32> to vector<8x128xf32>
    %281 = arith.addf %279, %280 : vector<8x128xf32>
    %282 = arith.negf %281 : vector<8x128xf32>
    %283 = math.exp %282 : vector<8x128xf32>
    %cst_137 = arith.constant 1.000000e+00 : f32
    %284 = vector.broadcast %cst_137 : f32 to vector<8x128xf32>
    %285 = arith.addf %284, %283 : vector<8x128xf32>
    %286 = arith.divf %284, %285 : vector<8x128xf32>
    %287 = vector.extract_strided_slice %273 {offsets = [0, 128], sizes = [8, 128], strides = [1, 1]} : vector<8x384xf32> to vector<8x128xf32>
    %288 = vector.extract_strided_slice %278 {offsets = [0, 128], sizes = [8, 128], strides = [1, 1]} : vector<8x384xf32> to vector<8x128xf32>
    %289 = arith.addf %287, %288 : vector<8x128xf32>
    %290 = arith.negf %289 : vector<8x128xf32>
    %291 = math.exp %290 : vector<8x128xf32>
    %cst_138 = arith.constant 1.000000e+00 : f32
    %292 = vector.broadcast %cst_138 : f32 to vector<8x128xf32>
    %293 = arith.addf %292, %291 : vector<8x128xf32>
    %294 = arith.divf %292, %293 : vector<8x128xf32>
    %295 = vector.extract_strided_slice %273 {offsets = [0, 256], sizes = [8, 128], strides = [1, 1]} : vector<8x384xf32> to vector<8x128xf32>
    %296 = vector.extract_strided_slice %278 {offsets = [0, 256], sizes = [8, 128], strides = [1, 1]} : vector<8x384xf32> to vector<8x128xf32>
    %297 = vector.broadcast %277 : vector<1x128xf32> to vector<8x128xf32>
    %298 = arith.addf %296, %297 : vector<8x128xf32>
    %299 = arith.mulf %286, %298 : vector<8x128xf32>
    %300 = arith.addf %295, %299 : vector<8x128xf32>
    %301 = math.tanh %300 : vector<8x128xf32>
    %cst_139 = arith.constant 1.000000e+00 : f32
    %302 = vector.broadcast %cst_139 : f32 to vector<8x128xf32>
    %303 = arith.subf %302, %294 : vector<8x128xf32>
    %304 = arith.mulf %303, %301 : vector<8x128xf32>
    %305 = arith.mulf %294, %217 : vector<8x128xf32>
    %306 = arith.addf %304, %305 : vector<8x128xf32>
    %c0_i32_140 = arith.constant 0 : i32
    %c0_i32_141 = arith.constant 0 : i32
    %c0_i32_142 = arith.constant 0 : i32
    %307 = tpu.memref_slice %arg1[%c1_i32, %c0_i32_140, %c0_i32_141, %c0_i32_142] : memref<2x8x8x384xf32, #tpu.memory_space<vmem>> -> memref<1x8x8x384xf32, #tpu.memory_space<vmem>>
    %308 = tpu.memref_squeeze %307 : memref<1x8x8x384xf32, #tpu.memory_space<vmem>> -> memref<8x8x384xf32, #tpu.memory_space<vmem>>
    %309 = arith.index_cast %268 : i32 to index
    %c0_143 = arith.constant 0 : index
    %c0_144 = arith.constant 0 : index
    %310 = vector.load %308[%309, %c0_143, %c0_144] : memref<8x8x384xf32, #tpu.memory_space<vmem>>, vector<1x8x384xf32>
    %311 = vector.shape_cast %310 : vector<1x8x384xf32> to vector<8x384xf32>
    %c1_145 = arith.constant 1 : index
    %c0_146 = arith.constant 0 : index
    %c0_147 = arith.constant 0 : index
    %312 = vector.load %arg2[%c1_145, %c0_146, %c0_147] : memref<2x128x384xf32, #tpu.memory_space<vmem>>, vector<1x128x384xf32>
    %313 = vector.shape_cast %312 : vector<1x128x384xf32> to vector<128x384xf32>
    %c1_148 = arith.constant 1 : index
    %c0_149 = arith.constant 0 : index
    %c0_150 = arith.constant 0 : index
    %314 = vector.load %arg3[%c1_148, %c0_149, %c0_150] : memref<2x1x128xf32, #tpu.memory_space<vmem>>, vector<1x1x128xf32>
    %315 = vector.shape_cast %314 : vector<1x1x128xf32> to vector<1x128xf32>
    %cst_151 = arith.constant dense<0.000000e+00> : vector<8x384xf32>
    %316 = tpu.matmul %255, %313, %cst_151 {dimension_numbers = #tpu.dot_dimension_numbers<[1], [0], [0], [1], [0, 0, 1, 1], [], []>} : vector<8x128xf32>, vector<128x384xf32>, vector<8x384xf32> -> vector<8x384xf32>
    %317 = vector.extract_strided_slice %311 {offsets = [0, 0], sizes = [8, 128], strides = [1, 1]} : vector<8x384xf32> to vector<8x128xf32>
    %318 = vector.extract_strided_slice %316 {offsets = [0, 0], sizes = [8, 128], strides = [1, 1]} : vector<8x384xf32> to vector<8x128xf32>
    %319 = arith.addf %317, %318 : vector<8x128xf32>
    %320 = arith.negf %319 : vector<8x128xf32>
    %321 = math.exp %320 : vector<8x128xf32>
    %cst_152 = arith.constant 1.000000e+00 : f32
    %322 = vector.broadcast %cst_152 : f32 to vector<8x128xf32>
    %323 = arith.addf %322, %321 : vector<8x128xf32>
    %324 = arith.divf %322, %323 : vector<8x128xf32>
    %325 = vector.extract_strided_slice %311 {offsets = [0, 128], sizes = [8, 128], strides = [1, 1]} : vector<8x384xf32> to vector<8x128xf32>
    %326 = vector.extract_strided_slice %316 {offsets = [0, 128], sizes = [8, 128], strides = [1, 1]} : vector<8x384xf32> to vector<8x128xf32>
    %327 = arith.addf %325, %326 : vector<8x128xf32>
    %328 = arith.negf %327 : vector<8x128xf32>
    %329 = math.exp %328 : vector<8x128xf32>
    %cst_153 = arith.constant 1.000000e+00 : f32
    %330 = vector.broadcast %cst_153 : f32 to vector<8x128xf32>
    %331 = arith.addf %330, %329 : vector<8x128xf32>
    %332 = arith.divf %330, %331 : vector<8x128xf32>
    %333 = vector.extract_strided_slice %311 {offsets = [0, 256], sizes = [8, 128], strides = [1, 1]} : vector<8x384xf32> to vector<8x128xf32>
    %334 = vector.extract_strided_slice %316 {offsets = [0, 256], sizes = [8, 128], strides = [1, 1]} : vector<8x384xf32> to vector<8x128xf32>
    %335 = vector.broadcast %315 : vector<1x128xf32> to vector<8x128xf32>
    %336 = arith.addf %334, %335 : vector<8x128xf32>
    %337 = arith.mulf %324, %336 : vector<8x128xf32>
    %338 = arith.addf %333, %337 : vector<8x128xf32>
    %339 = math.tanh %338 : vector<8x128xf32>
    %cst_154 = arith.constant 1.000000e+00 : f32
    %340 = vector.broadcast %cst_154 : f32 to vector<8x128xf32>
    %341 = arith.subf %340, %332 : vector<8x128xf32>
    %342 = arith.mulf %341, %339 : vector<8x128xf32>
    %343 = arith.mulf %332, %255 : vector<8x128xf32>
    %344 = arith.addf %342, %343 : vector<8x128xf32>
    %c0_i32_155 = arith.constant 0 : i32
    %c0_i32_156 = arith.constant 0 : i32
    %c0_i32_157 = arith.constant 0 : i32
    %345 = tpu.memref_slice %arg4[%c0_i32_0, %c0_i32_155, %c0_i32_156, %c0_i32_157] : memref<2x8x8x128xf32, #tpu.memory_space<vmem>> -> memref<1x8x8x128xf32, #tpu.memory_space<vmem>>
    %346 = tpu.memref_squeeze %345 : memref<1x8x8x128xf32, #tpu.memory_space<vmem>> -> memref<8x8x128xf32, #tpu.memory_space<vmem>>
    %347 = arith.index_cast %c3_i32 : i32 to index
    %c0_158 = arith.constant 0 : index
    %c0_159 = arith.constant 0 : index
    %348 = vector.load %346[%347, %c0_158, %c0_159] : memref<8x8x128xf32, #tpu.memory_space<vmem>>, vector<1x8x128xf32>
    %349 = vector.shape_cast %348 : vector<1x8x128xf32> to vector<8x128xf32>
    %350 = vector.shape_cast %306 : vector<8x128xf32> to vector<1x8x128xf32>
    tpu.vector_store %346[%347, %c0_158, %c0_159], %350 {strides = array<i32>} : memref<8x8x128xf32, #tpu.memory_space<vmem>>, vector<1x8x128xf32>,
    %c0_i32_160 = arith.constant 0 : i32
    %c0_i32_161 = arith.constant 0 : i32
    %c0_i32_162 = arith.constant 0 : i32
    %351 = tpu.memref_slice %arg4[%c1_i32_1, %c0_i32_160, %c0_i32_161, %c0_i32_162] : memref<2x8x8x128xf32, #tpu.memory_space<vmem>> -> memref<1x8x8x128xf32, #tpu.memory_space<vmem>>
    %352 = tpu.memref_squeeze %351 : memref<1x8x8x128xf32, #tpu.memory_space<vmem>> -> memref<8x8x128xf32, #tpu.memory_space<vmem>>
    %353 = arith.index_cast %268 : i32 to index
    %c0_163 = arith.constant 0 : index
    %c0_164 = arith.constant 0 : index
    %354 = vector.load %352[%353, %c0_163, %c0_164] : memref<8x8x128xf32, #tpu.memory_space<vmem>>, vector<1x8x128xf32>
    %355 = vector.shape_cast %354 : vector<1x8x128xf32> to vector<8x128xf32>
    %356 = vector.shape_cast %344 : vector<8x128xf32> to vector<1x8x128xf32>
    tpu.vector_store %352[%353, %c0_163, %c0_164], %356 {strides = array<i32>} : memref<8x8x128xf32, #tpu.memory_space<vmem>>, vector<1x8x128xf32>,
    %c4_i32 = arith.constant 4 : i32
    %c7_i32_165 = arith.constant 7 : i32
    %357 = arith.subi %c7_i32_165, %c4_i32 : i32
    %c0_i32_166 = arith.constant 0 : i32
    %c0_i32_167 = arith.constant 0 : i32
    %c0_i32_168 = arith.constant 0 : i32
    %358 = tpu.memref_slice %arg1[%c0_i32, %c0_i32_166, %c0_i32_167, %c0_i32_168] : memref<2x8x8x384xf32, #tpu.memory_space<vmem>> -> memref<1x8x8x384xf32, #tpu.memory_space<vmem>>
    %359 = tpu.memref_squeeze %358 : memref<1x8x8x384xf32, #tpu.memory_space<vmem>> -> memref<8x8x384xf32, #tpu.memory_space<vmem>>
    %360 = arith.index_cast %c4_i32 : i32 to index
    %c0_169 = arith.constant 0 : index
    %c0_170 = arith.constant 0 : index
    %361 = vector.load %359[%360, %c0_169, %c0_170] : memref<8x8x384xf32, #tpu.memory_space<vmem>>, vector<1x8x384xf32>
    %362 = vector.shape_cast %361 : vector<1x8x384xf32> to vector<8x384xf32>
    %c0_171 = arith.constant 0 : index
    %c0_172 = arith.constant 0 : index
    %c0_173 = arith.constant 0 : index
    %363 = vector.load %arg2[%c0_171, %c0_172, %c0_173] : memref<2x128x384xf32, #tpu.memory_space<vmem>>, vector<1x128x384xf32>
    %364 = vector.shape_cast %363 : vector<1x128x384xf32> to vector<128x384xf32>
    %c0_174 = arith.constant 0 : index
    %c0_175 = arith.constant 0 : index
    %c0_176 = arith.constant 0 : index
    %365 = vector.load %arg3[%c0_174, %c0_175, %c0_176] : memref<2x1x128xf32, #tpu.memory_space<vmem>>, vector<1x1x128xf32>
    %366 = vector.shape_cast %365 : vector<1x1x128xf32> to vector<1x128xf32>
    %cst_177 = arith.constant dense<0.000000e+00> : vector<8x384xf32>
    %367 = tpu.matmul %306, %364, %cst_177 {dimension_numbers = #tpu.dot_dimension_numbers<[1], [0], [0], [1], [0, 0, 1, 1], [], []>} : vector<8x128xf32>, vector<128x384xf32>, vector<8x384xf32> -> vector<8x384xf32>
    %368 = vector.extract_strided_slice %362 {offsets = [0, 0], sizes = [8, 128], strides = [1, 1]} : vector<8x384xf32> to vector<8x128xf32>
    %369 = vector.extract_strided_slice %367 {offsets = [0, 0], sizes = [8, 128], strides = [1, 1]} : vector<8x384xf32> to vector<8x128xf32>
    %370 = arith.addf %368, %369 : vector<8x128xf32>
    %371 = arith.negf %370 : vector<8x128xf32>
    %372 = math.exp %371 : vector<8x128xf32>
    %cst_178 = arith.constant 1.000000e+00 : f32
    %373 = vector.broadcast %cst_178 : f32 to vector<8x128xf32>
    %374 = arith.addf %373, %372 : vector<8x128xf32>
    %375 = arith.divf %373, %374 : vector<8x128xf32>
    %376 = vector.extract_strided_slice %362 {offsets = [0, 128], sizes = [8, 128], strides = [1, 1]} : vector<8x384xf32> to vector<8x128xf32>
    %377 = vector.extract_strided_slice %367 {offsets = [0, 128], sizes = [8, 128], strides = [1, 1]} : vector<8x384xf32> to vector<8x128xf32>
    %378 = arith.addf %376, %377 : vector<8x128xf32>
    %379 = arith.negf %378 : vector<8x128xf32>
    %380 = math.exp %379 : vector<8x128xf32>
    %cst_179 = arith.constant 1.000000e+00 : f32
    %381 = vector.broadcast %cst_179 : f32 to vector<8x128xf32>
    %382 = arith.addf %381, %380 : vector<8x128xf32>
    %383 = arith.divf %381, %382 : vector<8x128xf32>
    %384 = vector.extract_strided_slice %362 {offsets = [0, 256], sizes = [8, 128], strides = [1, 1]} : vector<8x384xf32> to vector<8x128xf32>
    %385 = vector.extract_strided_slice %367 {offsets = [0, 256], sizes = [8, 128], strides = [1, 1]} : vector<8x384xf32> to vector<8x128xf32>
    %386 = vector.broadcast %366 : vector<1x128xf32> to vector<8x128xf32>
    %387 = arith.addf %385, %386 : vector<8x128xf32>
    %388 = arith.mulf %375, %387 : vector<8x128xf32>
    %389 = arith.addf %384, %388 : vector<8x128xf32>
    %390 = math.tanh %389 : vector<8x128xf32>
    %cst_180 = arith.constant 1.000000e+00 : f32
    %391 = vector.broadcast %cst_180 : f32 to vector<8x128xf32>
    %392 = arith.subf %391, %383 : vector<8x128xf32>
    %393 = arith.mulf %392, %390 : vector<8x128xf32>
    %394 = arith.mulf %383, %306 : vector<8x128xf32>
    %395 = arith.addf %393, %394 : vector<8x128xf32>
    %c0_i32_181 = arith.constant 0 : i32
    %c0_i32_182 = arith.constant 0 : i32
    %c0_i32_183 = arith.constant 0 : i32
    %396 = tpu.memref_slice %arg1[%c1_i32, %c0_i32_181, %c0_i32_182, %c0_i32_183] : memref<2x8x8x384xf32, #tpu.memory_space<vmem>> -> memref<1x8x8x384xf32, #tpu.memory_space<vmem>>
    %397 = tpu.memref_squeeze %396 : memref<1x8x8x384xf32, #tpu.memory_space<vmem>> -> memref<8x8x384xf32, #tpu.memory_space<vmem>>
    %398 = arith.index_cast %357 : i32 to index
    %c0_184 = arith.constant 0 : index
    %c0_185 = arith.constant 0 : index
    %399 = vector.load %397[%398, %c0_184, %c0_185] : memref<8x8x384xf32, #tpu.memory_space<vmem>>, vector<1x8x384xf32>
    %400 = vector.shape_cast %399 : vector<1x8x384xf32> to vector<8x384xf32>
    %c1_186 = arith.constant 1 : index
    %c0_187 = arith.constant 0 : index
    %c0_188 = arith.constant 0 : index
    %401 = vector.load %arg2[%c1_186, %c0_187, %c0_188] : memref<2x128x384xf32, #tpu.memory_space<vmem>>, vector<1x128x384xf32>
    %402 = vector.shape_cast %401 : vector<1x128x384xf32> to vector<128x384xf32>
    %c1_189 = arith.constant 1 : index
    %c0_190 = arith.constant 0 : index
    %c0_191 = arith.constant 0 : index
    %403 = vector.load %arg3[%c1_189, %c0_190, %c0_191] : memref<2x1x128xf32, #tpu.memory_space<vmem>>, vector<1x1x128xf32>
    %404 = vector.shape_cast %403 : vector<1x1x128xf32> to vector<1x128xf32>
    %cst_192 = arith.constant dense<0.000000e+00> : vector<8x384xf32>
    %405 = tpu.matmul %344, %402, %cst_192 {dimension_numbers = #tpu.dot_dimension_numbers<[1], [0], [0], [1], [0, 0, 1, 1], [], []>} : vector<8x128xf32>, vector<128x384xf32>, vector<8x384xf32> -> vector<8x384xf32>
    %406 = vector.extract_strided_slice %400 {offsets = [0, 0], sizes = [8, 128], strides = [1, 1]} : vector<8x384xf32> to vector<8x128xf32>
    %407 = vector.extract_strided_slice %405 {offsets = [0, 0], sizes = [8, 128], strides = [1, 1]} : vector<8x384xf32> to vector<8x128xf32>
    %408 = arith.addf %406, %407 : vector<8x128xf32>
    %409 = arith.negf %408 : vector<8x128xf32>
    %410 = math.exp %409 : vector<8x128xf32>
    %cst_193 = arith.constant 1.000000e+00 : f32
    %411 = vector.broadcast %cst_193 : f32 to vector<8x128xf32>
    %412 = arith.addf %411, %410 : vector<8x128xf32>
    %413 = arith.divf %411, %412 : vector<8x128xf32>
    %414 = vector.extract_strided_slice %400 {offsets = [0, 128], sizes = [8, 128], strides = [1, 1]} : vector<8x384xf32> to vector<8x128xf32>
    %415 = vector.extract_strided_slice %405 {offsets = [0, 128], sizes = [8, 128], strides = [1, 1]} : vector<8x384xf32> to vector<8x128xf32>
    %416 = arith.addf %414, %415 : vector<8x128xf32>
    %417 = arith.negf %416 : vector<8x128xf32>
    %418 = math.exp %417 : vector<8x128xf32>
    %cst_194 = arith.constant 1.000000e+00 : f32
    %419 = vector.broadcast %cst_194 : f32 to vector<8x128xf32>
    %420 = arith.addf %419, %418 : vector<8x128xf32>
    %421 = arith.divf %419, %420 : vector<8x128xf32>
    %422 = vector.extract_strided_slice %400 {offsets = [0, 256], sizes = [8, 128], strides = [1, 1]} : vector<8x384xf32> to vector<8x128xf32>
    %423 = vector.extract_strided_slice %405 {offsets = [0, 256], sizes = [8, 128], strides = [1, 1]} : vector<8x384xf32> to vector<8x128xf32>
    %424 = vector.broadcast %404 : vector<1x128xf32> to vector<8x128xf32>
    %425 = arith.addf %423, %424 : vector<8x128xf32>
    %426 = arith.mulf %413, %425 : vector<8x128xf32>
    %427 = arith.addf %422, %426 : vector<8x128xf32>
    %428 = math.tanh %427 : vector<8x128xf32>
    %cst_195 = arith.constant 1.000000e+00 : f32
    %429 = vector.broadcast %cst_195 : f32 to vector<8x128xf32>
    %430 = arith.subf %429, %421 : vector<8x128xf32>
    %431 = arith.mulf %430, %428 : vector<8x128xf32>
    %432 = arith.mulf %421, %344 : vector<8x128xf32>
    %433 = arith.addf %431, %432 : vector<8x128xf32>
    %c0_i32_196 = arith.constant 0 : i32
    %c0_i32_197 = arith.constant 0 : i32
    %c0_i32_198 = arith.constant 0 : i32
    %434 = tpu.memref_slice %arg4[%c0_i32_0, %c0_i32_196, %c0_i32_197, %c0_i32_198] : memref<2x8x8x128xf32, #tpu.memory_space<vmem>> -> memref<1x8x8x128xf32, #tpu.memory_space<vmem>>
    %435 = tpu.memref_squeeze %434 : memref<1x8x8x128xf32, #tpu.memory_space<vmem>> -> memref<8x8x128xf32, #tpu.memory_space<vmem>>
    %436 = arith.index_cast %c4_i32 : i32 to index
    %c0_199 = arith.constant 0 : index
    %c0_200 = arith.constant 0 : index
    %437 = vector.load %435[%436, %c0_199, %c0_200] : memref<8x8x128xf32, #tpu.memory_space<vmem>>, vector<1x8x128xf32>
    %438 = vector.shape_cast %437 : vector<1x8x128xf32> to vector<8x128xf32>
    %439 = vector.shape_cast %395 : vector<8x128xf32> to vector<1x8x128xf32>
    tpu.vector_store %435[%436, %c0_199, %c0_200], %439 {strides = array<i32>} : memref<8x8x128xf32, #tpu.memory_space<vmem>>, vector<1x8x128xf32>,
    %c0_i32_201 = arith.constant 0 : i32
    %c0_i32_202 = arith.constant 0 : i32
    %c0_i32_203 = arith.constant 0 : i32
    %440 = tpu.memref_slice %arg4[%c1_i32_1, %c0_i32_201, %c0_i32_202, %c0_i32_203] : memref<2x8x8x128xf32, #tpu.memory_space<vmem>> -> memref<1x8x8x128xf32, #tpu.memory_space<vmem>>
    %441 = tpu.memref_squeeze %440 : memref<1x8x8x128xf32, #tpu.memory_space<vmem>> -> memref<8x8x128xf32, #tpu.memory_space<vmem>>
    %442 = arith.index_cast %357 : i32 to index
    %c0_204 = arith.constant 0 : index
    %c0_205 = arith.constant 0 : index
    %443 = vector.load %441[%442, %c0_204, %c0_205] : memref<8x8x128xf32, #tpu.memory_space<vmem>>, vector<1x8x128xf32>
    %444 = vector.shape_cast %443 : vector<1x8x128xf32> to vector<8x128xf32>
    %445 = vector.shape_cast %433 : vector<8x128xf32> to vector<1x8x128xf32>
    tpu.vector_store %441[%442, %c0_204, %c0_205], %445 {strides = array<i32>} : memref<8x8x128xf32, #tpu.memory_space<vmem>>, vector<1x8x128xf32>,
    %c5_i32 = arith.constant 5 : i32
    %c7_i32_206 = arith.constant 7 : i32
    %446 = arith.subi %c7_i32_206, %c5_i32 : i32
    %c0_i32_207 = arith.constant 0 : i32
    %c0_i32_208 = arith.constant 0 : i32
    %c0_i32_209 = arith.constant 0 : i32
    %447 = tpu.memref_slice %arg1[%c0_i32, %c0_i32_207, %c0_i32_208, %c0_i32_209] : memref<2x8x8x384xf32, #tpu.memory_space<vmem>> -> memref<1x8x8x384xf32, #tpu.memory_space<vmem>>
    %448 = tpu.memref_squeeze %447 : memref<1x8x8x384xf32, #tpu.memory_space<vmem>> -> memref<8x8x384xf32, #tpu.memory_space<vmem>>
    %449 = arith.index_cast %c5_i32 : i32 to index
    %c0_210 = arith.constant 0 : index
    %c0_211 = arith.constant 0 : index
    %450 = vector.load %448[%449, %c0_210, %c0_211] : memref<8x8x384xf32, #tpu.memory_space<vmem>>, vector<1x8x384xf32>
    %451 = vector.shape_cast %450 : vector<1x8x384xf32> to vector<8x384xf32>
    %c0_212 = arith.constant 0 : index
    %c0_213 = arith.constant 0 : index
    %c0_214 = arith.constant 0 : index
    %452 = vector.load %arg2[%c0_212, %c0_213, %c0_214] : memref<2x128x384xf32, #tpu.memory_space<vmem>>, vector<1x128x384xf32>
    %453 = vector.shape_cast %452 : vector<1x128x384xf32> to vector<128x384xf32>
    %c0_215 = arith.constant 0 : index
    %c0_216 = arith.constant 0 : index
    %c0_217 = arith.constant 0 : index
    %454 = vector.load %arg3[%c0_215, %c0_216, %c0_217] : memref<2x1x128xf32, #tpu.memory_space<vmem>>, vector<1x1x128xf32>
    %455 = vector.shape_cast %454 : vector<1x1x128xf32> to vector<1x128xf32>
    %cst_218 = arith.constant dense<0.000000e+00> : vector<8x384xf32>
    %456 = tpu.matmul %395, %453, %cst_218 {dimension_numbers = #tpu.dot_dimension_numbers<[1], [0], [0], [1], [0, 0, 1, 1], [], []>} : vector<8x128xf32>, vector<128x384xf32>, vector<8x384xf32> -> vector<8x384xf32>
    %457 = vector.extract_strided_slice %451 {offsets = [0, 0], sizes = [8, 128], strides = [1, 1]} : vector<8x384xf32> to vector<8x128xf32>
    %458 = vector.extract_strided_slice %456 {offsets = [0, 0], sizes = [8, 128], strides = [1, 1]} : vector<8x384xf32> to vector<8x128xf32>
    %459 = arith.addf %457, %458 : vector<8x128xf32>
    %460 = arith.negf %459 : vector<8x128xf32>
    %461 = math.exp %460 : vector<8x128xf32>
    %cst_219 = arith.constant 1.000000e+00 : f32
    %462 = vector.broadcast %cst_219 : f32 to vector<8x128xf32>
    %463 = arith.addf %462, %461 : vector<8x128xf32>
    %464 = arith.divf %462, %463 : vector<8x128xf32>
    %465 = vector.extract_strided_slice %451 {offsets = [0, 128], sizes = [8, 128], strides = [1, 1]} : vector<8x384xf32> to vector<8x128xf32>
    %466 = vector.extract_strided_slice %456 {offsets = [0, 128], sizes = [8, 128], strides = [1, 1]} : vector<8x384xf32> to vector<8x128xf32>
    %467 = arith.addf %465, %466 : vector<8x128xf32>
    %468 = arith.negf %467 : vector<8x128xf32>
    %469 = math.exp %468 : vector<8x128xf32>
    %cst_220 = arith.constant 1.000000e+00 : f32
    %470 = vector.broadcast %cst_220 : f32 to vector<8x128xf32>
    %471 = arith.addf %470, %469 : vector<8x128xf32>
    %472 = arith.divf %470, %471 : vector<8x128xf32>
    %473 = vector.extract_strided_slice %451 {offsets = [0, 256], sizes = [8, 128], strides = [1, 1]} : vector<8x384xf32> to vector<8x128xf32>
    %474 = vector.extract_strided_slice %456 {offsets = [0, 256], sizes = [8, 128], strides = [1, 1]} : vector<8x384xf32> to vector<8x128xf32>
    %475 = vector.broadcast %455 : vector<1x128xf32> to vector<8x128xf32>
    %476 = arith.addf %474, %475 : vector<8x128xf32>
    %477 = arith.mulf %464, %476 : vector<8x128xf32>
    %478 = arith.addf %473, %477 : vector<8x128xf32>
    %479 = math.tanh %478 : vector<8x128xf32>
    %cst_221 = arith.constant 1.000000e+00 : f32
    %480 = vector.broadcast %cst_221 : f32 to vector<8x128xf32>
    %481 = arith.subf %480, %472 : vector<8x128xf32>
    %482 = arith.mulf %481, %479 : vector<8x128xf32>
    %483 = arith.mulf %472, %395 : vector<8x128xf32>
    %484 = arith.addf %482, %483 : vector<8x128xf32>
    %c0_i32_222 = arith.constant 0 : i32
    %c0_i32_223 = arith.constant 0 : i32
    %c0_i32_224 = arith.constant 0 : i32
    %485 = tpu.memref_slice %arg1[%c1_i32, %c0_i32_222, %c0_i32_223, %c0_i32_224] : memref<2x8x8x384xf32, #tpu.memory_space<vmem>> -> memref<1x8x8x384xf32, #tpu.memory_space<vmem>>
    %486 = tpu.memref_squeeze %485 : memref<1x8x8x384xf32, #tpu.memory_space<vmem>> -> memref<8x8x384xf32, #tpu.memory_space<vmem>>
    %487 = arith.index_cast %446 : i32 to index
    %c0_225 = arith.constant 0 : index
    %c0_226 = arith.constant 0 : index
    %488 = vector.load %486[%487, %c0_225, %c0_226] : memref<8x8x384xf32, #tpu.memory_space<vmem>>, vector<1x8x384xf32>
    %489 = vector.shape_cast %488 : vector<1x8x384xf32> to vector<8x384xf32>
    %c1_227 = arith.constant 1 : index
    %c0_228 = arith.constant 0 : index
    %c0_229 = arith.constant 0 : index
    %490 = vector.load %arg2[%c1_227, %c0_228, %c0_229] : memref<2x128x384xf32, #tpu.memory_space<vmem>>, vector<1x128x384xf32>
    %491 = vector.shape_cast %490 : vector<1x128x384xf32> to vector<128x384xf32>
    %c1_230 = arith.constant 1 : index
    %c0_231 = arith.constant 0 : index
    %c0_232 = arith.constant 0 : index
    %492 = vector.load %arg3[%c1_230, %c0_231, %c0_232] : memref<2x1x128xf32, #tpu.memory_space<vmem>>, vector<1x1x128xf32>
    %493 = vector.shape_cast %492 : vector<1x1x128xf32> to vector<1x128xf32>
    %cst_233 = arith.constant dense<0.000000e+00> : vector<8x384xf32>
    %494 = tpu.matmul %433, %491, %cst_233 {dimension_numbers = #tpu.dot_dimension_numbers<[1], [0], [0], [1], [0, 0, 1, 1], [], []>} : vector<8x128xf32>, vector<128x384xf32>, vector<8x384xf32> -> vector<8x384xf32>
    %495 = vector.extract_strided_slice %489 {offsets = [0, 0], sizes = [8, 128], strides = [1, 1]} : vector<8x384xf32> to vector<8x128xf32>
    %496 = vector.extract_strided_slice %494 {offsets = [0, 0], sizes = [8, 128], strides = [1, 1]} : vector<8x384xf32> to vector<8x128xf32>
    %497 = arith.addf %495, %496 : vector<8x128xf32>
    %498 = arith.negf %497 : vector<8x128xf32>
    %499 = math.exp %498 : vector<8x128xf32>
    %cst_234 = arith.constant 1.000000e+00 : f32
    %500 = vector.broadcast %cst_234 : f32 to vector<8x128xf32>
    %501 = arith.addf %500, %499 : vector<8x128xf32>
    %502 = arith.divf %500, %501 : vector<8x128xf32>
    %503 = vector.extract_strided_slice %489 {offsets = [0, 128], sizes = [8, 128], strides = [1, 1]} : vector<8x384xf32> to vector<8x128xf32>
    %504 = vector.extract_strided_slice %494 {offsets = [0, 128], sizes = [8, 128], strides = [1, 1]} : vector<8x384xf32> to vector<8x128xf32>
    %505 = arith.addf %503, %504 : vector<8x128xf32>
    %506 = arith.negf %505 : vector<8x128xf32>
    %507 = math.exp %506 : vector<8x128xf32>
    %cst_235 = arith.constant 1.000000e+00 : f32
    %508 = vector.broadcast %cst_235 : f32 to vector<8x128xf32>
    %509 = arith.addf %508, %507 : vector<8x128xf32>
    %510 = arith.divf %508, %509 : vector<8x128xf32>
    %511 = vector.extract_strided_slice %489 {offsets = [0, 256], sizes = [8, 128], strides = [1, 1]} : vector<8x384xf32> to vector<8x128xf32>
    %512 = vector.extract_strided_slice %494 {offsets = [0, 256], sizes = [8, 128], strides = [1, 1]} : vector<8x384xf32> to vector<8x128xf32>
    %513 = vector.broadcast %493 : vector<1x128xf32> to vector<8x128xf32>
    %514 = arith.addf %512, %513 : vector<8x128xf32>
    %515 = arith.mulf %502, %514 : vector<8x128xf32>
    %516 = arith.addf %511, %515 : vector<8x128xf32>
    %517 = math.tanh %516 : vector<8x128xf32>
    %cst_236 = arith.constant 1.000000e+00 : f32
    %518 = vector.broadcast %cst_236 : f32 to vector<8x128xf32>
    %519 = arith.subf %518, %510 : vector<8x128xf32>
    %520 = arith.mulf %519, %517 : vector<8x128xf32>
    %521 = arith.mulf %510, %433 : vector<8x128xf32>
    %522 = arith.addf %520, %521 : vector<8x128xf32>
    %c0_i32_237 = arith.constant 0 : i32
    %c0_i32_238 = arith.constant 0 : i32
    %c0_i32_239 = arith.constant 0 : i32
    %523 = tpu.memref_slice %arg4[%c0_i32_0, %c0_i32_237, %c0_i32_238, %c0_i32_239] : memref<2x8x8x128xf32, #tpu.memory_space<vmem>> -> memref<1x8x8x128xf32, #tpu.memory_space<vmem>>
    %524 = tpu.memref_squeeze %523 : memref<1x8x8x128xf32, #tpu.memory_space<vmem>> -> memref<8x8x128xf32, #tpu.memory_space<vmem>>
    %525 = arith.index_cast %c5_i32 : i32 to index
    %c0_240 = arith.constant 0 : index
    %c0_241 = arith.constant 0 : index
    %526 = vector.load %524[%525, %c0_240, %c0_241] : memref<8x8x128xf32, #tpu.memory_space<vmem>>, vector<1x8x128xf32>
    %527 = vector.shape_cast %526 : vector<1x8x128xf32> to vector<8x128xf32>
    %528 = vector.shape_cast %484 : vector<8x128xf32> to vector<1x8x128xf32>
    tpu.vector_store %524[%525, %c0_240, %c0_241], %528 {strides = array<i32>} : memref<8x8x128xf32, #tpu.memory_space<vmem>>, vector<1x8x128xf32>,
    %c0_i32_242 = arith.constant 0 : i32
    %c0_i32_243 = arith.constant 0 : i32
    %c0_i32_244 = arith.constant 0 : i32
    %529 = tpu.memref_slice %arg4[%c1_i32_1, %c0_i32_242, %c0_i32_243, %c0_i32_244] : memref<2x8x8x128xf32, #tpu.memory_space<vmem>> -> memref<1x8x8x128xf32, #tpu.memory_space<vmem>>
    %530 = tpu.memref_squeeze %529 : memref<1x8x8x128xf32, #tpu.memory_space<vmem>> -> memref<8x8x128xf32, #tpu.memory_space<vmem>>
    %531 = arith.index_cast %446 : i32 to index
    %c0_245 = arith.constant 0 : index
    %c0_246 = arith.constant 0 : index
    %532 = vector.load %530[%531, %c0_245, %c0_246] : memref<8x8x128xf32, #tpu.memory_space<vmem>>, vector<1x8x128xf32>
    %533 = vector.shape_cast %532 : vector<1x8x128xf32> to vector<8x128xf32>
    %534 = vector.shape_cast %522 : vector<8x128xf32> to vector<1x8x128xf32>
    tpu.vector_store %530[%531, %c0_245, %c0_246], %534 {strides = array<i32>} : memref<8x8x128xf32, #tpu.memory_space<vmem>>, vector<1x8x128xf32>,
    %c6_i32 = arith.constant 6 : i32
    %c7_i32_247 = arith.constant 7 : i32
    %535 = arith.subi %c7_i32_247, %c6_i32 : i32
    %c0_i32_248 = arith.constant 0 : i32
    %c0_i32_249 = arith.constant 0 : i32
    %c0_i32_250 = arith.constant 0 : i32
    %536 = tpu.memref_slice %arg1[%c0_i32, %c0_i32_248, %c0_i32_249, %c0_i32_250] : memref<2x8x8x384xf32, #tpu.memory_space<vmem>> -> memref<1x8x8x384xf32, #tpu.memory_space<vmem>>
    %537 = tpu.memref_squeeze %536 : memref<1x8x8x384xf32, #tpu.memory_space<vmem>> -> memref<8x8x384xf32, #tpu.memory_space<vmem>>
    %538 = arith.index_cast %c6_i32 : i32 to index
    %c0_251 = arith.constant 0 : index
    %c0_252 = arith.constant 0 : index
    %539 = vector.load %537[%538, %c0_251, %c0_252] : memref<8x8x384xf32, #tpu.memory_space<vmem>>, vector<1x8x384xf32>
    %540 = vector.shape_cast %539 : vector<1x8x384xf32> to vector<8x384xf32>
    %c0_253 = arith.constant 0 : index
    %c0_254 = arith.constant 0 : index
    %c0_255 = arith.constant 0 : index
    %541 = vector.load %arg2[%c0_253, %c0_254, %c0_255] : memref<2x128x384xf32, #tpu.memory_space<vmem>>, vector<1x128x384xf32>
    %542 = vector.shape_cast %541 : vector<1x128x384xf32> to vector<128x384xf32>
    %c0_256 = arith.constant 0 : index
    %c0_257 = arith.constant 0 : index
    %c0_258 = arith.constant 0 : index
    %543 = vector.load %arg3[%c0_256, %c0_257, %c0_258] : memref<2x1x128xf32, #tpu.memory_space<vmem>>, vector<1x1x128xf32>
    %544 = vector.shape_cast %543 : vector<1x1x128xf32> to vector<1x128xf32>
    %cst_259 = arith.constant dense<0.000000e+00> : vector<8x384xf32>
    %545 = tpu.matmul %484, %542, %cst_259 {dimension_numbers = #tpu.dot_dimension_numbers<[1], [0], [0], [1], [0, 0, 1, 1], [], []>} : vector<8x128xf32>, vector<128x384xf32>, vector<8x384xf32> -> vector<8x384xf32>
    %546 = vector.extract_strided_slice %540 {offsets = [0, 0], sizes = [8, 128], strides = [1, 1]} : vector<8x384xf32> to vector<8x128xf32>
    %547 = vector.extract_strided_slice %545 {offsets = [0, 0], sizes = [8, 128], strides = [1, 1]} : vector<8x384xf32> to vector<8x128xf32>
    %548 = arith.addf %546, %547 : vector<8x128xf32>
    %549 = arith.negf %548 : vector<8x128xf32>
    %550 = math.exp %549 : vector<8x128xf32>
    %cst_260 = arith.constant 1.000000e+00 : f32
    %551 = vector.broadcast %cst_260 : f32 to vector<8x128xf32>
    %552 = arith.addf %551, %550 : vector<8x128xf32>
    %553 = arith.divf %551, %552 : vector<8x128xf32>
    %554 = vector.extract_strided_slice %540 {offsets = [0, 128], sizes = [8, 128], strides = [1, 1]} : vector<8x384xf32> to vector<8x128xf32>
    %555 = vector.extract_strided_slice %545 {offsets = [0, 128], sizes = [8, 128], strides = [1, 1]} : vector<8x384xf32> to vector<8x128xf32>
    %556 = arith.addf %554, %555 : vector<8x128xf32>
    %557 = arith.negf %556 : vector<8x128xf32>
    %558 = math.exp %557 : vector<8x128xf32>
    %cst_261 = arith.constant 1.000000e+00 : f32
    %559 = vector.broadcast %cst_261 : f32 to vector<8x128xf32>
    %560 = arith.addf %559, %558 : vector<8x128xf32>
    %561 = arith.divf %559, %560 : vector<8x128xf32>
    %562 = vector.extract_strided_slice %540 {offsets = [0, 256], sizes = [8, 128], strides = [1, 1]} : vector<8x384xf32> to vector<8x128xf32>
    %563 = vector.extract_strided_slice %545 {offsets = [0, 256], sizes = [8, 128], strides = [1, 1]} : vector<8x384xf32> to vector<8x128xf32>
    %564 = vector.broadcast %544 : vector<1x128xf32> to vector<8x128xf32>
    %565 = arith.addf %563, %564 : vector<8x128xf32>
    %566 = arith.mulf %553, %565 : vector<8x128xf32>
    %567 = arith.addf %562, %566 : vector<8x128xf32>
    %568 = math.tanh %567 : vector<8x128xf32>
    %cst_262 = arith.constant 1.000000e+00 : f32
    %569 = vector.broadcast %cst_262 : f32 to vector<8x128xf32>
    %570 = arith.subf %569, %561 : vector<8x128xf32>
    %571 = arith.mulf %570, %568 : vector<8x128xf32>
    %572 = arith.mulf %561, %484 : vector<8x128xf32>
    %573 = arith.addf %571, %572 : vector<8x128xf32>
    %c0_i32_263 = arith.constant 0 : i32
    %c0_i32_264 = arith.constant 0 : i32
    %c0_i32_265 = arith.constant 0 : i32
    %574 = tpu.memref_slice %arg1[%c1_i32, %c0_i32_263, %c0_i32_264, %c0_i32_265] : memref<2x8x8x384xf32, #tpu.memory_space<vmem>> -> memref<1x8x8x384xf32, #tpu.memory_space<vmem>>
    %575 = tpu.memref_squeeze %574 : memref<1x8x8x384xf32, #tpu.memory_space<vmem>> -> memref<8x8x384xf32, #tpu.memory_space<vmem>>
    %576 = arith.index_cast %535 : i32 to index
    %c0_266 = arith.constant 0 : index
    %c0_267 = arith.constant 0 : index
    %577 = vector.load %575[%576, %c0_266, %c0_267] : memref<8x8x384xf32, #tpu.memory_space<vmem>>, vector<1x8x384xf32>
    %578 = vector.shape_cast %577 : vector<1x8x384xf32> to vector<8x384xf32>
    %c1_268 = arith.constant 1 : index
    %c0_269 = arith.constant 0 : index
    %c0_270 = arith.constant 0 : index
    %579 = vector.load %arg2[%c1_268, %c0_269, %c0_270] : memref<2x128x384xf32, #tpu.memory_space<vmem>>, vector<1x128x384xf32>
    %580 = vector.shape_cast %579 : vector<1x128x384xf32> to vector<128x384xf32>
    %c1_271 = arith.constant 1 : index
    %c0_272 = arith.constant 0 : index
    %c0_273 = arith.constant 0 : index
    %581 = vector.load %arg3[%c1_271, %c0_272, %c0_273] : memref<2x1x128xf32, #tpu.memory_space<vmem>>, vector<1x1x128xf32>
    %582 = vector.shape_cast %581 : vector<1x1x128xf32> to vector<1x128xf32>
    %cst_274 = arith.constant dense<0.000000e+00> : vector<8x384xf32>
    %583 = tpu.matmul %522, %580, %cst_274 {dimension_numbers = #tpu.dot_dimension_numbers<[1], [0], [0], [1], [0, 0, 1, 1], [], []>} : vector<8x128xf32>, vector<128x384xf32>, vector<8x384xf32> -> vector<8x384xf32>
    %584 = vector.extract_strided_slice %578 {offsets = [0, 0], sizes = [8, 128], strides = [1, 1]} : vector<8x384xf32> to vector<8x128xf32>
    %585 = vector.extract_strided_slice %583 {offsets = [0, 0], sizes = [8, 128], strides = [1, 1]} : vector<8x384xf32> to vector<8x128xf32>
    %586 = arith.addf %584, %585 : vector<8x128xf32>
    %587 = arith.negf %586 : vector<8x128xf32>
    %588 = math.exp %587 : vector<8x128xf32>
    %cst_275 = arith.constant 1.000000e+00 : f32
    %589 = vector.broadcast %cst_275 : f32 to vector<8x128xf32>
    %590 = arith.addf %589, %588 : vector<8x128xf32>
    %591 = arith.divf %589, %590 : vector<8x128xf32>
    %592 = vector.extract_strided_slice %578 {offsets = [0, 128], sizes = [8, 128], strides = [1, 1]} : vector<8x384xf32> to vector<8x128xf32>
    %593 = vector.extract_strided_slice %583 {offsets = [0, 128], sizes = [8, 128], strides = [1, 1]} : vector<8x384xf32> to vector<8x128xf32>
    %594 = arith.addf %592, %593 : vector<8x128xf32>
    %595 = arith.negf %594 : vector<8x128xf32>
    %596 = math.exp %595 : vector<8x128xf32>
    %cst_276 = arith.constant 1.000000e+00 : f32
    %597 = vector.broadcast %cst_276 : f32 to vector<8x128xf32>
    %598 = arith.addf %597, %596 : vector<8x128xf32>
    %599 = arith.divf %597, %598 : vector<8x128xf32>
    %600 = vector.extract_strided_slice %578 {offsets = [0, 256], sizes = [8, 128], strides = [1, 1]} : vector<8x384xf32> to vector<8x128xf32>
    %601 = vector.extract_strided_slice %583 {offsets = [0, 256], sizes = [8, 128], strides = [1, 1]} : vector<8x384xf32> to vector<8x128xf32>
    %602 = vector.broadcast %582 : vector<1x128xf32> to vector<8x128xf32>
    %603 = arith.addf %601, %602 : vector<8x128xf32>
    %604 = arith.mulf %591, %603 : vector<8x128xf32>
    %605 = arith.addf %600, %604 : vector<8x128xf32>
    %606 = math.tanh %605 : vector<8x128xf32>
    %cst_277 = arith.constant 1.000000e+00 : f32
    %607 = vector.broadcast %cst_277 : f32 to vector<8x128xf32>
    %608 = arith.subf %607, %599 : vector<8x128xf32>
    %609 = arith.mulf %608, %606 : vector<8x128xf32>
    %610 = arith.mulf %599, %522 : vector<8x128xf32>
    %611 = arith.addf %609, %610 : vector<8x128xf32>
    %c0_i32_278 = arith.constant 0 : i32
    %c0_i32_279 = arith.constant 0 : i32
    %c0_i32_280 = arith.constant 0 : i32
    %612 = tpu.memref_slice %arg4[%c0_i32_0, %c0_i32_278, %c0_i32_279, %c0_i32_280] : memref<2x8x8x128xf32, #tpu.memory_space<vmem>> -> memref<1x8x8x128xf32, #tpu.memory_space<vmem>>
    %613 = tpu.memref_squeeze %612 : memref<1x8x8x128xf32, #tpu.memory_space<vmem>> -> memref<8x8x128xf32, #tpu.memory_space<vmem>>
    %614 = arith.index_cast %c6_i32 : i32 to index
    %c0_281 = arith.constant 0 : index
    %c0_282 = arith.constant 0 : index
    %615 = vector.load %613[%614, %c0_281, %c0_282] : memref<8x8x128xf32, #tpu.memory_space<vmem>>, vector<1x8x128xf32>
    %616 = vector.shape_cast %615 : vector<1x8x128xf32> to vector<8x128xf32>
    %617 = vector.shape_cast %573 : vector<8x128xf32> to vector<1x8x128xf32>
    tpu.vector_store %613[%614, %c0_281, %c0_282], %617 {strides = array<i32>} : memref<8x8x128xf32, #tpu.memory_space<vmem>>, vector<1x8x128xf32>,
    %c0_i32_283 = arith.constant 0 : i32
    %c0_i32_284 = arith.constant 0 : i32
    %c0_i32_285 = arith.constant 0 : i32
    %618 = tpu.memref_slice %arg4[%c1_i32_1, %c0_i32_283, %c0_i32_284, %c0_i32_285] : memref<2x8x8x128xf32, #tpu.memory_space<vmem>> -> memref<1x8x8x128xf32, #tpu.memory_space<vmem>>
    %619 = tpu.memref_squeeze %618 : memref<1x8x8x128xf32, #tpu.memory_space<vmem>> -> memref<8x8x128xf32, #tpu.memory_space<vmem>>
    %620 = arith.index_cast %535 : i32 to index
    %c0_286 = arith.constant 0 : index
    %c0_287 = arith.constant 0 : index
    %621 = vector.load %619[%620, %c0_286, %c0_287] : memref<8x8x128xf32, #tpu.memory_space<vmem>>, vector<1x8x128xf32>
    %622 = vector.shape_cast %621 : vector<1x8x128xf32> to vector<8x128xf32>
    %623 = vector.shape_cast %611 : vector<8x128xf32> to vector<1x8x128xf32>
    tpu.vector_store %619[%620, %c0_286, %c0_287], %623 {strides = array<i32>} : memref<8x8x128xf32, #tpu.memory_space<vmem>>, vector<1x8x128xf32>,
    %c7_i32_288 = arith.constant 7 : i32
    %c7_i32_289 = arith.constant 7 : i32
    %624 = arith.subi %c7_i32_289, %c7_i32_288 : i32
    %c0_i32_290 = arith.constant 0 : i32
    %c0_i32_291 = arith.constant 0 : i32
    %c0_i32_292 = arith.constant 0 : i32
    %625 = tpu.memref_slice %arg1[%c0_i32, %c0_i32_290, %c0_i32_291, %c0_i32_292] : memref<2x8x8x384xf32, #tpu.memory_space<vmem>> -> memref<1x8x8x384xf32, #tpu.memory_space<vmem>>
    %626 = tpu.memref_squeeze %625 : memref<1x8x8x384xf32, #tpu.memory_space<vmem>> -> memref<8x8x384xf32, #tpu.memory_space<vmem>>
    %627 = arith.index_cast %c7_i32_288 : i32 to index
    %c0_293 = arith.constant 0 : index
    %c0_294 = arith.constant 0 : index
    %628 = vector.load %626[%627, %c0_293, %c0_294] : memref<8x8x384xf32, #tpu.memory_space<vmem>>, vector<1x8x384xf32>
    %629 = vector.shape_cast %628 : vector<1x8x384xf32> to vector<8x384xf32>
    %c0_295 = arith.constant 0 : index
    %c0_296 = arith.constant 0 : index
    %c0_297 = arith.constant 0 : index
    %630 = vector.load %arg2[%c0_295, %c0_296, %c0_297] : memref<2x128x384xf32, #tpu.memory_space<vmem>>, vector<1x128x384xf32>
    %631 = vector.shape_cast %630 : vector<1x128x384xf32> to vector<128x384xf32>
    %c0_298 = arith.constant 0 : index
    %c0_299 = arith.constant 0 : index
    %c0_300 = arith.constant 0 : index
    %632 = vector.load %arg3[%c0_298, %c0_299, %c0_300] : memref<2x1x128xf32, #tpu.memory_space<vmem>>, vector<1x1x128xf32>
    %633 = vector.shape_cast %632 : vector<1x1x128xf32> to vector<1x128xf32>
    %cst_301 = arith.constant dense<0.000000e+00> : vector<8x384xf32>
    %634 = tpu.matmul %573, %631, %cst_301 {dimension_numbers = #tpu.dot_dimension_numbers<[1], [0], [0], [1], [0, 0, 1, 1], [], []>} : vector<8x128xf32>, vector<128x384xf32>, vector<8x384xf32> -> vector<8x384xf32>
    %635 = vector.extract_strided_slice %629 {offsets = [0, 0], sizes = [8, 128], strides = [1, 1]} : vector<8x384xf32> to vector<8x128xf32>
    %636 = vector.extract_strided_slice %634 {offsets = [0, 0], sizes = [8, 128], strides = [1, 1]} : vector<8x384xf32> to vector<8x128xf32>
    %637 = arith.addf %635, %636 : vector<8x128xf32>
    %638 = arith.negf %637 : vector<8x128xf32>
    %639 = math.exp %638 : vector<8x128xf32>
    %cst_302 = arith.constant 1.000000e+00 : f32
    %640 = vector.broadcast %cst_302 : f32 to vector<8x128xf32>
    %641 = arith.addf %640, %639 : vector<8x128xf32>
    %642 = arith.divf %640, %641 : vector<8x128xf32>
    %643 = vector.extract_strided_slice %629 {offsets = [0, 128], sizes = [8, 128], strides = [1, 1]} : vector<8x384xf32> to vector<8x128xf32>
    %644 = vector.extract_strided_slice %634 {offsets = [0, 128], sizes = [8, 128], strides = [1, 1]} : vector<8x384xf32> to vector<8x128xf32>
    %645 = arith.addf %643, %644 : vector<8x128xf32>
    %646 = arith.negf %645 : vector<8x128xf32>
    %647 = math.exp %646 : vector<8x128xf32>
    %cst_303 = arith.constant 1.000000e+00 : f32
    %648 = vector.broadcast %cst_303 : f32 to vector<8x128xf32>
    %649 = arith.addf %648, %647 : vector<8x128xf32>
    %650 = arith.divf %648, %649 : vector<8x128xf32>
    %651 = vector.extract_strided_slice %629 {offsets = [0, 256], sizes = [8, 128], strides = [1, 1]} : vector<8x384xf32> to vector<8x128xf32>
    %652 = vector.extract_strided_slice %634 {offsets = [0, 256], sizes = [8, 128], strides = [1, 1]} : vector<8x384xf32> to vector<8x128xf32>
    %653 = vector.broadcast %633 : vector<1x128xf32> to vector<8x128xf32>
    %654 = arith.addf %652, %653 : vector<8x128xf32>
    %655 = arith.mulf %642, %654 : vector<8x128xf32>
    %656 = arith.addf %651, %655 : vector<8x128xf32>
    %657 = math.tanh %656 : vector<8x128xf32>
    %cst_304 = arith.constant 1.000000e+00 : f32
    %658 = vector.broadcast %cst_304 : f32 to vector<8x128xf32>
    %659 = arith.subf %658, %650 : vector<8x128xf32>
    %660 = arith.mulf %659, %657 : vector<8x128xf32>
    %661 = arith.mulf %650, %573 : vector<8x128xf32>
    %662 = arith.addf %660, %661 : vector<8x128xf32>
    %c0_i32_305 = arith.constant 0 : i32
    %c0_i32_306 = arith.constant 0 : i32
    %c0_i32_307 = arith.constant 0 : i32
    %663 = tpu.memref_slice %arg1[%c1_i32, %c0_i32_305, %c0_i32_306, %c0_i32_307] : memref<2x8x8x384xf32, #tpu.memory_space<vmem>> -> memref<1x8x8x384xf32, #tpu.memory_space<vmem>>
    %664 = tpu.memref_squeeze %663 : memref<1x8x8x384xf32, #tpu.memory_space<vmem>> -> memref<8x8x384xf32, #tpu.memory_space<vmem>>
    %665 = arith.index_cast %624 : i32 to index
    %c0_308 = arith.constant 0 : index
    %c0_309 = arith.constant 0 : index
    %666 = vector.load %664[%665, %c0_308, %c0_309] : memref<8x8x384xf32, #tpu.memory_space<vmem>>, vector<1x8x384xf32>
    %667 = vector.shape_cast %666 : vector<1x8x384xf32> to vector<8x384xf32>
    %c1_310 = arith.constant 1 : index
    %c0_311 = arith.constant 0 : index
    %c0_312 = arith.constant 0 : index
    %668 = vector.load %arg2[%c1_310, %c0_311, %c0_312] : memref<2x128x384xf32, #tpu.memory_space<vmem>>, vector<1x128x384xf32>
    %669 = vector.shape_cast %668 : vector<1x128x384xf32> to vector<128x384xf32>
    %c1_313 = arith.constant 1 : index
    %c0_314 = arith.constant 0 : index
    %c0_315 = arith.constant 0 : index
    %670 = vector.load %arg3[%c1_313, %c0_314, %c0_315] : memref<2x1x128xf32, #tpu.memory_space<vmem>>, vector<1x1x128xf32>
    %671 = vector.shape_cast %670 : vector<1x1x128xf32> to vector<1x128xf32>
    %cst_316 = arith.constant dense<0.000000e+00> : vector<8x384xf32>
    %672 = tpu.matmul %611, %669, %cst_316 {dimension_numbers = #tpu.dot_dimension_numbers<[1], [0], [0], [1], [0, 0, 1, 1], [], []>} : vector<8x128xf32>, vector<128x384xf32>, vector<8x384xf32> -> vector<8x384xf32>
    %673 = vector.extract_strided_slice %667 {offsets = [0, 0], sizes = [8, 128], strides = [1, 1]} : vector<8x384xf32> to vector<8x128xf32>
    %674 = vector.extract_strided_slice %672 {offsets = [0, 0], sizes = [8, 128], strides = [1, 1]} : vector<8x384xf32> to vector<8x128xf32>
    %675 = arith.addf %673, %674 : vector<8x128xf32>
    %676 = arith.negf %675 : vector<8x128xf32>
    %677 = math.exp %676 : vector<8x128xf32>
    %cst_317 = arith.constant 1.000000e+00 : f32
    %678 = vector.broadcast %cst_317 : f32 to vector<8x128xf32>
    %679 = arith.addf %678, %677 : vector<8x128xf32>
    %680 = arith.divf %678, %679 : vector<8x128xf32>
    %681 = vector.extract_strided_slice %667 {offsets = [0, 128], sizes = [8, 128], strides = [1, 1]} : vector<8x384xf32> to vector<8x128xf32>
    %682 = vector.extract_strided_slice %672 {offsets = [0, 128], sizes = [8, 128], strides = [1, 1]} : vector<8x384xf32> to vector<8x128xf32>
    %683 = arith.addf %681, %682 : vector<8x128xf32>
    %684 = arith.negf %683 : vector<8x128xf32>
    %685 = math.exp %684 : vector<8x128xf32>
    %cst_318 = arith.constant 1.000000e+00 : f32
    %686 = vector.broadcast %cst_318 : f32 to vector<8x128xf32>
    %687 = arith.addf %686, %685 : vector<8x128xf32>
    %688 = arith.divf %686, %687 : vector<8x128xf32>
    %689 = vector.extract_strided_slice %667 {offsets = [0, 256], sizes = [8, 128], strides = [1, 1]} : vector<8x384xf32> to vector<8x128xf32>
    %690 = vector.extract_strided_slice %672 {offsets = [0, 256], sizes = [8, 128], strides = [1, 1]} : vector<8x384xf32> to vector<8x128xf32>
    %691 = vector.broadcast %671 : vector<1x128xf32> to vector<8x128xf32>
    %692 = arith.addf %690, %691 : vector<8x128xf32>
    %693 = arith.mulf %680, %692 : vector<8x128xf32>
    %694 = arith.addf %689, %693 : vector<8x128xf32>
    %695 = math.tanh %694 : vector<8x128xf32>
    %cst_319 = arith.constant 1.000000e+00 : f32
    %696 = vector.broadcast %cst_319 : f32 to vector<8x128xf32>
    %697 = arith.subf %696, %688 : vector<8x128xf32>
    %698 = arith.mulf %697, %695 : vector<8x128xf32>
    %699 = arith.mulf %688, %611 : vector<8x128xf32>
    %700 = arith.addf %698, %699 : vector<8x128xf32>
    %c0_i32_320 = arith.constant 0 : i32
    %c0_i32_321 = arith.constant 0 : i32
    %c0_i32_322 = arith.constant 0 : i32
    %701 = tpu.memref_slice %arg4[%c0_i32_0, %c0_i32_320, %c0_i32_321, %c0_i32_322] : memref<2x8x8x128xf32, #tpu.memory_space<vmem>> -> memref<1x8x8x128xf32, #tpu.memory_space<vmem>>
    %702 = tpu.memref_squeeze %701 : memref<1x8x8x128xf32, #tpu.memory_space<vmem>> -> memref<8x8x128xf32, #tpu.memory_space<vmem>>
    %703 = arith.index_cast %c7_i32_288 : i32 to index
    %c0_323 = arith.constant 0 : index
    %c0_324 = arith.constant 0 : index
    %704 = vector.load %702[%703, %c0_323, %c0_324] : memref<8x8x128xf32, #tpu.memory_space<vmem>>, vector<1x8x128xf32>
    %705 = vector.shape_cast %704 : vector<1x8x128xf32> to vector<8x128xf32>
    %706 = vector.shape_cast %662 : vector<8x128xf32> to vector<1x8x128xf32>
    tpu.vector_store %702[%703, %c0_323, %c0_324], %706 {strides = array<i32>} : memref<8x8x128xf32, #tpu.memory_space<vmem>>, vector<1x8x128xf32>,
    %c0_i32_325 = arith.constant 0 : i32
    %c0_i32_326 = arith.constant 0 : i32
    %c0_i32_327 = arith.constant 0 : i32
    %707 = tpu.memref_slice %arg4[%c1_i32_1, %c0_i32_325, %c0_i32_326, %c0_i32_327] : memref<2x8x8x128xf32, #tpu.memory_space<vmem>> -> memref<1x8x8x128xf32, #tpu.memory_space<vmem>>
    %708 = tpu.memref_squeeze %707 : memref<1x8x8x128xf32, #tpu.memory_space<vmem>> -> memref<8x8x128xf32, #tpu.memory_space<vmem>>
    %709 = arith.index_cast %624 : i32 to index
    %c0_328 = arith.constant 0 : index
    %c0_329 = arith.constant 0 : index
    %710 = vector.load %708[%709, %c0_328, %c0_329] : memref<8x8x128xf32, #tpu.memory_space<vmem>>, vector<1x8x128xf32>
    %711 = vector.shape_cast %710 : vector<1x8x128xf32> to vector<8x128xf32>
    %712 = vector.shape_cast %700 : vector<8x128xf32> to vector<1x8x128xf32>
    tpu.vector_store %708[%709, %c0_328, %c0_329], %712 {strides = array<i32>} : memref<8x8x128xf32, #tpu.memory_space<vmem>>, vector<1x8x128xf32>,
    %c8_i32 = arith.constant 8 : i32
    return
  }
  func.func @transform_0(%arg0: i32) -> (i32, i32, i32, i32) {
    %c0_i32 = arith.constant 0 : i32
    %c0_i32_0 = arith.constant 0 : i32
    %c0_i32_1 = arith.constant 0 : i32
    %c0_i32_2 = arith.constant 0 : i32
    %c0_i32_3 = arith.constant 0 : i32
    return %c0_i32, %c0_i32_0, %c0_i32_1, %c0_i32_2 : i32, i32, i32, i32
  }
  func.func @transform_1(%arg0: i32) -> (i32, i32, i32) {
    %c0_i32 = arith.constant 0 : i32
    %c0_i32_0 = arith.constant 0 : i32
    %c0_i32_1 = arith.constant 0 : i32
    %c0_i32_2 = arith.constant 0 : i32
    return %c0_i32, %c0_i32_0, %c0_i32_1 : i32, i32, i32
  }
  func.func @transform_2(%arg0: i32) -> (i32, i32, i32) {
    %c0_i32 = arith.constant 0 : i32
    %c0_i32_0 = arith.constant 0 : i32
    %c0_i32_1 = arith.constant 0 : i32
    %c0_i32_2 = arith.constant 0 : i32
    return %c0_i32, %c0_i32_0, %c0_i32_1 : i32, i32, i32
  }
  func.func @transform_3(%arg0: i32) -> (i32, i32, i32, i32) {
    %c0_i32 = arith.constant 0 : i32
    %c0_i32_0 = arith.constant 0 : i32
    %c0_i32_1 = arith.constant 0 : i32
    %c0_i32_2 = arith.constant 0 : i32
    %c0_i32_3 = arith.constant 0 : i32
    return %c0_i32, %c0_i32_0, %c0_i32_1, %c0_i32_2 : i32, i32, i32, i32
  }
}

</mosaic_0001>

<bundles_post_ra>
// kernel: bi_gru_layer_2_forward.2
= control target key start
LH: loop header
LB: loop body
LE: loop exit
PB: predicated region body
PF: predicated region fallthrough
CT: control target
= control target key end

     0   :  { %v6007_v3 = vmov 0.0|0.0   ;;  %v6008_v4 = vmov 0.0   ;;  %vm6009_vm0 = vmmov 0   ;;  %s8424_s1 = inlined_call_operand.vmem [shape: f32[2,128,384], index: 1, kind: input, shape index: {}]   ;;  %s8425_s0 = inlined_call_operand.vmem [shape: f32[2,8,8,384], index: 0, kind: input, shape index: {}]   ;;  %s8426_s2 = inlined_call_operand.vmem [shape: f32[2,1,128], index: 2, kind: input, shape index: {}]   ;;  %s8427_s3 = inlined_call_operand.vmem [shape: f32[2,8,8,128], index: 3, kind: output, shape index: {}]  }
   0x1   :  { %v18_v0 = vld [vmem:[%s8424_s1 + $0x8] sm:$0xff]  ;;  %v21_v1 = vld [vmem:[%s8424_s1 + $0x20] sm:$0xff]  ;;  %4980 = vmatprep.subr.bf16.mxu1 %v6007_v3  ;;  %130 = vmatprep.mubr.f32.mxu0 %v6008_v4  ;;  %v20_v6 = vld [vmem:[%s8424_s1 + $0x18] sm:$0xff] }
   0x2   :  { %v17_v2 = vld [vmem:[%s8424_s1] sm:$0xff]  ;;  %v6041_v5 = vpack.c.bf16 %v21_v1, %v18_v0  ;;  %v24_v7 = vld [vmem:[%s8424_s1 + $0x38] sm:$0xff]  ;;  %v27_v8 = vld [vmem:[%s8424_s1 + $0x50] sm:$0xff]  ;;  %4420 = vmatprep.mubr.msk.f32.mxu1 %vm6009_vm0, %v6008_v4 }
   0x3   :  { %v6054_v9 = vpack.c.bf16 %v20_v6, %v17_v2  ;;  %v6056_v10 = vpack.c.bf16 %v27_v8, %v24_v7  ;;  %v23_v11 = vld [vmem:[%s8424_s1 + $0x30] sm:$0xff]  ;;  %v26_v12 = vld [vmem:[%s8424_s1 + $0x48] sm:$0xff]  ;;  %v33_v14 = vld [vmem:[%s8424_s1 + $0x80] sm:$0xff] }
   0x4   :  { %v30_v13 = vld [vmem:[%s8424_s1 + $0x68] sm:$0xff]  ;;  %4949 = vmatprep.subr.bf16.mxu0 %v6041_v5  ;;  %v6072_v15 = vpack.c.bf16 %v26_v12, %v23_v11  ;;  %v29_v17 = vld [vmem:[%s8424_s1 + $0x60] sm:$0xff]  ;;  %v32_v18 = vld [vmem:[%s8424_s1 + $0x78] sm:$0xff] }
   0x5   :  { %4951 = vmatpush1.bf16.msra.mxu0 %v6054_v9  ;;  %v6075_v16 = vpack.c.bf16 %v33_v14, %v30_v13  ;;  %v36_v19 = vld [vmem:[%s8424_s1 + $0x98] sm:$0xff]  ;;  %v39_v20 = vld [vmem:[%s8424_s1 + $0xb0] sm:$0xff]  ;;  %v6090_v21 = vpack.c.bf16 %v32_v18, %v29_v17  ;;  %v38_v24 = vld [vmem:[%s8424_s1 + $0xa8] sm:$0xff] }
   0x6   :  { %4953 = vmatprep.subr.bf16.mxu0 %v6056_v10  ;;  %v35_v22 = vld [vmem:[%s8424_s1 + $0x90] sm:$0xff]  ;;  %v6096_v23 = vpack.c.bf16 %v39_v20, %v36_v19  ;;  %v22_v26 = vld [vmem:[%s8424_s1 + $0x28] sm:$0xff]  ;;  %v45_v28 = vld [vmem:[%s8424_s1 + $0xe0] sm:$0xff] }
   0x7   :  { %v19_v25 = vld [vmem:[%s8424_s1 + $0x10] sm:$0xff]  ;;  %v42_v27 = vld [vmem:[%s8424_s1 + $0xc8] sm:$0xff]  ;;  %v25_v30 = vld [vmem:[%s8424_s1 + $0x40] sm:$0xff]  ;;  %v6122_v32 = vpack.c.bf16 %v38_v24, %v35_v22 }
   0x8   :  { %v6113_v29 = vpack.c.bf16 %v22_v26, %v19_v25  ;;  %v28_v31 = vld [vmem:[%s8424_s1 + $0x58] sm:$0xff]  ;;  %v41_v33 = vld [vmem:[%s8424_s1 + $0xc0] sm:$0xff]  ;;  %v6131_v35 = vpack.c.bf16 %v45_v28, %v42_v27  ;;  %v31_v37 = vld [vmem:[%s8424_s1 + $0x70] sm:$0xff] }
   0x9   :  { %4955 = vmatpush1.bf16.msra.mxu0 %v6072_v15  ;;  %v6128_v34 = vpack.c.bf16 %v28_v31, %v25_v30  ;;  %v44_v36 = vld [vmem:[%s8424_s1 + $0xd8] sm:$0xff]  ;;  %v34_v38 = vld [vmem:[%s8424_s1 + $0x88] sm:$0xff]  ;;  %v51_v40 = vld [vmem:[%s8424_s1 + $0x110] sm:$0xff] }
   0xa   :  { %4957 = vmatprep.subr.bf16.mxu0 %v6075_v16  ;;  %4982 = vmatpush3.bf16.msra.mxu1 %v6113_v29  ;;  %v48_v39 = vld [vmem:[%s8424_s1 + $0xf8] sm:$0xff]  ;;  %v6150_v41 = vpack.c.bf16 %v44_v36, %v41_v33  ;;  %v47_v42 = vld [vmem:[%s8424_s1 + $0xf0] sm:$0xff]  ;;  %v6156_v43 = vpack.c.bf16 %v34_v38, %v31_v37  ;;  %v50_v45 = vld [vmem:[%s8424_s1 + $0x108] sm:$0xff] }
   0xb   :  { %4983 = vmatprep.subr.bf16.mxu1 %v6007_v3  ;;  %v6159_v44 = vpack.c.bf16 %v51_v40, %v48_v39  ;;  %v37_v46 = vld [vmem:[%s8424_s1 + $0xa0] sm:$0xff]  ;;  %v40_v47 = vld [vmem:[%s8424_s1 + $0xb8] sm:$0xff]  ;;  %v54_v48 = vld [vmem:[%s8424_s1 + $0x128] sm:$0xff]  ;;  %v6178_v50 = vpack.c.bf16 %v50_v45, %v47_v42 }
   0xc   :  { %v57_v49 = vld [vmem:[%s8424_s1 + $0x140] sm:$0xff]  ;;  %v6184_v52 = vpack.c.bf16 %v40_v47, %v37_v46  ;;  %v56_v54 = vld [vmem:[%s8424_s1 + $0x138] sm:$0xff]  ;;  %v43_v55 = vld [vmem:[%s8424_s1 + $0xd0] sm:$0xff] }
   0xd   :  { %4959 = vmatpush1.bf16.msra.mxu0 %v6090_v21  ;;  %v53_v51 = vld [vmem:[%s8424_s1 + $0x120] sm:$0xff]  ;;  %v6187_v53 = vpack.c.bf16 %v57_v49, %v54_v48  ;;  %v46_v56 = vld [vmem:[%s8424_s1 + $0xe8] sm:$0xff]  ;;  %v60_v57 = vld [vmem:[%s8424_s1 + $0x158] sm:$0xff] }
   0xe   :  { %4961 = vmatprep.subr.bf16.mxu0 %v6096_v23  ;;  %4985 = vmatpush3.bf16.msra.mxu1 %v6128_v34  ;;  %v63_v58 = vld [vmem:[%s8424_s1 + $0x170] sm:$0xff]  ;;  %v6206_v59 = vpack.c.bf16 %v56_v54, %v53_v51  ;;  %v6212_v61 = vpack.c.bf16 %v46_v56, %v43_v55  ;;  %v62_v63 = vld [vmem:[%s8424_s1 + $0x168] sm:$0xff]  ;;  %v49_v0 = vld [vmem:[%s8424_s1 + $0x100] sm:$0xff] }
   0xf   :  { %4986 = vmatprep.subr.bf16.mxu1 %v6007_v3  ;;  %v59_v60 = vld [vmem:[%s8424_s1 + $0x150] sm:$0xff]  ;;  %v6215_v62 = vpack.c.bf16 %v63_v58, %v60_v57  ;;  %v52_v1 = vld [vmem:[%s8424_s1 + $0x118] sm:$0xff]  ;;  %v3623_v2 = vld [vmem:[%s8424_s1 + $0x188] sm:$0xff] }
  0x10   :  { %v3626_v6 = vld [vmem:[%s8424_s1 + $0x1a0] sm:$0xff]  ;;  %v6234_v7 = vpack.c.bf16 %v62_v63, %v59_v60  ;;  %v6240_v11 = vpack.c.bf16 %v52_v1, %v49_v0  ;;  %v3625_v13 = vld [vmem:[%s8424_s1 + $0x198] sm:$0xff]  ;;  %v55_v14 = vld [vmem:[%s8424_s1 + $0x130] sm:$0xff] }
  0x11   :  { %4963 = vmatpush1.bf16.msra.mxu0 %v6122_v32  ;;  %v3622_v8 = vld [vmem:[%s8424_s1 + $0x180] sm:$0xff]  ;;  %v6243_v12 = vpack.c.bf16 %v3626_v6, %v3623_v2  ;;  %v58_v17 = vld [vmem:[%s8424_s1 + $0x148] sm:$0xff]  ;;  %v3629_v18 = vld [vmem:[%s8424_s1 + $0x1b8] sm:$0xff] }
  0x12   :  { %4965 = vmatprep.subr.bf16.mxu0 %v6131_v35  ;;  %4988 = vmatpush3.bf16.msra.mxu1 %v6156_v43  ;;  %v3632_v19 = vld [vmem:[%s8424_s1 + $0x1d0] sm:$0xff]  ;;  %v6262_v20 = vpack.c.bf16 %v3625_v13, %v3622_v8  ;;  %v6268_v24 = vpack.c.bf16 %v58_v17, %v55_v14  ;;  %v3631_v26 = vld [vmem:[%s8424_s1 + $0x1c8] sm:$0xff]  ;;  %v61_v27 = vld [vmem:[%s8424_s1 + $0x160] sm:$0xff] }
  0x13   :  { %4989 = vmatprep.subr.bf16.mxu1 %v6007_v3  ;;  %v3628_v22 = vld [vmem:[%s8424_s1 + $0x1b0] sm:$0xff]  ;;  %v6271_v25 = vpack.c.bf16 %v3632_v19, %v3629_v18  ;;  %v64_v28 = vld [vmem:[%s8424_s1 + $0x178] sm:$0xff]  ;;  %v3635_v30 = vld [vmem:[%s8424_s1 + $0x1e8] sm:$0xff] }
  0x14   :  { %v3638_v31 = vld [vmem:[%s8424_s1 + $0x200] sm:$0xff]  ;;  %v6291_v33 = vpack.c.bf16 %v3631_v26, %v3628_v22  ;;  %v6297_v37 = vpack.c.bf16 %v64_v28, %v61_v27  ;;  %v3637_v39 = vld [vmem:[%s8424_s1 + $0x1f8] sm:$0xff]  ;;  %v3624_v40 = vld [vmem:[%s8424_s1 + $0x190] sm:$0xff] }
  0x15   :  { %4967 = vmatpush1.bf16.msra.mxu0 %v6150_v41  ;;  %v3634_v36 = vld [vmem:[%s8424_s1 + $0x1e0] sm:$0xff]  ;;  %v6300_v38 = vpack.c.bf16 %v3638_v31, %v3635_v30  ;;  %v3627_v42 = vld [vmem:[%s8424_s1 + $0x1a8] sm:$0xff]  ;;  %v3641_v45 = vld [vmem:[%s8424_s1 + $0x218] sm:$0xff] }
  0x16   :  { %4969 = vmatprep.subr.bf16.mxu0 %v6159_v44  ;;  %4991 = vmatpush3.bf16.msra.mxu1 %v6184_v52  ;;  %v3644_v46 = vld [vmem:[%s8424_s1 + $0x230] sm:$0xff]  ;;  %v6320_v47 = vpack.c.bf16 %v3637_v39, %v3634_v36  ;;  %v6326_v49 = vpack.c.bf16 %v3627_v42, %v3624_v40  ;;  %v3643_v54 = vld [vmem:[%s8424_s1 + $0x228] sm:$0xff]  ;;  %v3630_v55 = vld [vmem:[%s8424_s1 + $0x1c0] sm:$0xff] }
  0x17   :  { %4992 = vmatprep.subr.bf16.mxu1 %v6007_v3  ;;  %v3640_v48 = vld [vmem:[%s8424_s1 + $0x210] sm:$0xff]  ;;  %v6329_v51 = vpack.c.bf16 %v3644_v46, %v3641_v45  ;;  %v3633_v56 = vld [vmem:[%s8424_s1 + $0x1d8] sm:$0xff]  ;;  %v3647_v57 = vld [vmem:[%s8424_s1 + $0x248] sm:$0xff] }
  0x18   :  { %v3650_v58 = vld [vmem:[%s8424_s1 + $0x260] sm:$0xff]  ;;  %v6349_v60 = vpack.c.bf16 %v3643_v54, %v3640_v48  ;;  %v6355_v0 = vpack.c.bf16 %v3633_v56, %v3630_v55  ;;  %v3649_v2 = vld [vmem:[%s8424_s1 + $0x258] sm:$0xff]  ;;  %v3636_v6 = vld [vmem:[%s8424_s1 + $0x1f0] sm:$0xff] }
  0x19   :  { %4971 = vmatpush1.bf16.msra.mxu0 %v6178_v50  ;;  %v3646_v63 = vld [vmem:[%s8424_s1 + $0x240] sm:$0xff]  ;;  %v6358_v1 = vpack.c.bf16 %v3650_v58, %v3647_v57  ;;  %v3639_v8 = vld [vmem:[%s8424_s1 + $0x208] sm:$0xff]  ;;  %v3653_v13 = vld [vmem:[%s8424_s1 + $0x278] sm:$0xff] }
  0x1a   :  { %4973 = vmatprep.subr.bf16.mxu0 %v6187_v53  ;;  %4994 = vmatpush3.bf16.msra.mxu1 %v6212_v61  ;;  %v3656_v14 = vld [vmem:[%s8424_s1 + $0x290] sm:$0xff]  ;;  %v6379_v17 = vpack.c.bf16 %v3649_v2, %v3646_v63  ;;  %v6385_v19 = vpack.c.bf16 %v3639_v8, %v3636_v6  ;;  %v3655_v26 = vld [vmem:[%s8424_s1 + $0x288] sm:$0xff]  ;;  %v3642_v27 = vld [vmem:[%s8424_s1 + $0x220] sm:$0xff] }
  0x1b   :  { %4995 = vmatprep.subr.bf16.mxu1 %v6007_v3  ;;  %v3652_v18 = vld [vmem:[%s8424_s1 + $0x270] sm:$0xff]  ;;  %v6388_v22 = vpack.c.bf16 %v3656_v14, %v3653_v13  ;;  %v3645_v28 = vld [vmem:[%s8424_s1 + $0x238] sm:$0xff]  ;;  %v3659_v30 = vld [vmem:[%s8424_s1 + $0x2a8] sm:$0xff] }
  0x1c   :  { %v3662_v31 = vld [vmem:[%s8424_s1 + $0x2c0] sm:$0xff]  ;;  %v6407_v36 = vpack.c.bf16 %v3655_v26, %v3652_v18  ;;  %v6413_v40 = vpack.c.bf16 %v3645_v28, %v3642_v27  ;;  %v3661_v45 = vld [vmem:[%s8424_s1 + $0x2b8] sm:$0xff]  ;;  %v3648_v46 = vld [vmem:[%s8424_s1 + $0x250] sm:$0xff] }
  0x1d   :  { %4975 = vmatpush1.bf16.msra.mxu0 %v6206_v59  ;;  %v3658_v39 = vld [vmem:[%s8424_s1 + $0x2a0] sm:$0xff]  ;;  %v6416_v42 = vpack.c.bf16 %v3662_v31, %v3659_v30  ;;  %v3651_v48 = vld [vmem:[%s8424_s1 + $0x268] sm:$0xff]  ;;  %v3665_v54 = vld [vmem:[%s8424_s1 + $0x2d8] sm:$0xff] }
  0x1e   :  { %4977 = vmatprep.subr.bf16.mxu0 %v6215_v62  ;;  %4997 = vmatpush3.bf16.msra.mxu1 %v6240_v11  ;;  %v3668_v55 = vld [vmem:[%s8424_s1 + $0x2f0] sm:$0xff]  ;;  %v6435_v56 = vpack.c.bf16 %v3661_v45, %v3658_v39  ;;  %v6441_v58 = vpack.c.bf16 %v3651_v48, %v3648_v46  ;;  %v3667_v2 = vld [vmem:[%s8424_s1 + $0x2e8] sm:$0xff]  ;;  %v3654_v6 = vld [vmem:[%s8424_s1 + $0x280] sm:$0xff] }
  0x1f   :  { %4998 = vmatprep.subr.bf16.mxu1 %v6007_v3  ;;  %v3664_v57 = vld [vmem:[%s8424_s1 + $0x2d0] sm:$0xff]  ;;  %v6444_v63 = vpack.c.bf16 %v3668_v55, %v3665_v54  ;;  %v3657_v8 = vld [vmem:[%s8424_s1 + $0x298] sm:$0xff]  ;;  %v3663_v26 = vld [vmem:[%s8424_s1 + $0x2c8] sm:$0xff] }
  0x20   :  { %v6457_v13 = vpack.c.bf16 %v3667_v2, %v3664_v57  ;;  %v6460_v14 = vpack.c.bf16 %v3657_v8, %v3654_v6  ;;  %v3660_v18 = vld [vmem:[%s8424_s1 + $0x2b0] sm:$0xff]  ;;  %v3666_v28 = vld [vmem:[%s8424_s1 + $0x2e0] sm:$0xff]  ;;  %v3669_v30 = vld [vmem:[%s8424_s1 + $0x2f8] sm:$0xff] }
  0x21   :  { %4979 = vmatpush1.bf16.msra.mxu0 %v6234_v7  ;;  %v6472_v27 = vpack.c.bf16 %v3663_v26, %v3660_v18  ;;  %v6484_v31 = vpack.c.bf16 %v3669_v30, %v3666_v28  ;;  %v16_v39 = vld [vmem:[%s8425_s0 + $0x10] sm:$0xff]  ;;  %v3619_v46 = vld [vmem:[%s8425_s0 + $0x168] sm:$0xff] }
  0x22   :  { %5005 = vmatprep.subr.bf16.mxu0 %v6243_v12  ;;  %5000 = vmatpush3.bf16.msra.mxu1 %v6268_v24  ;;  %v3620_v57 = vld [vmem:[%s8425_s0 + $0x170] sm:$0xff] }
  0x23   :  { %5001 = vmatprep.subr.bf16.mxu1 %v6007_v3 }
  0x24   :  { %131 = vmatmul.mubr.f32.vlgmr.msra.gmra.mrb[0].mxu0 %v6008_v4 }
  0x25   :  { %5007 = vmatpush1.bf16.msra.mxu0 %v6262_v20  ;;  %355 = vmatprep.mubr.f32.mxu0 %v6008_v4 }
  0x26   :  { %5009 = vmatprep.subr.bf16.mxu0 %v6271_v25  ;;  %5003 = vmatpush3.bf16.msra.mxu1 %v6297_v37 }
  0x27   :  { %5036 = vmatprep.subr.bf16.mxu1 %v6007_v3 }
  0x29   :  { %5011 = vmatpush1.bf16.msra.mxu0 %v6291_v33  ;;  %4421 = vmatmul.mubr.f32.vlgmr.msra.gmra.mrb[0].mxu1 %v6008_v4 }
  0x2a   :  { %5013 = vmatprep.subr.bf16.mxu0 %v6300_v38  ;;  %5038 = vmatpush3.bf16.msra.mxu1 %v6326_v49 }
  0x2b   :  { %5039 = vmatprep.subr.bf16.mxu1 %v6007_v3  ;;  %4455 = vmatprep.mubr.msk.f32.mxu1 %vm6009_vm0, %v6008_v4 }
  0x2d   :  { %5015 = vmatpush1.bf16.msra.mxu0 %v6320_v47 }
  0x2e   :  { %5017 = vmatprep.subr.bf16.mxu0 %v6329_v51  ;;  %5041 = vmatpush3.bf16.msra.mxu1 %v6355_v0 }
  0x2f   :  { %5042 = vmatprep.subr.bf16.mxu1 %v6007_v3 }
  0x31   :  { %5019 = vmatpush1.bf16.msra.mxu0 %v6349_v60 }
  0x32   :  { %5021 = vmatprep.subr.bf16.mxu0 %v6358_v1  ;;  %5044 = vmatpush3.bf16.msra.mxu1 %v6385_v19 }
  0x33   :  { %5045 = vmatprep.subr.bf16.mxu1 %v6007_v3 }
  0x35   :  { %5023 = vmatpush1.bf16.msra.mxu0 %v6379_v17 }
  0x36   :  { %5025 = vmatprep.subr.bf16.mxu0 %v6388_v22  ;;  %5047 = vmatpush3.bf16.msra.mxu1 %v6413_v40 }
  0x37   :  { %5048 = vmatprep.subr.bf16.mxu1 %v6007_v3 }
  0x39   :  { %5027 = vmatpush1.bf16.msra.mxu0 %v6407_v36 }
  0x3a   :  { %5029 = vmatprep.subr.bf16.mxu0 %v6416_v42  ;;  %5050 = vmatpush3.bf16.msra.mxu1 %v6441_v58 }
  0x3b   :  { %5051 = vmatprep.subr.bf16.mxu1 %v6007_v3 }
  0x3d   :  { %5031 = vmatpush1.bf16.msra.mxu0 %v6435_v56 }
  0x3e   :  { %5033 = vmatprep.subr.bf16.mxu0 %v6444_v63  ;;  %5053 = vmatpush3.bf16.msra.mxu1 %v6460_v14 }
  0x3f   :  { %5054 = vmatprep.subr.bf16.mxu1 %v6007_v3 }
  0x41   :  { %5035 = vmatpush1.bf16.msra.mxu0 %v6457_v13 }
  0x42   :  { %5061 = vmatprep.subr.bf16.mxu0 %v6041_v5  ;;  %5056 = vmatpush3.bf16.msra.mxu1 %v6472_v27  ;;  %v14_v5 = vld [vmem:[%s8425_s0] sm:$0xff] }
  0x43   :  { %5057 = vmatprep.subr.bf16.mxu1 %v6007_v3 }
  0x44   :  { %356 = vmatmul.mubr.f32.vlgmr.msra.gmra.mrb[2].mxu0 %v6008_v4 }
  0x45   :  { %5063 = vmatpush1.bf16.msra.mxu0 %v6054_v9  ;;  %581 = vmatprep.mubr.f32.mxu0 %v6008_v4 }
  0x46   :  { %5065 = vmatprep.subr.bf16.mxu0 %v6056_v10  ;;  %5059 = vmatpush3.bf16.msra.mxu1 %v6484_v31 }
  0x47   :  { %5092 = vmatprep.subr.bf16.mxu1 %v6007_v3 }
  0x49   :  { %5067 = vmatpush1.bf16.msra.mxu0 %v6072_v15  ;;  %4456 = vmatmul.mubr.f32.vlgmr.msra.gmra.mrb[2].mxu1 %v6008_v4  ;;  %v15_v15 = vld [vmem:[%s8425_s0 + $0x8] sm:$0xff] }
  0x4a   :  { %5069 = vmatprep.subr.bf16.mxu0 %v6075_v16  ;;  %5094 = vmatpush3.bf16.msra.mxu1 %v6113_v29 }
  0x4b   :  { %5095 = vmatprep.subr.bf16.mxu1 %v6007_v3  ;;  %4490 = vmatprep.mubr.msk.f32.mxu1 %vm6009_vm0, %v6008_v4 }
  0x4d   :  { %5071 = vmatpush1.bf16.msra.mxu0 %v6090_v21 }
  0x4e   :  { %5073 = vmatprep.subr.bf16.mxu0 %v6096_v23  ;;  %5097 = vmatpush3.bf16.msra.mxu1 %v6128_v34 }
  0x4f   :  { %5098 = vmatprep.subr.bf16.mxu1 %v6007_v3 }
  0x51   :  { %5075 = vmatpush1.bf16.msra.mxu0 %v6122_v32 }
  0x52   :  { %5077 = vmatprep.subr.bf16.mxu0 %v6131_v35  ;;  %5100 = vmatpush3.bf16.msra.mxu1 %v6156_v43 }
  0x53   :  { %5101 = vmatprep.subr.bf16.mxu1 %v6007_v3 }
  0x55   :  { %5079 = vmatpush1.bf16.msra.mxu0 %v6150_v41 }
  0x56   :  { %5081 = vmatprep.subr.bf16.mxu0 %v6159_v44  ;;  %5103 = vmatpush3.bf16.msra.mxu1 %v6184_v52 }
  0x57   :  { %5104 = vmatprep.subr.bf16.mxu1 %v6007_v3 }
  0x59   :  { %5083 = vmatpush1.bf16.msra.mxu0 %v6178_v50 }
  0x5a   :  { %5085 = vmatprep.subr.bf16.mxu0 %v6187_v53  ;;  %5106 = vmatpush3.bf16.msra.mxu1 %v6212_v61 }
  0x5b   :  { %5107 = vmatprep.subr.bf16.mxu1 %v6007_v3 }
  0x5d   :  { %5087 = vmatpush1.bf16.msra.mxu0 %v6206_v59  ;;  %v6534_v59 = vld [vmem:[%s8426_s2] ss:$0 sm:$0xff] }
  0x5e   :  { %5089 = vmatprep.subr.bf16.mxu0 %v6215_v62  ;;  %5109 = vmatpush3.bf16.msra.mxu1 %v6240_v11 }
  0x5f   :  { %5110 = vmatprep.subr.bf16.mxu1 %v6007_v3 }
  0x61   :  { %5091 = vmatpush1.bf16.msra.mxu0 %v6234_v7 }
  0x62   :  { %5117 = vmatprep.subr.bf16.mxu0 %v6243_v12  ;;  %5112 = vmatpush3.bf16.msra.mxu1 %v6268_v24 }
  0x63   :  { %5113 = vmatprep.subr.bf16.mxu1 %v6007_v3 }
  0x66   :  { %5115 = vmatpush3.bf16.msra.mxu1 %v6297_v37 }
  0x67   :  { %5148 = vmatprep.subr.bf16.mxu1 %v6007_v3 }
  0xf7   :  { %v132_v9 = vpop.f32.mrb[0].mxu0 }
  0xf8   :  { %v207_v10 = vadd.f32 %v132_v9, %v14_v5  ;;  %v134_v16 = vpop.f32.mrb[1].mxu0 }
  0xf9   :  { %v214_v23 = vadd.f32 %v134_v16, %v15_v15 }
  0xfa   :  { %v3616_v21 = vmul.f32 -1.442695, %v207_v10 }
  0xfb   :  { %v3617_v32 = vmul.f32 -1.442695, %v214_v23 }
  0xfc   :  { %5847 = vpow2.f32 %v3616_v21  ;;  %v203_v35 = vpop.f32.mrb[0].mxu1 }
  0xfd   :  { %v4422_v41 = vpop.f32.mrb[1].mxu1  ;;  %5849 = vpow2.f32 %v3617_v32  ;;  %v227_v7 = vadd.f32 %v6534_v59, %v203_v35 }
 0x106   :  { %v5848_v44 = vpop.eup %5847 }
 0x107   :  { %v211_v50 = vadd.f32 1.0, %v5848_v44  ;;  %v5850_v53 = vpop.eup %5849  ;;  %v928_v44 = vld [vmem:[%s8424_s1 + $0x60] sm:$0xff] }
 0x108   :  { %v218_v62 = vadd.f32 1.0, %v5850_v53 }
 0x109   :  { %5851 = vrcp.f32 %v211_v50  ;;  %v931_v50 = vld [vmem:[%s8424_s1 + $0x78] sm:$0xff] }
 0x10a   :  { %5853 = vrcp.f32 %v218_v62  ;;  %v6674_v53 = vpack.c.bf16 %v931_v50, %v928_v44  ;;  %v935_v62 = vld [vmem:[%s8424_s1 + $0x98] sm:$0xff] }
 0x113   :  { %v5852_v12 = vpop.eup %5851 }
 0x114   :  { %v228_v45 = vmul.f32 %v5852_v12, %v227_v7  ;;  %v5854_v18 = vpop.eup %5853  ;;  %v938_v7 = vld [vmem:[%s8424_s1 + $0xb0] sm:$0xff] }
 0x115   :  { %v231_v5 = vsub.f32 1.0, %v5854_v18  ;;  %v233_v15 = vmul.f32 0.0, %v5854_v18  ;;  %v6684_v12 = vpack.c.bf16 %v938_v7, %v935_v62  ;;  %v950_v18 = vld [vmem:[%s8424_s1 + $0x110] sm:$0xff] }
 0x116   :  { %v229_v48 = vadd.f32 %v228_v45, %v16_v39  ;;  %v934_v39 = vld [vmem:[%s8424_s1 + $0x90] sm:$0xff]  ;;  %v937_v45 = vld [vmem:[%s8424_s1 + $0xa8] sm:$0xff] }
 0x117   :  { %v357_v54 = vpop.f32.mrb[2].mxu0 }
 0x118   :  { %5855 = vtanh.f32 %v229_v48  ;;  %v432_v55 = vadd.f32 %v3619_v46, %v357_v54  ;;  %v359_v2 = vpop.f32.mrb[3].mxu0  ;;  %v6692_v46 = vpack.c.bf16 %v937_v45, %v934_v39  ;;  %v941_v48 = vld [vmem:[%s8424_s1 + $0xc8] sm:$0xff]  ;;  %v944_v54 = vld [vmem:[%s8424_s1 + $0xe0] sm:$0xff] }
 0x119   :  { %v439_v8 = vadd.f32 %v3620_v57, %v359_v2  ;;  %v940_v57 = vld [vmem:[%s8424_s1 + $0xc0] sm:$0xff]  ;;  %v943_v2 = vld [vmem:[%s8424_s1 + $0xd8] sm:$0xff]  ;;  %v3677_v39 = vld [vmem:[%s8425_s0 + $0x28] sm:$0xff] }
 0x11a   :  { %v3671_v6 = vmul.f32 -1.442695, %v432_v55  ;;  %v6702_v55 = vpack.c.bf16 %v944_v54, %v941_v48  ;;  %v3681_v48 = vld [vmem:[%s8425_s0 + $0x150] sm:$0xff] }
 0x11b   :  { %v3672_v26 = vmul.f32 -1.442695, %v439_v8  ;;  %v947_v8 = vld [vmem:[%s8424_s1 + $0xf8] sm:$0xff] }
 0x11c   :  { %5857 = vpow2.f32 %v3671_v6  ;;  %v428_v28 = vpop.f32.mrb[2].mxu1  ;;  %v6710_v6 = vpack.c.bf16 %v943_v2, %v940_v57 }
 0x11d   :  { %v4457_v30 = vpop.f32.mrb[3].mxu1  ;;  %5859 = vpow2.f32 %v3672_v26  ;;  %v6720_v26 = vpack.c.bf16 %v950_v18, %v947_v8  ;;  %v3682_v18 = vld [vmem:[%s8425_s0 + $0x158] sm:$0xff] }
 0x11e   :  { %v949_v30 = vld [vmem:[%s8424_s1 + $0x108] sm:$0xff] }
 0x122   :  { %v5856_v9 = vpop.eup %5855 }
 0x123   :  { %v232_v10 = vmul.f32 %v5856_v9, %v231_v5  ;;  %v953_v9 = vld [vmem:[%s8424_s1 + $0x128] sm:$0xff] }
 0x125   :  { %v6546_v16 = vadd.f32 %v233_v15, %v232_v10  ;;  %v956_v10 = vld [vmem:[%s8424_s1 + $0x140] sm:$0xff] }
 0x126   :  { %v5858_v21 = vpop.eup %5857  ;;  %v6738_v15 = vpack.c.bf16 %v956_v10, %v953_v9 }
 0x127   :  { %v436_v23 = vadd.f32 1.0, %v5858_v21  ;;  %460 = vst [vmem:[%s8427_s3] sm:$0xff] %v6546_v16  ;;  %582 = vmatmul.mubr.f32.vlgmr.msra.gmra.mrb[4].mxu0 %v6546_v16  ;;  %4491 = vmatmul.mubr.f32.vlgmr.msra.gmra.mrb[4].mxu1 %v6546_v16  ;;  %v5860_v32 = vpop.eup %5859  ;;  %v952_v21 = vld [vmem:[%s8424_s1 + $0x120] sm:$0xff] }
 0x128   :  { %5119 = vmatpush1.bf16.msra.mxu0 %v6262_v20  ;;  %5150 = vmatpush3.bf16.msra.mxu1 %v6326_v49  ;;  %v6568_v20 = vld [vmem:[%s8426_s2 + $0x1] ss:$0 sm:$0xff] }
 0x129   :  { %5861 = vrcp.f32 %v436_v23  ;;  %5121 = vmatprep.subr.bf16.mxu0 %v6271_v25  ;;  %5151 = vmatprep.subr.bf16.mxu1 %v6007_v3  ;;  %v443_v25 = vadd.f32 1.0, %v5860_v32  ;;  %v452_v35 = vadd.f32 %v6568_v20, %v428_v28  ;;  %v946_v28 = vld [vmem:[%s8424_s1 + $0xf0] sm:$0xff]  ;;  %v955_v23 = vld [vmem:[%s8424_s1 + $0x138] sm:$0xff] }
 0x12a   :  { %803 = vmatprep.mubr.f32.mxu0 %v6008_v4  ;;  %4525 = vmatprep.mubr.msk.f32.mxu1 %vm6009_vm0, %v6008_v4  ;;  %v6728_v5 = vpack.c.bf16 %v949_v30, %v946_v28  ;;  %v6746_v32 = vpack.c.bf16 %v955_v23, %v952_v21 }
 0x12b   :  { %5863 = vrcp.f32 %v443_v25  ;;  %v959_v25 = vld [vmem:[%s8424_s1 + $0x158] sm:$0xff] }
 0x12c   :  { %5123 = vmatpush1.bf16.msra.mxu0 %v6291_v33  ;;  %5153 = vmatpush3.bf16.msra.mxu1 %v6355_v0 }
 0x12d   :  { %5125 = vmatprep.subr.bf16.mxu0 %v6300_v38  ;;  %5154 = vmatprep.subr.bf16.mxu1 %v6007_v3  ;;  %v3621_v38 = vld [vmem:[%s8425_s0 + $0x178] sm:$0xff] }
 0x130   :  { %5127 = vmatpush1.bf16.msra.mxu0 %v6320_v47  ;;  %5156 = vmatpush3.bf16.msra.mxu1 %v6385_v19 }
 0x131   :  { %5129 = vmatprep.subr.bf16.mxu0 %v6329_v51  ;;  %5157 = vmatprep.subr.bf16.mxu1 %v6007_v3 }
 0x133   :  { %v5862_v33 = vpop.eup %5861 }
 0x134   :  { %v453_v41 = vmul.f32 %v5862_v33, %v452_v35  ;;  %5131 = vmatpush1.bf16.msra.mxu0 %v6349_v60  ;;  %5159 = vmatpush3.bf16.msra.mxu1 %v6413_v40  ;;  %v962_v35 = vld [vmem:[%s8424_s1 + $0x170] sm:$0xff] }
 0x135   :  { %5133 = vmatprep.subr.bf16.mxu0 %v6358_v1  ;;  %5160 = vmatprep.subr.bf16.mxu1 %v6007_v3  ;;  %v5864_v51 = vpop.eup %5863  ;;  %v6756_v33 = vpack.c.bf16 %v962_v35, %v959_v25  ;;  %v3747_v35 = vld [vmem:[%s8424_s1 + $0x180] sm:$0xff] }
 0x136   :  { %v454_v47 = vadd.f32 %v3621_v38, %v453_v41  ;;  %v456_v60 = vsub.f32 1.0, %v5864_v51  ;;  %v958_v38 = vld [vmem:[%s8424_s1 + $0x150] sm:$0xff]  ;;  %v961_v41 = vld [vmem:[%s8424_s1 + $0x168] sm:$0xff] }
 0x138   :  { %5865 = vtanh.f32 %v454_v47  ;;  %5135 = vmatpush1.bf16.msra.mxu0 %v6379_v17  ;;  %5162 = vmatpush3.bf16.msra.mxu1 %v6441_v58  ;;  %v6764_v47 = vpack.c.bf16 %v961_v41, %v958_v38  ;;  %v3750_v38 = vld [vmem:[%s8424_s1 + $0x198] sm:$0xff] }
 0x139   :  { %5137 = vmatprep.subr.bf16.mxu0 %v6388_v22  ;;  %5163 = vmatprep.subr.bf16.mxu1 %v6007_v3  ;;  %v458_v22 = vmul.f32 0.0, %v5864_v51  ;;  %v3748_v51 = vld [vmem:[%s8424_s1 + $0x188] sm:$0xff] }
 0x13c   :  { %5139 = vmatpush1.bf16.msra.mxu0 %v6407_v36  ;;  %5165 = vmatpush3.bf16.msra.mxu1 %v6460_v14  ;;  %v929_v14 = vld [vmem:[%s8424_s1 + $0x68] sm:$0xff] }
 0x13d   :  { %5141 = vmatprep.subr.bf16.mxu0 %v6416_v42  ;;  %5166 = vmatprep.subr.bf16.mxu1 %v6007_v3 }
 0x140   :  { %5143 = vmatpush1.bf16.msra.mxu0 %v6435_v56  ;;  %5168 = vmatpush3.bf16.msra.mxu1 %v6472_v27  ;;  %v922_v56 = vld [vmem:[%s8424_s1 + $0x30] sm:$0xff]  ;;  %v932_v27 = vld [vmem:[%s8424_s1 + $0x80] sm:$0xff] }
 0x141   :  { %5145 = vmatprep.subr.bf16.mxu0 %v6444_v63  ;;  %5169 = vmatprep.subr.bf16.mxu1 %v6007_v3  ;;  %v925_v63 = vld [vmem:[%s8424_s1 + $0x48] sm:$0xff] }
 0x142   :  { %v5866_v1 = vpop.eup %5865 }
 0x143   :  { %v457_v17 = vmul.f32 %v5866_v1, %v456_v60  ;;  %v3751_v60 = vld [vmem:[%s8424_s1 + $0x1a0] sm:$0xff] }
 0x144   :  { %5147 = vmatpush1.bf16.msra.mxu0 %v6457_v13  ;;  %5171 = vmatpush3.bf16.msra.mxu1 %v6484_v31  ;;  %v6656_v13 = vpack.c.bf16 %v925_v63, %v922_v56  ;;  %v6666_v31 = vpack.c.bf16 %v932_v27, %v929_v14  ;;  %v6774_v1 = vpack.c.bf16 %v3751_v60, %v3748_v51  ;;  %v3754_v51 = vld [vmem:[%s8424_s1 + $0x1b8] sm:$0xff]  ;;  %v3757_v60 = vld [vmem:[%s8424_s1 + $0x1d0] sm:$0xff] }
 0x145   :  { %v6596_v36 = vadd.f32 %v458_v22, %v457_v17  ;;  %5204 = vmatprep.subr.bf16.mxu1 %v6007_v3  ;;  %v3675_v17 = vld [vmem:[%s8425_s0 + $0x18] sm:$0xff] }
 0x147   :  { %3674 = vst [vmem:[%s8427_s3 + $0x78] sm:$0xff] %v6596_v36  ;;  %804 = vmatmul.mubr.f32.vlgmr.msra.gmra.mrb[6].mxu0 %v6596_v36  ;;  %4526 = vmatmul.mubr.f32.vlgmr.msra.gmra.mrb[6].mxu1 %v6596_v36 }
 0x148   :  { %5206 = vmatpush3.bf16.msra.mxu1 %v6113_v29  ;;  %1029 = vmatprep.mubr.f32.mxu0 %v6008_v4  ;;  %v917_v29 = vld [vmem:[%s8424_s1 + $0x8] sm:$0xff] }
 0x149   :  { %5207 = vmatprep.subr.bf16.mxu1 %v6007_v3  ;;  %4560 = vmatprep.mubr.msk.f32.mxu1 %vm6009_vm0, %v6008_v4 }
 0x14c   :  { %5209 = vmatpush3.bf16.msra.mxu1 %v6128_v34  ;;  %v920_v34 = vld [vmem:[%s8424_s1 + $0x20] sm:$0xff] }
 0x14d   :  { %5210 = vmatprep.subr.bf16.mxu1 %v6007_v3 }
 0x150   :  { %5212 = vmatpush3.bf16.msra.mxu1 %v6156_v43  ;;  %v6630_v43 = vpack.c.bf16 %v920_v34, %v917_v29 }
 0x151   :  { %5213 = vmatprep.subr.bf16.mxu1 %v6007_v3 }
 0x152   :  { %5173 = vmatprep.subr.bf16.mxu0 %v6630_v43 }
 0x154   :  { %5215 = vmatpush3.bf16.msra.mxu1 %v6184_v52  ;;  %v916_v52 = vld [vmem:[%s8424_s1] sm:$0xff] }
 0x155   :  { %5216 = vmatprep.subr.bf16.mxu1 %v6007_v3 }
 0x158   :  { %5218 = vmatpush3.bf16.msra.mxu1 %v6212_v61  ;;  %v919_v61 = vld [vmem:[%s8424_s1 + $0x18] sm:$0xff] }
 0x159   :  { %5219 = vmatprep.subr.bf16.mxu1 %v6007_v3 }
 0x15c   :  { %5221 = vmatpush3.bf16.msra.mxu1 %v6240_v11  ;;  %v6638_v11 = vpack.c.bf16 %v919_v61, %v916_v52  ;;  %v3676_v52 = vld [vmem:[%s8425_s0 + $0x20] sm:$0xff] }
 0x15d   :  { %5222 = vmatprep.subr.bf16.mxu1 %v6007_v3 }
 0x15e   :  { %5175 = vmatpush1.bf16.msra.mxu0 %v6638_v11 }
 0x160   :  { %5224 = vmatpush3.bf16.msra.mxu1 %v6268_v24  ;;  %v923_v24 = vld [vmem:[%s8424_s1 + $0x38] sm:$0xff] }
 0x161   :  { %5225 = vmatprep.subr.bf16.mxu1 %v6007_v3 }
 0x164   :  { %5227 = vmatpush3.bf16.msra.mxu1 %v6297_v37  ;;  %v926_v37 = vld [vmem:[%s8424_s1 + $0x50] sm:$0xff] }
 0x165   :  { %5260 = vmatprep.subr.bf16.mxu1 %v6007_v3  ;;  %v6648_v42 = vpack.c.bf16 %v926_v37, %v923_v24 }
 0x167   :  { %5177 = vmatprep.subr.bf16.mxu0 %v6648_v42 }
 0x168   :  { %5179 = vmatpush1.bf16.msra.mxu0 %v6656_v13 }
 0x169   :  { %5181 = vmatprep.subr.bf16.mxu0 %v6666_v31 }
 0x16c   :  { %5183 = vmatpush1.bf16.msra.mxu0 %v6674_v53 }
 0x16d   :  { %5185 = vmatprep.subr.bf16.mxu0 %v6684_v12 }
 0x170   :  { %5187 = vmatpush1.bf16.msra.mxu0 %v6692_v46 }
 0x171   :  { %5189 = vmatprep.subr.bf16.mxu0 %v6702_v55 }
 0x174   :  { %5191 = vmatpush1.bf16.msra.mxu0 %v6710_v6 }
 0x175   :  { %5193 = vmatprep.subr.bf16.mxu0 %v6720_v26 }
 0x178   :  { %5195 = vmatpush1.bf16.msra.mxu0 %v6728_v5 }
 0x179   :  { %5197 = vmatprep.subr.bf16.mxu0 %v6738_v15 }
 0x17c   :  { %5199 = vmatpush1.bf16.msra.mxu0 %v6746_v32 }
 0x17d   :  { %5201 = vmatprep.subr.bf16.mxu0 %v6756_v33 }
 0x180   :  { %5203 = vmatpush1.bf16.msra.mxu0 %v6764_v47 }
 0x181   :  { %5229 = vmatprep.subr.bf16.mxu0 %v6774_v1 }
 0x1fa   :  { %v583_v22 = vpop.f32.mrb[4].mxu0  ;;  %v654_v29 = vpop.f32.mrb[4].mxu1 }
 0x1fb   :  { %v658_v34 = vadd.f32 %v3675_v17, %v583_v22  ;;  %v585_v61 = vpop.f32.mrb[5].mxu0  ;;  %v4492_v24 = vpop.f32.mrb[5].mxu1  ;;  %v678_v62 = vadd.f32 %v6534_v59, %v654_v29  ;;  %v6808_v29 = vpack.c.bf16 %v3750_v38, %v3747_v35  ;;  %v3777_v38 = vld [vmem:[%s8424_s1 + $0x270] sm:$0xff] }
 0x1fc   :  { %v665_v56 = vadd.f32 %v3676_v52, %v585_v61  ;;  %v6812_v52 = vpack.c.bf16 %v3757_v60, %v3754_v51  ;;  %v3753_v61 = vld [vmem:[%s8424_s1 + $0x1b0] sm:$0xff]  ;;  %v3756_v24 = vld [vmem:[%s8424_s1 + $0x1c8] sm:$0xff]  ;;  %v3782_v60 = vld [vmem:[%s8424_s1 + $0x298] sm:$0xff] }
 0x1fd   :  { %v3678_v37 = vmul.f32 -1.442695, %v658_v34  ;;  %v3780_v51 = vld [vmem:[%s8424_s1 + $0x288] sm:$0xff] }
 0x1fe   :  { %v3679_v63 = vmul.f32 -1.442695, %v665_v56  ;;  %v3760_v56 = vld [vmem:[%s8424_s1 + $0x1e8] sm:$0xff] }
 0x1ff   :  { %5867 = vpow2.f32 %v3678_v37 }
 0x200   :  { %5869 = vpow2.f32 %v3679_v63 }
 0x209   :  { %v5868_v14 = vpop.eup %5867 }
 0x20a   :  { %v662_v27 = vadd.f32 1.0, %v5868_v14  ;;  %v5870_v44 = vpop.eup %5869  ;;  %v6834_v14 = vpack.c.bf16 %v3756_v24, %v3753_v61  ;;  %v3787_v61 = vld [vmem:[%s8424_s1 + $0x2c0] sm:$0xff]  ;;  %v6928_v24 = vpack.c.bf16 %v3780_v51, %v3777_v38  ;;  %v1402_v38 = vld [vmem:[%s8424_s1 + $0x130] sm:$0xff]  ;;  %v1405_v51 = vld [vmem:[%s8424_s1 + $0x148] sm:$0xff] }
 0x20b   :  { %v669_v50 = vadd.f32 1.0, %v5870_v44  ;;  %v3759_v44 = vld [vmem:[%s8424_s1 + $0x1e0] sm:$0xff] }
 0x20c   :  { %5871 = vrcp.f32 %v662_v27 }
 0x20d   :  { %5873 = vrcp.f32 %v669_v50  ;;  %v3762_v50 = vld [vmem:[%s8424_s1 + $0x1f8] sm:$0xff] }
 0x216   :  { %v5872_v7 = vpop.eup %5871 }
 0x217   :  { %v679_v45 = vmul.f32 %v5872_v7, %v678_v62  ;;  %v5874_v21 = vpop.eup %5873  ;;  %v3769_v62 = vld [vmem:[%s8424_s1 + $0x230] sm:$0xff]  ;;  %v6857_v7 = vpack.c.bf16 %v3762_v50, %v3759_v44  ;;  %v3788_v44 = vld [vmem:[%s8424_s1 + $0x2c8] sm:$0xff]  ;;  %v3790_v50 = vld [vmem:[%s8424_s1 + $0x2d8] sm:$0xff] }
 0x218   :  { %v682_v25 = vsub.f32 1.0, %v5874_v21  ;;  %v684_v22 = vmul.f32 %v5874_v21, %v6546_v16  ;;  %v3763_v16 = vld [vmem:[%s8424_s1 + $0x200] sm:$0xff]  ;;  %v3781_v21 = vld [vmem:[%s8424_s1 + $0x290] sm:$0xff] }
 0x219   :  { %v680_v54 = vadd.f32 %v3677_v39, %v679_v45  ;;  %v6838_v27 = vpack.c.bf16 %v3763_v16, %v3760_v56  ;;  %v3783_v56 = vld [vmem:[%s8424_s1 + $0x2a0] sm:$0xff] }
 0x21a   :  { %v805_v57 = vpop.f32.mrb[6].mxu0  ;;  %v6790_v2 = vpop.f32.mrb[6].mxu1 }
 0x21b   :  { %5875 = vtanh.f32 %v680_v54  ;;  %v880_v8 = vadd.f32 %v3681_v48, %v805_v57  ;;  %v807_v28 = vpop.f32.mrb[7].mxu0  ;;  %v4527_v30 = vpop.f32.mrb[7].mxu1  ;;  %v3765_v48 = vld [vmem:[%s8424_s1 + $0x210] sm:$0xff]  ;;  %v3768_v54 = vld [vmem:[%s8424_s1 + $0x228] sm:$0xff]  ;;  %v3775_v57 = vld [vmem:[%s8424_s1 + $0x260] sm:$0xff] }
 0x21c   :  { %v887_v10 = vadd.f32 %v3682_v18, %v807_v28  ;;  %v6877_v18 = vpack.c.bf16 %v3768_v54, %v3765_v48  ;;  %v3771_v30 = vld [vmem:[%s8424_s1 + $0x240] sm:$0xff]  ;;  %v3789_v48 = vld [vmem:[%s8424_s1 + $0x2d0] sm:$0xff] }
 0x21d   :  { %v3733_v9 = vmul.f32 -1.442695, %v880_v8 }
 0x21e   :  { %v3734_v23 = vmul.f32 -1.442695, %v887_v10  ;;  %v900_v10 = vadd.f32 %v6568_v20, %v6790_v2 }
 0x21f   :  { %5877 = vpow2.f32 %v3733_v9  ;;  %v3774_v9 = vld [vmem:[%s8424_s1 + $0x258] sm:$0xff] }
 0x220   :  { %5879 = vpow2.f32 %v3734_v23  ;;  %v6902_v2 = vpack.c.bf16 %v3774_v9, %v3771_v30 }
 0x225   :  { %v5876_v41 = vpop.eup %5875 }
 0x226   :  { %v683_v17 = vmul.f32 %v5876_v41, %v682_v25  ;;  %v3683_v25 = vld [vmem:[%s8425_s0 + $0x160] sm:$0xff] }
 0x228   :  { %v6810_v34 = vadd.f32 %v684_v22, %v683_v17  ;;  %v3784_v22 = vld [vmem:[%s8424_s1 + $0x2a8] sm:$0xff] }
 0x229   :  { %v5878_v37 = vpop.eup %5877  ;;  %v6937_v16 = vpack.c.bf16 %v3787_v61, %v3784_v22  ;;  %v3738_v61 = vld [vmem:[%s8425_s0 + $0x30] sm:$0xff] }
 0x22a   :  { %v884_v63 = vadd.f32 1.0, %v5878_v37  ;;  %3736 = vst [vmem:[%s8427_s3 + $0x8] sm:$0xff] %v6810_v34  ;;  %1030 = vmatmul.mubr.f32.vlgmr.msra.gmra.mrb[8].mxu0 %v6810_v34  ;;  %4561 = vmatmul.mubr.f32.vlgmr.msra.gmra.mrb[8].mxu1 %v6810_v34  ;;  %v5880_v39 = vpop.eup %5879 }
 0x22b   :  { %5231 = vmatpush1.bf16.msra.mxu0 %v6808_v29  ;;  %5262 = vmatpush3.bf16.msra.mxu1 %v6326_v49  ;;  %v3766_v49 = vld [vmem:[%s8424_s1 + $0x218] sm:$0xff]  ;;  %v891_v8 = vadd.f32 1.0, %v5880_v39 }
 0x22c   :  { %5881 = vrcp.f32 %v884_v63  ;;  %5233 = vmatprep.subr.bf16.mxu0 %v6812_v52  ;;  %5263 = vmatprep.subr.bf16.mxu1 %v6007_v3  ;;  %v6861_v45 = vpack.c.bf16 %v3769_v62, %v3766_v49  ;;  %v3786_v63 = vld [vmem:[%s8424_s1 + $0x2b8] sm:$0xff]  ;;  %v3793_v49 = vld [vmem:[%s8424_s1 + $0x2f0] sm:$0xff] }
 0x22d   :  { %1251 = vmatprep.mubr.f32.mxu0 %v6008_v4  ;;  %4595 = vmatprep.mubr.msk.f32.mxu1 %vm6009_vm0, %v6008_v4  ;;  %5883 = vrcp.f32 %v891_v8  ;;  %v6956_v62 = vpack.c.bf16 %v3786_v63, %v3783_v56  ;;  %v6965_v54 = vpack.c.bf16 %v3793_v49, %v3790_v50  ;;  %v3794_v8 = vld [vmem:[%s8424_s1 + $0x2f8] sm:$0xff] }
 0x22f   :  { %5235 = vmatpush1.bf16.msra.mxu0 %v6834_v14  ;;  %5265 = vmatpush3.bf16.msra.mxu1 %v6355_v0  ;;  %v3772_v0 = vld [vmem:[%s8424_s1 + $0x248] sm:$0xff] }
 0x230   :  { %5237 = vmatprep.subr.bf16.mxu0 %v6838_v27  ;;  %5266 = vmatprep.subr.bf16.mxu1 %v6007_v3  ;;  %v6881_v28 = vpack.c.bf16 %v3775_v57, %v3772_v0  ;;  %v3792_v0 = vld [vmem:[%s8424_s1 + $0x2e8] sm:$0xff]  ;;  %v3791_v57 = vld [vmem:[%s8424_s1 + $0x2e0] sm:$0xff] }
 0x231   :  { %v6978_v9 = vpack.c.bf16 %v3792_v0, %v3789_v48 }
 0x233   :  { %5239 = vmatpush1.bf16.msra.mxu0 %v6857_v7  ;;  %5268 = vmatpush3.bf16.msra.mxu1 %v6385_v19  ;;  %v3778_v19 = vld [vmem:[%s8424_s1 + $0x278] sm:$0xff] }
 0x234   :  { %5241 = vmatprep.subr.bf16.mxu0 %v6861_v45  ;;  %5269 = vmatprep.subr.bf16.mxu1 %v6007_v3  ;;  %v6909_v41 = vpack.c.bf16 %v3781_v21, %v3778_v19 }
 0x236   :  { %v5882_v23 = vpop.eup %5881 }
 0x237   :  { %v901_v35 = vmul.f32 %v5882_v23, %v900_v10  ;;  %5243 = vmatpush1.bf16.msra.mxu0 %v6877_v18  ;;  %5271 = vmatpush3.bf16.msra.mxu1 %v6413_v40  ;;  %v3779_v40 = vld [vmem:[%s8424_s1 + $0x280] sm:$0xff]  ;;  %v5884_v30 = vpop.eup %5883  ;;  %v6980_v10 = vpack.c.bf16 %v3794_v8, %v3791_v57 }
 0x238   :  { %5245 = vmatprep.subr.bf16.mxu0 %v6881_v28  ;;  %5272 = vmatprep.subr.bf16.mxu1 %v6007_v3  ;;  %v6930_v37 = vpack.c.bf16 %v3782_v60, %v3779_v40  ;;  %v904_v19 = vsub.f32 1.0, %v5884_v30  ;;  %v7082_v40 = vpack.c.bf16 %v1405_v51, %v1402_v38  ;;  %v1408_v60 = vld [vmem:[%s8424_s1 + $0x160] sm:$0xff] }
 0x239   :  { %v902_v17 = vadd.f32 %v3683_v25, %v901_v35  ;;  %v906_v25 = vmul.f32 %v5884_v30, %v6596_v36  ;;  %v1366_v36 = vld [vmem:[%s8424_s1 + $0x10] sm:$0xff] }
 0x23b   :  { %5885 = vtanh.f32 %v902_v17  ;;  %5247 = vmatpush1.bf16.msra.mxu0 %v6902_v2  ;;  %5274 = vmatpush3.bf16.msra.mxu1 %v6441_v58  ;;  %v3785_v58 = vld [vmem:[%s8424_s1 + $0x2b0] sm:$0xff]  ;;  %v1411_v17 = vld [vmem:[%s8424_s1 + $0x178] sm:$0xff] }
 0x23c   :  { %5249 = vmatprep.subr.bf16.mxu0 %v6909_v41  ;;  %5275 = vmatprep.subr.bf16.mxu1 %v6007_v3  ;;  %v6958_v39 = vpack.c.bf16 %v3788_v44, %v3785_v58  ;;  %v7092_v22 = vpack.c.bf16 %v1411_v17, %v1408_v60  ;;  %v3739_v44 = vld [vmem:[%s8425_s0 + $0x38] sm:$0xff]  ;;  %v3812_v60 = vld [vmem:[%s8424_s1 + $0x190] sm:$0xff]  ;;  %v3815_v17 = vld [vmem:[%s8424_s1 + $0x1a8] sm:$0xff] }
 0x23f   :  { %5251 = vmatpush1.bf16.msra.mxu0 %v6928_v24  ;;  %5277 = vmatpush3.bf16.msra.mxu1 %v6930_v37 }
 0x240   :  { %5253 = vmatprep.subr.bf16.mxu0 %v6937_v16  ;;  %5278 = vmatprep.subr.bf16.mxu1 %v6007_v3 }
 0x243   :  { %5255 = vmatpush1.bf16.msra.mxu0 %v6956_v62  ;;  %5280 = vmatpush3.bf16.msra.mxu1 %v6958_v39 }
 0x244   :  { %5257 = vmatprep.subr.bf16.mxu0 %v6965_v54  ;;  %5281 = vmatprep.subr.bf16.mxu1 %v6007_v3 }
 0x245   :  { %v5886_v21 = vpop.eup %5885 }
 0x246   :  { %v905_v23 = vmul.f32 %v5886_v21, %v904_v19 }
 0x247   :  { %5259 = vmatpush1.bf16.msra.mxu0 %v6978_v9  ;;  %5283 = vmatpush3.bf16.msra.mxu1 %v6980_v10 }
 0x248   :  { %v6987_v35 = vadd.f32 %v906_v25, %v905_v23  ;;  %5285 = vmatprep.subr.bf16.mxu0 %v6630_v43  ;;  %5316 = vmatprep.subr.bf16.mxu1 %v6007_v3  ;;  %v1369_v43 = vld [vmem:[%s8424_s1 + $0x28] sm:$0xff] }
 0x24a   :  { %3737 = vst [vmem:[%s8427_s3 + $0x70] sm:$0xff] %v6987_v35  ;;  %1252 = vmatmul.mubr.f32.vlgmr.msra.gmra.mrb[10].mxu0 %v6987_v35  ;;  %4596 = vmatmul.mubr.f32.vlgmr.msra.gmra.mrb[10].mxu1 %v6987_v35 }
 0x24b   :  { %5287 = vmatpush1.bf16.msra.mxu0 %v6638_v11  ;;  %1477 = vmatprep.mubr.f32.mxu0 %v6008_v4  ;;  %v7022_v11 = vpack.c.bf16 %v1369_v43, %v1366_v36  ;;  %v3740_v36 = vld [vmem:[%s8425_s0 + $0x40] sm:$0xff] }
 0x24c   :  { %5289 = vmatprep.subr.bf16.mxu0 %v6648_v42  ;;  %4630 = vmatprep.mubr.msk.f32.mxu1 %vm6009_vm0, %v6008_v4  ;;  %v1372_v42 = vld [vmem:[%s8424_s1 + $0x40] sm:$0xff] }
 0x24d   :  { %5318 = vmatpush3.bf16.msra.mxu1 %v7022_v11 }
 0x24e   :  { %5319 = vmatprep.subr.bf16.mxu1 %v6007_v3 }
 0x24f   :  { %5291 = vmatpush1.bf16.msra.mxu0 %v6656_v13  ;;  %v1375_v13 = vld [vmem:[%s8424_s1 + $0x58] sm:$0xff] }
 0x250   :  { %5293 = vmatprep.subr.bf16.mxu0 %v6666_v31  ;;  %v7032_v31 = vpack.c.bf16 %v1375_v13, %v1372_v42  ;;  %v3744_v42 = vld [vmem:[%s8425_s0 + $0x138] sm:$0xff] }
 0x252   :  { %5321 = vmatpush3.bf16.msra.mxu1 %v7032_v31 }
 0x253   :  { %5295 = vmatpush1.bf16.msra.mxu0 %v6674_v53  ;;  %5322 = vmatprep.subr.bf16.mxu1 %v6007_v3  ;;  %v1378_v53 = vld [vmem:[%s8424_s1 + $0x70] sm:$0xff] }
 0x254   :  { %5297 = vmatprep.subr.bf16.mxu0 %v6684_v12  ;;  %v1381_v12 = vld [vmem:[%s8424_s1 + $0x88] sm:$0xff] }
 0x257   :  { %5299 = vmatpush1.bf16.msra.mxu0 %v6692_v46  ;;  %v7042_v46 = vpack.c.bf16 %v1381_v12, %v1378_v53 }
 0x258   :  { %5301 = vmatprep.subr.bf16.mxu0 %v6702_v55  ;;  %v1384_v55 = vld [vmem:[%s8424_s1 + $0xa0] sm:$0xff] }
 0x259   :  { %5324 = vmatpush3.bf16.msra.mxu1 %v7042_v46 }
 0x25a   :  { %5325 = vmatprep.subr.bf16.mxu1 %v6007_v3 }
 0x25b   :  { %5303 = vmatpush1.bf16.msra.mxu0 %v6710_v6  ;;  %v1387_v6 = vld [vmem:[%s8424_s1 + $0xb8] sm:$0xff] }
 0x25c   :  { %5305 = vmatprep.subr.bf16.mxu0 %v6720_v26  ;;  %v7052_v26 = vpack.c.bf16 %v1387_v6, %v1384_v55 }
 0x25e   :  { %5327 = vmatpush3.bf16.msra.mxu1 %v7052_v26 }
 0x25f   :  { %5307 = vmatpush1.bf16.msra.mxu0 %v6728_v5  ;;  %5328 = vmatprep.subr.bf16.mxu1 %v6007_v3  ;;  %v1390_v5 = vld [vmem:[%s8424_s1 + $0xd0] sm:$0xff] }
 0x260   :  { %5309 = vmatprep.subr.bf16.mxu0 %v6738_v15  ;;  %v1393_v15 = vld [vmem:[%s8424_s1 + $0xe8] sm:$0xff] }
 0x263   :  { %5311 = vmatpush1.bf16.msra.mxu0 %v6746_v32  ;;  %v7062_v32 = vpack.c.bf16 %v1393_v15, %v1390_v5 }
 0x264   :  { %5313 = vmatprep.subr.bf16.mxu0 %v6756_v33  ;;  %v1396_v33 = vld [vmem:[%s8424_s1 + $0x100] sm:$0xff] }
 0x265   :  { %5330 = vmatpush3.bf16.msra.mxu1 %v7062_v32 }
 0x266   :  { %5331 = vmatprep.subr.bf16.mxu1 %v6007_v3 }
 0x267   :  { %5315 = vmatpush1.bf16.msra.mxu0 %v6764_v47  ;;  %v1399_v47 = vld [vmem:[%s8424_s1 + $0x118] sm:$0xff] }
 0x268   :  { %5341 = vmatprep.subr.bf16.mxu0 %v6774_v1  ;;  %v7072_v1 = vpack.c.bf16 %v1399_v47, %v1396_v33 }
 0x26a   :  { %5333 = vmatpush3.bf16.msra.mxu1 %v7072_v1 }
 0x26b   :  { %5334 = vmatprep.subr.bf16.mxu1 %v6007_v3 }
 0x26e   :  { %5336 = vmatpush3.bf16.msra.mxu1 %v7082_v40 }
 0x26f   :  { %5337 = vmatprep.subr.bf16.mxu1 %v6007_v3 }
 0x272   :  { %5339 = vmatpush3.bf16.msra.mxu1 %v7092_v22 }
 0x273   :  { %5372 = vmatprep.subr.bf16.mxu1 %v6007_v3 }
 0x2fd   :  { %v1031_v56 = vpop.f32.mrb[8].mxu0  ;;  %v1102_v63 = vpop.f32.mrb[8].mxu1 }
 0x2fe   :  { %v1106_v58 = vadd.f32 %v3738_v61, %v1031_v56  ;;  %v1033_v50 = vpop.f32.mrb[9].mxu0  ;;  %v4562_v49 = vpop.f32.mrb[9].mxu1  ;;  %v1126_v23 = vadd.f32 %v6534_v59, %v1102_v63  ;;  %v3745_v59 = vld [vmem:[%s8425_s0 + $0x140] sm:$0xff] }
 0x2ff   :  { %v1113_v0 = vadd.f32 %v3739_v44, %v1033_v50  ;;  %v3818_v50 = vld [vmem:[%s8424_s1 + $0x1c0] sm:$0xff]  ;;  %v3821_v49 = vld [vmem:[%s8424_s1 + $0x1d8] sm:$0xff] }
 0x300   :  { %v3741_v48 = vmul.f32 -1.442695, %v1106_v58  ;;  %v7119_v58 = vpack.c.bf16 %v3815_v17, %v3812_v60  ;;  %v1839_v60 = vld [vmem:[%s8424_s1 + $0xd8] sm:$0xff] }
 0x301   :  { %v3742_v57 = vmul.f32 -1.442695, %v1113_v0 }
 0x302   :  { %5887 = vpow2.f32 %v3741_v48 }
 0x303   :  { %5889 = vpow2.f32 %v3742_v57  ;;  %v3824_v57 = vld [vmem:[%s8424_s1 + $0x1f0] sm:$0xff] }
 0x30c   :  { %v5888_v8 = vpop.eup %5887 }
 0x30d   :  { %v1110_v30 = vadd.f32 1.0, %v5888_v8  ;;  %v5890_v19 = vpop.eup %5889  ;;  %v3827_v8 = vld [vmem:[%s8424_s1 + $0x208] sm:$0xff] }
 0x30e   :  { %v1117_v21 = vadd.f32 1.0, %v5890_v19  ;;  %v3833_v19 = vld [vmem:[%s8424_s1 + $0x238] sm:$0xff] }
 0x30f   :  { %5891 = vrcp.f32 %v1110_v30  ;;  %v3830_v30 = vld [vmem:[%s8424_s1 + $0x220] sm:$0xff] }
 0x310   :  { %5893 = vrcp.f32 %v1117_v21 }
 0x319   :  { %v5892_v25 = vpop.eup %5891 }
 0x31a   :  { %v1127_v43 = vmul.f32 %v5892_v25, %v1126_v23  ;;  %v5894_v47 = vpop.eup %5893  ;;  %v3839_v23 = vld [vmem:[%s8424_s1 + $0x268] sm:$0xff] }
 0x31b   :  { %v1130_v51 = vsub.f32 1.0, %v5894_v47  ;;  %v1132_v63 = vmul.f32 %v5894_v47, %v6810_v34  ;;  %v7137_v34 = vpack.c.bf16 %v3821_v49, %v3818_v50  ;;  %v1840_v47 = vld [vmem:[%s8424_s1 + $0xe0] sm:$0xff]  ;;  %v1842_v50 = vld [vmem:[%s8424_s1 + $0xf0] sm:$0xff]  ;;  %v1845_v49 = vld [vmem:[%s8424_s1 + $0x108] sm:$0xff] }
 0x31c   :  { %v1128_v13 = vadd.f32 %v3740_v36, %v1127_v43 }
 0x31d   :  { %v1253_v53 = vpop.f32.mrb[10].mxu0  ;;  %v1324_v12 = vpop.f32.mrb[10].mxu1 }
 0x31e   :  { %5895 = vtanh.f32 %v1128_v13  ;;  %v1328_v55 = vadd.f32 %v3744_v42, %v1253_v53  ;;  %v1255_v6 = vpop.f32.mrb[11].mxu0  ;;  %v4597_v5 = vpop.f32.mrb[11].mxu1  ;;  %v1348_v25 = vadd.f32 %v6568_v20, %v1324_v12  ;;  %v1827_v13 = vld [vmem:[%s8424_s1 + $0x78] sm:$0xff] }
 0x31f   :  { %v1335_v33 = vadd.f32 %v3745_v59, %v1255_v6  ;;  %v1831_v12 = vld [vmem:[%s8424_s1 + $0x98] sm:$0xff]  ;;  %v1830_v6 = vld [vmem:[%s8424_s1 + $0x90] sm:$0xff]  ;;  %v1833_v5 = vld [vmem:[%s8424_s1 + $0xa8] sm:$0xff] }
 0x320   :  { %v3796_v15 = vmul.f32 -1.442695, %v1328_v55  ;;  %v1834_v55 = vld [vmem:[%s8424_s1 + $0xb0] sm:$0xff] }
 0x321   :  { %v3797_v38 = vmul.f32 -1.442695, %v1335_v33  ;;  %v7287_v59 = vpack.c.bf16 %v1834_v55, %v1831_v12  ;;  %v1837_v33 = vld [vmem:[%s8424_s1 + $0xc8] sm:$0xff]  ;;  %v3803_v55 = vld [vmem:[%s8425_s0 + $0x58] sm:$0xff] }
 0x322   :  { %5897 = vpow2.f32 %v3796_v15  ;;  %v7295_v15 = vpack.c.bf16 %v1833_v5, %v1830_v6  ;;  %v3807_v5 = vld [vmem:[%s8425_s0 + $0x120] sm:$0xff] }
 0x323   :  { %5899 = vpow2.f32 %v3797_v38  ;;  %v7305_v38 = vpack.c.bf16 %v1840_v47, %v1837_v33 }
 0x328   :  { %v5896_v61 = vpop.eup %5895 }
 0x329   :  { %v1131_v56 = vmul.f32 %v5896_v61, %v1130_v51  ;;  %v1836_v51 = vld [vmem:[%s8424_s1 + $0xc0] sm:$0xff]  ;;  %v1843_v61 = vld [vmem:[%s8424_s1 + $0xf8] sm:$0xff] }
 0x32a   :  { %v7313_v17 = vpack.c.bf16 %v1839_v60, %v1836_v51 }
 0x32b   :  { %v7121_v44 = vadd.f32 %v1132_v63, %v1131_v56  ;;  %v1846_v56 = vld [vmem:[%s8424_s1 + $0x110] sm:$0xff] }
 0x32c   :  { %v5898_v48 = vpop.eup %5897  ;;  %v7323_v63 = vpack.c.bf16 %v1846_v56, %v1843_v61  ;;  %v3808_v61 = vld [vmem:[%s8425_s0 + $0x128] sm:$0xff] }
 0x32d   :  { %v1332_v0 = vadd.f32 1.0, %v5898_v48  ;;  %3799 = vst [vmem:[%s8427_s3 + $0x10] sm:$0xff] %v7121_v44  ;;  %1478 = vmatmul.mubr.f32.vlgmr.msra.gmra.mrb[12].mxu0 %v7121_v44  ;;  %4631 = vmatmul.mubr.f32.vlgmr.msra.gmra.mrb[12].mxu1 %v7121_v44  ;;  %v7331_v48 = vpack.c.bf16 %v1845_v49, %v1842_v50 }
 0x32e   :  { %5343 = vmatpush1.bf16.msra.mxu0 %v6808_v29  ;;  %5374 = vmatpush3.bf16.msra.mxu1 %v7119_v58  ;;  %v7152_v29 = vpack.c.bf16 %v3827_v8, %v3824_v57  ;;  %v1852_v57 = vld [vmem:[%s8424_s1 + $0x140] sm:$0xff] }
 0x32f   :  { %5901 = vrcp.f32 %v1332_v0  ;;  %5345 = vmatprep.subr.bf16.mxu0 %v6812_v52  ;;  %5375 = vmatprep.subr.bf16.mxu1 %v6007_v3  ;;  %v5900_v52 = vpop.eup %5899  ;;  %v1849_v0 = vld [vmem:[%s8424_s1 + $0x128] sm:$0xff] }
 0x330   :  { %1699 = vmatprep.mubr.f32.mxu0 %v6008_v4  ;;  %4665 = vmatprep.mubr.msk.f32.mxu1 %vm6009_vm0, %v6008_v4  ;;  %v1339_v21 = vadd.f32 1.0, %v5900_v52  ;;  %v7341_v8 = vpack.c.bf16 %v1852_v57, %v1849_v0  ;;  %v1848_v52 = vld [vmem:[%s8424_s1 + $0x120] sm:$0xff] }
 0x332   :  { %5347 = vmatpush1.bf16.msra.mxu0 %v6834_v14  ;;  %5377 = vmatpush3.bf16.msra.mxu1 %v7137_v34  ;;  %v7164_v14 = vpack.c.bf16 %v3833_v19, %v3830_v30  ;;  %5903 = vrcp.f32 %v1339_v21  ;;  %v1851_v30 = vld [vmem:[%s8424_s1 + $0x138] sm:$0xff] }
 0x333   :  { %5349 = vmatprep.subr.bf16.mxu0 %v6838_v27  ;;  %5378 = vmatprep.subr.bf16.mxu1 %v6007_v3  ;;  %v3836_v27 = vld [vmem:[%s8424_s1 + $0x250] sm:$0xff]  ;;  %v7349_v19 = vpack.c.bf16 %v1851_v30, %v1848_v52  ;;  %v1855_v21 = vld [vmem:[%s8424_s1 + $0x158] sm:$0xff] }
 0x336   :  { %5351 = vmatpush1.bf16.msra.mxu0 %v6857_v7  ;;  %5380 = vmatpush3.bf16.msra.mxu1 %v7152_v29  ;;  %v3746_v7 = vld [vmem:[%s8425_s0 + $0x148] sm:$0xff] }
 0x337   :  { %5353 = vmatprep.subr.bf16.mxu0 %v6861_v45  ;;  %5381 = vmatprep.subr.bf16.mxu1 %v6007_v3  ;;  %v7180_v45 = vpack.c.bf16 %v3839_v23, %v3836_v27  ;;  %v1858_v27 = vld [vmem:[%s8424_s1 + $0x170] sm:$0xff] }
 0x338   :  { %v7359_v23 = vpack.c.bf16 %v1858_v27, %v1855_v21  ;;  %v3873_v21 = vld [vmem:[%s8424_s1 + $0x180] sm:$0xff]  ;;  %v3876_v27 = vld [vmem:[%s8424_s1 + $0x198] sm:$0xff] }
 0x339   :  { %v5902_v36 = vpop.eup %5901 }
 0x33a   :  { %v1349_v43 = vmul.f32 %v5902_v36, %v1348_v25  ;;  %5355 = vmatpush1.bf16.msra.mxu0 %v6877_v18  ;;  %5383 = vmatpush3.bf16.msra.mxu1 %v7164_v14  ;;  %v1854_v25 = vld [vmem:[%s8424_s1 + $0x150] sm:$0xff]  ;;  %v1857_v36 = vld [vmem:[%s8424_s1 + $0x168] sm:$0xff] }
 0x33b   :  { %5357 = vmatprep.subr.bf16.mxu0 %v6881_v28  ;;  %5384 = vmatprep.subr.bf16.mxu1 %v6007_v3 }
 0x33c   :  { %v1350_v42 = vadd.f32 %v3746_v7, %v1349_v43  ;;  %v5904_v20 = vpop.eup %5903  ;;  %v7367_v7 = vpack.c.bf16 %v1857_v36, %v1854_v25  ;;  %v3874_v43 = vld [vmem:[%s8424_s1 + $0x188] sm:$0xff]  ;;  %v3880_v36 = vld [vmem:[%s8424_s1 + $0x1b8] sm:$0xff] }
 0x33d   :  { %v1352_v18 = vsub.f32 1.0, %v5904_v20 }
 0x33e   :  { %5905 = vtanh.f32 %v1350_v42  ;;  %5359 = vmatpush1.bf16.msra.mxu0 %v6902_v2  ;;  %5386 = vmatpush3.bf16.msra.mxu1 %v7180_v45  ;;  %v3877_v42 = vld [vmem:[%s8424_s1 + $0x1a0] sm:$0xff] }
 0x33f   :  { %5361 = vmatprep.subr.bf16.mxu0 %v6909_v41  ;;  %5387 = vmatprep.subr.bf16.mxu1 %v6007_v3  ;;  %v1354_v41 = vmul.f32 %v5904_v20, %v6987_v35  ;;  %v1822_v35 = vld [vmem:[%s8424_s1 + $0x50] sm:$0xff]  ;;  %v7377_v20 = vpack.c.bf16 %v3877_v42, %v3874_v43 }
 0x340   :  { %v3883_v43 = vld [vmem:[%s8424_s1 + $0x1d0] sm:$0xff] }
 0x342   :  { %5363 = vmatpush1.bf16.msra.mxu0 %v6928_v24  ;;  %5389 = vmatpush3.bf16.msra.mxu1 %v6930_v37  ;;  %v1813_v37 = vld [vmem:[%s8424_s1 + $0x8] sm:$0xff] }
 0x343   :  { %5365 = vmatprep.subr.bf16.mxu0 %v6937_v16  ;;  %5390 = vmatprep.subr.bf16.mxu1 %v6007_v3  ;;  %v1816_v16 = vld [vmem:[%s8424_s1 + $0x20] sm:$0xff] }
 0x346   :  { %5367 = vmatpush1.bf16.msra.mxu0 %v6956_v62  ;;  %5392 = vmatpush3.bf16.msra.mxu1 %v6958_v39  ;;  %v7233_v62 = vpack.c.bf16 %v1816_v16, %v1813_v37  ;;  %v1812_v39 = vld [vmem:[%s8424_s1] sm:$0xff]  ;;  %v3802_v37 = vld [vmem:[%s8425_s0 + $0x50] sm:$0xff] }
 0x347   :  { %5369 = vmatprep.subr.bf16.mxu0 %v6965_v54  ;;  %5393 = vmatprep.subr.bf16.mxu1 %v6007_v3  ;;  %v1815_v54 = vld [vmem:[%s8424_s1 + $0x18] sm:$0xff] }
 0x348   :  { %v5906_v28 = vpop.eup %5905 }
 0x349   :  { %v1353_v2 = vmul.f32 %v5906_v28, %v1352_v18  ;;  %v3801_v18 = vld [vmem:[%s8425_s0 + $0x48] sm:$0xff] }
 0x34a   :  { %5371 = vmatpush1.bf16.msra.mxu0 %v6978_v9  ;;  %5395 = vmatpush3.bf16.msra.mxu1 %v6980_v10  ;;  %v7241_v9 = vpack.c.bf16 %v1815_v54, %v1812_v39  ;;  %v1819_v10 = vld [vmem:[%s8424_s1 + $0x38] sm:$0xff] }
 0x34b   :  { %v7199_v24 = vadd.f32 %v1354_v41, %v1353_v2  ;;  %5428 = vmatprep.subr.bf16.mxu1 %v6007_v3  ;;  %5397 = vmatprep.subr.bf16.mxu0 %v7233_v62 }
 0x34d   :  { %3800 = vst [vmem:[%s8427_s3 + $0x68] sm:$0xff] %v7199_v24  ;;  %1700 = vmatmul.mubr.f32.vlgmr.msra.gmra.mrb[14].mxu0 %v7199_v24  ;;  %4666 = vmatmul.mubr.f32.vlgmr.msra.gmra.mrb[14].mxu1 %v7199_v24 }
 0x34e   :  { %5430 = vmatpush3.bf16.msra.mxu1 %v7022_v11  ;;  %1925 = vmatprep.mubr.f32.mxu0 %v6008_v4  ;;  %v7251_v11 = vpack.c.bf16 %v1822_v35, %v1819_v10 }
 0x34f   :  { %5431 = vmatprep.subr.bf16.mxu1 %v6007_v3  ;;  %4700 = vmatprep.mubr.msk.f32.mxu1 %vm6009_vm0, %v6008_v4 }
 0x350   :  { %5399 = vmatpush1.bf16.msra.mxu0 %v7241_v9 }
 0x351   :  { %5401 = vmatprep.subr.bf16.mxu0 %v7251_v11 }
 0x352   :  { %5433 = vmatpush3.bf16.msra.mxu1 %v7032_v31  ;;  %v1818_v31 = vld [vmem:[%s8424_s1 + $0x30] sm:$0xff] }
 0x353   :  { %5434 = vmatprep.subr.bf16.mxu1 %v6007_v3 }
 0x356   :  { %5436 = vmatpush3.bf16.msra.mxu1 %v7042_v46  ;;  %v1821_v46 = vld [vmem:[%s8424_s1 + $0x48] sm:$0xff] }
 0x357   :  { %5437 = vmatprep.subr.bf16.mxu1 %v6007_v3 }
 0x35a   :  { %5439 = vmatpush3.bf16.msra.mxu1 %v7052_v26  ;;  %v7259_v26 = vpack.c.bf16 %v1821_v46, %v1818_v31 }
 0x35b   :  { %5440 = vmatprep.subr.bf16.mxu1 %v6007_v3 }
 0x35c   :  { %5403 = vmatpush1.bf16.msra.mxu0 %v7259_v26 }
 0x35e   :  { %5442 = vmatpush3.bf16.msra.mxu1 %v7062_v32  ;;  %v1825_v32 = vld [vmem:[%s8424_s1 + $0x68] sm:$0xff] }
 0x35f   :  { %5443 = vmatprep.subr.bf16.mxu1 %v6007_v3 }
 0x362   :  { %5445 = vmatpush3.bf16.msra.mxu1 %v7072_v1  ;;  %v1828_v1 = vld [vmem:[%s8424_s1 + $0x80] sm:$0xff] }
 0x363   :  { %5446 = vmatprep.subr.bf16.mxu1 %v6007_v3 }
 0x366   :  { %5448 = vmatpush3.bf16.msra.mxu1 %v7082_v40  ;;  %v7269_v40 = vpack.c.bf16 %v1828_v1, %v1825_v32  ;;  %v7389_v1 = vld [vmem:[%s8426_s2] ss:$0 sm:$0xff] }
 0x367   :  { %5449 = vmatprep.subr.bf16.mxu1 %v6007_v3 }
 0x368   :  { %5405 = vmatprep.subr.bf16.mxu0 %v7269_v40 }
 0x36a   :  { %5451 = vmatpush3.bf16.msra.mxu1 %v7092_v22  ;;  %v1824_v22 = vld [vmem:[%s8424_s1 + $0x60] sm:$0xff] }
 0x36b   :  { %5484 = vmatprep.subr.bf16.mxu1 %v6007_v3  ;;  %v7277_v53 = vpack.c.bf16 %v1827_v13, %v1824_v22 }
 0x36d   :  { %5407 = vmatpush1.bf16.msra.mxu0 %v7277_v53 }
 0x36e   :  { %5409 = vmatprep.subr.bf16.mxu0 %v7287_v59 }
 0x371   :  { %5411 = vmatpush1.bf16.msra.mxu0 %v7295_v15 }
 0x372   :  { %5413 = vmatprep.subr.bf16.mxu0 %v7305_v38 }
 0x375   :  { %5415 = vmatpush1.bf16.msra.mxu0 %v7313_v17 }
 0x376   :  { %5417 = vmatprep.subr.bf16.mxu0 %v7323_v63 }
 0x379   :  { %5419 = vmatpush1.bf16.msra.mxu0 %v7331_v48 }
 0x37a   :  { %5421 = vmatprep.subr.bf16.mxu0 %v7341_v8 }
 0x37d   :  { %5423 = vmatpush1.bf16.msra.mxu0 %v7349_v19 }
 0x37e   :  { %5425 = vmatprep.subr.bf16.mxu0 %v7359_v23 }
 0x381   :  { %5427 = vmatpush1.bf16.msra.mxu0 %v7367_v7 }
 0x382   :  { %5453 = vmatprep.subr.bf16.mxu0 %v7377_v20 }
 0x400   :  { %v1479_v28 = vpop.f32.mrb[12].mxu0  ;;  %v1550_v2 = vpop.f32.mrb[12].mxu1 }
 0x401   :  { %v1554_v41 = vadd.f32 %v3801_v18, %v1479_v28  ;;  %v1481_v16 = vpop.f32.mrb[13].mxu0  ;;  %v4632_v39 = vpop.f32.mrb[13].mxu1  ;;  %v1574_v13 = vadd.f32 %v7389_v1, %v1550_v2  ;;  %v7416_v28 = vpack.c.bf16 %v3876_v27, %v3873_v21  ;;  %v3903_v27 = vld [vmem:[%s8424_s1 + $0x270] sm:$0xff] }
 0x402   :  { %v1561_v10 = vadd.f32 %v3802_v37, %v1481_v16  ;;  %v3879_v37 = vld [vmem:[%s8424_s1 + $0x1b0] sm:$0xff]  ;;  %v3882_v16 = vld [vmem:[%s8424_s1 + $0x1c8] sm:$0xff] }
 0x403   :  { %v3804_v54 = vmul.f32 -1.442695, %v1554_v41  ;;  %v7420_v41 = vpack.c.bf16 %v3883_v43, %v3880_v36  ;;  %v3906_v36 = vld [vmem:[%s8424_s1 + $0x288] sm:$0xff]  ;;  %v3908_v43 = vld [vmem:[%s8424_s1 + $0x298] sm:$0xff] }
 0x404   :  { %v3805_v35 = vmul.f32 -1.442695, %v1561_v10 }
 0x405   :  { %5907 = vpow2.f32 %v3804_v54  ;;  %v3886_v54 = vld [vmem:[%s8424_s1 + $0x1e8] sm:$0xff] }
 0x406   :  { %5909 = vpow2.f32 %v3805_v35  ;;  %v7442_v35 = vpack.c.bf16 %v3882_v16, %v3879_v37  ;;  %v3913_v37 = vld [vmem:[%s8424_s1 + $0x2c0] sm:$0xff]  ;;  %v7541_v16 = vpack.c.bf16 %v3906_v36, %v3903_v27  ;;  %v2298_v27 = vld [vmem:[%s8424_s1 + $0x130] sm:$0xff]  ;;  %v2301_v36 = vld [vmem:[%s8424_s1 + $0x148] sm:$0xff] }
 0x40f   :  { %v5908_v31 = vpop.eup %5907 }
 0x410   :  { %v1558_v46 = vadd.f32 1.0, %v5908_v31  ;;  %v5910_v32 = vpop.eup %5909 }
 0x411   :  { %v1565_v22 = vadd.f32 1.0, %v5910_v32  ;;  %v3888_v32 = vld [vmem:[%s8424_s1 + $0x1f8] sm:$0xff] }
 0x412   :  { %5911 = vrcp.f32 %v1558_v46  ;;  %v3885_v46 = vld [vmem:[%s8424_s1 + $0x1e0] sm:$0xff] }
 0x413   :  { %5913 = vrcp.f32 %v1565_v22  ;;  %v3895_v22 = vld [vmem:[%s8424_s1 + $0x230] sm:$0xff] }
 0x41c   :  { %v5912_v12 = vpop.eup %5911 }
 0x41d   :  { %v1575_v6 = vmul.f32 %v5912_v12, %v1574_v13  ;;  %v5914_v57 = vpop.eup %5913  ;;  %v7465_v13 = vpack.c.bf16 %v3888_v32, %v3885_v46  ;;  %v3914_v46 = vld [vmem:[%s8424_s1 + $0x2c8] sm:$0xff]  ;;  %v3916_v32 = vld [vmem:[%s8424_s1 + $0x2d8] sm:$0xff] }
 0x41e   :  { %v1578_v30 = vsub.f32 1.0, %v5914_v57  ;;  %v1580_v18 = vmul.f32 %v5914_v57, %v7121_v44  ;;  %v3889_v44 = vld [vmem:[%s8424_s1 + $0x200] sm:$0xff]  ;;  %v3907_v57 = vld [vmem:[%s8424_s1 + $0x290] sm:$0xff] }
 0x41f   :  { %v1576_v33 = vadd.f32 %v3803_v55, %v1575_v6  ;;  %v7446_v31 = vpack.c.bf16 %v3889_v44, %v3886_v54  ;;  %v3891_v6 = vld [vmem:[%s8424_s1 + $0x210] sm:$0xff]  ;;  %v3909_v54 = vld [vmem:[%s8424_s1 + $0x2a0] sm:$0xff] }
 0x420   :  { %v1701_v47 = vpop.f32.mrb[14].mxu0  ;;  %v7398_v51 = vpop.f32.mrb[14].mxu1 }
 0x421   :  { %5915 = vtanh.f32 %v1576_v33  ;;  %v1776_v60 = vadd.f32 %v3807_v5, %v1701_v47  ;;  %v1703_v56 = vpop.f32.mrb[15].mxu0  ;;  %v4667_v50 = vpop.f32.mrb[15].mxu1  ;;  %v3894_v5 = vld [vmem:[%s8424_s1 + $0x228] sm:$0xff]  ;;  %v3901_v33 = vld [vmem:[%s8424_s1 + $0x260] sm:$0xff] }
 0x422   :  { %v1783_v0 = vadd.f32 %v3808_v61, %v1703_v56  ;;  %v7486_v47 = vld [vmem:[%s8426_s2 + $0x1] ss:$0 sm:$0xff]  ;;  %v7490_v61 = vpack.c.bf16 %v3894_v5, %v3891_v6  ;;  %v3915_v6 = vld [vmem:[%s8424_s1 + $0x2d0] sm:$0xff] }
 0x423   :  { %v3859_v49 = vmul.f32 -1.442695, %v1776_v60  ;;  %v3897_v50 = vld [vmem:[%s8424_s1 + $0x240] sm:$0xff] }
 0x424   :  { %v3860_v52 = vmul.f32 -1.442695, %v1783_v0  ;;  %v1796_v0 = vadd.f32 %v7486_v47, %v7398_v51 }
 0x425   :  { %5917 = vpow2.f32 %v3859_v49  ;;  %v3900_v49 = vld [vmem:[%s8424_s1 + $0x258] sm:$0xff] }
 0x426   :  { %5919 = vpow2.f32 %v3860_v52  ;;  %v7515_v51 = vpack.c.bf16 %v3900_v49, %v3897_v50 }
 0x42b   :  { %v5916_v25 = vpop.eup %5915 }
 0x42c   :  { %v1579_v42 = vmul.f32 %v5916_v25, %v1578_v30  ;;  %v3809_v30 = vld [vmem:[%s8425_s0 + $0x130] sm:$0xff] }
 0x42e   :  { %v7418_v2 = vadd.f32 %v1580_v18, %v1579_v42  ;;  %v3910_v18 = vld [vmem:[%s8424_s1 + $0x2a8] sm:$0xff] }
 0x42f   :  { %v5918_v39 = vpop.eup %5917  ;;  %v7550_v44 = vpack.c.bf16 %v3913_v37, %v3910_v18  ;;  %v3864_v37 = vld [vmem:[%s8425_s0 + $0x60] sm:$0xff] }
 0x430   :  { %v1780_v10 = vadd.f32 1.0, %v5918_v39  ;;  %3862 = vst [vmem:[%s8427_s3 + $0x18] sm:$0xff] %v7418_v2  ;;  %1926 = vmatmul.mubr.f32.vlgmr.msra.gmra.mrb[16].mxu0 %v7418_v2  ;;  %4701 = vmatmul.mubr.f32.vlgmr.msra.gmra.mrb[16].mxu1 %v7418_v2  ;;  %v5920_v12 = vpop.eup %5919 }
 0x431   :  { %5455 = vmatpush1.bf16.msra.mxu0 %v7416_v28  ;;  %5486 = vmatpush3.bf16.msra.mxu1 %v7119_v58  ;;  %v3892_v58 = vld [vmem:[%s8424_s1 + $0x218] sm:$0xff]  ;;  %v1787_v60 = vadd.f32 1.0, %v5920_v12 }
 0x432   :  { %5921 = vrcp.f32 %v1780_v10  ;;  %5457 = vmatprep.subr.bf16.mxu0 %v7420_v41  ;;  %5487 = vmatprep.subr.bf16.mxu1 %v6007_v3  ;;  %v7469_v55 = vpack.c.bf16 %v3895_v22, %v3892_v58  ;;  %v3912_v10 = vld [vmem:[%s8424_s1 + $0x2b8] sm:$0xff]  ;;  %v3919_v58 = vld [vmem:[%s8424_s1 + $0x2f0] sm:$0xff] }
 0x433   :  { %2147 = vmatprep.mubr.f32.mxu0 %v6008_v4  ;;  %4735 = vmatprep.mubr.msk.f32.mxu1 %vm6009_vm0, %v6008_v4  ;;  %5923 = vrcp.f32 %v1787_v60  ;;  %v7569_v22 = vpack.c.bf16 %v3912_v10, %v3909_v54  ;;  %v7578_v5 = vpack.c.bf16 %v3919_v58, %v3916_v32  ;;  %v3920_v60 = vld [vmem:[%s8424_s1 + $0x2f8] sm:$0xff] }
 0x435   :  { %5459 = vmatpush1.bf16.msra.mxu0 %v7442_v35  ;;  %5489 = vmatpush3.bf16.msra.mxu1 %v7137_v34  ;;  %v3898_v34 = vld [vmem:[%s8424_s1 + $0x248] sm:$0xff] }
 0x436   :  { %5461 = vmatprep.subr.bf16.mxu0 %v7446_v31  ;;  %5490 = vmatprep.subr.bf16.mxu1 %v6007_v3  ;;  %v7494_v56 = vpack.c.bf16 %v3901_v33, %v3898_v34  ;;  %v3918_v34 = vld [vmem:[%s8424_s1 + $0x2e8] sm:$0xff]  ;;  %v3917_v33 = vld [vmem:[%s8424_s1 + $0x2e0] sm:$0xff] }
 0x437   :  { %v7591_v49 = vpack.c.bf16 %v3918_v34, %v3915_v6 }
 0x439   :  { %5463 = vmatpush1.bf16.msra.mxu0 %v7465_v13  ;;  %5492 = vmatpush3.bf16.msra.mxu1 %v7152_v29  ;;  %v3904_v29 = vld [vmem:[%s8424_s1 + $0x278] sm:$0xff] }
 0x43a   :  { %5465 = vmatprep.subr.bf16.mxu0 %v7469_v55  ;;  %5493 = vmatprep.subr.bf16.mxu1 %v6007_v3  ;;  %v7522_v25 = vpack.c.bf16 %v3907_v57, %v3904_v29 }
 0x43c   :  { %v5922_v52 = vpop.eup %5921 }
 0x43d   :  { %v1797_v21 = vmul.f32 %v5922_v52, %v1796_v0  ;;  %5467 = vmatpush1.bf16.msra.mxu0 %v7490_v61  ;;  %5495 = vmatpush3.bf16.msra.mxu1 %v7164_v14  ;;  %v3905_v14 = vld [vmem:[%s8424_s1 + $0x280] sm:$0xff]  ;;  %v5924_v50 = vpop.eup %5923  ;;  %v7593_v0 = vpack.c.bf16 %v3920_v60, %v3917_v33 }
 0x43e   :  { %5469 = vmatprep.subr.bf16.mxu0 %v7494_v56  ;;  %5496 = vmatprep.subr.bf16.mxu1 %v6007_v3  ;;  %v7543_v39 = vpack.c.bf16 %v3908_v43, %v3905_v14  ;;  %v1800_v29 = vsub.f32 1.0, %v5924_v50  ;;  %v7695_v14 = vpack.c.bf16 %v2301_v36, %v2298_v27  ;;  %v2304_v43 = vld [vmem:[%s8424_s1 + $0x160] sm:$0xff] }
 0x43f   :  { %v1798_v42 = vadd.f32 %v3809_v30, %v1797_v21  ;;  %v1802_v30 = vmul.f32 %v5924_v50, %v7199_v24  ;;  %v2262_v24 = vld [vmem:[%s8424_s1 + $0x10] sm:$0xff] }
 0x441   :  { %5925 = vtanh.f32 %v1798_v42  ;;  %5471 = vmatpush1.bf16.msra.mxu0 %v7515_v51  ;;  %5498 = vmatpush3.bf16.msra.mxu1 %v7180_v45  ;;  %v3911_v45 = vld [vmem:[%s8424_s1 + $0x2b0] sm:$0xff]  ;;  %v2307_v42 = vld [vmem:[%s8424_s1 + $0x178] sm:$0xff] }
 0x442   :  { %5473 = vmatprep.subr.bf16.mxu0 %v7522_v25  ;;  %5499 = vmatprep.subr.bf16.mxu1 %v6007_v3  ;;  %v7571_v12 = vpack.c.bf16 %v3914_v46, %v3911_v45  ;;  %v7705_v18 = vpack.c.bf16 %v2307_v42, %v2304_v43  ;;  %v3865_v46 = vld [vmem:[%s8425_s0 + $0x68] sm:$0xff]  ;;  %v3938_v43 = vld [vmem:[%s8424_s1 + $0x190] sm:$0xff] }
 0x443   :  { %v3941_v42 = vld [vmem:[%s8424_s1 + $0x1a8] sm:$0xff] }
 0x445   :  { %5475 = vmatpush1.bf16.msra.mxu0 %v7541_v16  ;;  %5501 = vmatpush3.bf16.msra.mxu1 %v7543_v39 }
 0x446   :  { %5477 = vmatprep.subr.bf16.mxu0 %v7550_v44  ;;  %5502 = vmatprep.subr.bf16.mxu1 %v6007_v3 }
 0x449   :  { %5479 = vmatpush1.bf16.msra.mxu0 %v7569_v22  ;;  %5504 = vmatpush3.bf16.msra.mxu1 %v7571_v12 }
 0x44a   :  { %5481 = vmatprep.subr.bf16.mxu0 %v7578_v5  ;;  %5505 = vmatprep.subr.bf16.mxu1 %v6007_v3 }
 0x44b   :  { %v5926_v57 = vpop.eup %5925 }
 0x44c   :  { %v1801_v52 = vmul.f32 %v5926_v57, %v1800_v29 }
 0x44d   :  { %5483 = vmatpush1.bf16.msra.mxu0 %v7591_v49  ;;  %5507 = vmatpush3.bf16.msra.mxu1 %v7593_v0 }
 0x44e   :  { %v7600_v21 = vadd.f32 %v1802_v30, %v1801_v52  ;;  %5509 = vmatprep.subr.bf16.mxu0 %v7233_v62  ;;  %5540 = vmatprep.subr.bf16.mxu1 %v6007_v3  ;;  %v2265_v62 = vld [vmem:[%s8424_s1 + $0x28] sm:$0xff] }
 0x450   :  { %3863 = vst [vmem:[%s8427_s3 + $0x60] sm:$0xff] %v7600_v21  ;;  %2148 = vmatmul.mubr.f32.vlgmr.msra.gmra.mrb[18].mxu0 %v7600_v21  ;;  %4736 = vmatmul.mubr.f32.vlgmr.msra.gmra.mrb[18].mxu1 %v7600_v21 }
 0x451   :  { %5511 = vmatpush1.bf16.msra.mxu0 %v7241_v9  ;;  %2373 = vmatprep.mubr.f32.mxu0 %v6008_v4  ;;  %v7635_v9 = vpack.c.bf16 %v2265_v62, %v2262_v24  ;;  %v3866_v24 = vld [vmem:[%s8425_s0 + $0x70] sm:$0xff] }
 0x452   :  { %5513 = vmatprep.subr.bf16.mxu0 %v7251_v11  ;;  %4770 = vmatprep.mubr.msk.f32.mxu1 %vm6009_vm0, %v6008_v4  ;;  %v2268_v11 = vld [vmem:[%s8424_s1 + $0x40] sm:$0xff] }
 0x453   :  { %5542 = vmatpush3.bf16.msra.mxu1 %v7635_v9 }
 0x454   :  { %5543 = vmatprep.subr.bf16.mxu1 %v6007_v3 }
 0x455   :  { %5515 = vmatpush1.bf16.msra.mxu0 %v7259_v26  ;;  %v2271_v26 = vld [vmem:[%s8424_s1 + $0x58] sm:$0xff] }
 0x456   :  { %5517 = vmatprep.subr.bf16.mxu0 %v7269_v40  ;;  %v7645_v40 = vpack.c.bf16 %v2271_v26, %v2268_v11  ;;  %v3870_v11 = vld [vmem:[%s8425_s0 + $0x108] sm:$0xff] }
 0x458   :  { %5545 = vmatpush3.bf16.msra.mxu1 %v7645_v40 }
 0x459   :  { %5519 = vmatpush1.bf16.msra.mxu0 %v7277_v53  ;;  %5546 = vmatprep.subr.bf16.mxu1 %v6007_v3  ;;  %v2274_v53 = vld [vmem:[%s8424_s1 + $0x70] sm:$0xff] }
 0x45a   :  { %5521 = vmatprep.subr.bf16.mxu0 %v7287_v59  ;;  %v2277_v59 = vld [vmem:[%s8424_s1 + $0x88] sm:$0xff] }
 0x45d   :  { %5523 = vmatpush1.bf16.msra.mxu0 %v7295_v15  ;;  %v7655_v15 = vpack.c.bf16 %v2277_v59, %v2274_v53 }
 0x45e   :  { %5525 = vmatprep.subr.bf16.mxu0 %v7305_v38  ;;  %v2280_v38 = vld [vmem:[%s8424_s1 + $0xa0] sm:$0xff] }
 0x45f   :  { %5548 = vmatpush3.bf16.msra.mxu1 %v7655_v15 }
 0x460   :  { %5549 = vmatprep.subr.bf16.mxu1 %v6007_v3 }
 0x461   :  { %5527 = vmatpush1.bf16.msra.mxu0 %v7313_v17  ;;  %v2283_v17 = vld [vmem:[%s8424_s1 + $0xb8] sm:$0xff] }
 0x462   :  { %5529 = vmatprep.subr.bf16.mxu0 %v7323_v63  ;;  %v7665_v63 = vpack.c.bf16 %v2283_v17, %v2280_v38 }
 0x464   :  { %5551 = vmatpush3.bf16.msra.mxu1 %v7665_v63 }
 0x465   :  { %5531 = vmatpush1.bf16.msra.mxu0 %v7331_v48  ;;  %5552 = vmatprep.subr.bf16.mxu1 %v6007_v3  ;;  %v2286_v48 = vld [vmem:[%s8424_s1 + $0xd0] sm:$0xff] }
 0x466   :  { %5533 = vmatprep.subr.bf16.mxu0 %v7341_v8  ;;  %v2289_v8 = vld [vmem:[%s8424_s1 + $0xe8] sm:$0xff] }
 0x469   :  { %5535 = vmatpush1.bf16.msra.mxu0 %v7349_v19  ;;  %v7675_v19 = vpack.c.bf16 %v2289_v8, %v2286_v48 }
 0x46a   :  { %5537 = vmatprep.subr.bf16.mxu0 %v7359_v23  ;;  %v2292_v23 = vld [vmem:[%s8424_s1 + $0x100] sm:$0xff] }
 0x46b   :  { %5554 = vmatpush3.bf16.msra.mxu1 %v7675_v19 }
 0x46c   :  { %5555 = vmatprep.subr.bf16.mxu1 %v6007_v3 }
 0x46d   :  { %5539 = vmatpush1.bf16.msra.mxu0 %v7367_v7  ;;  %v2295_v7 = vld [vmem:[%s8424_s1 + $0x118] sm:$0xff] }
 0x46e   :  { %5565 = vmatprep.subr.bf16.mxu0 %v7377_v20  ;;  %v7685_v20 = vpack.c.bf16 %v2295_v7, %v2292_v23 }
 0x470   :  { %5557 = vmatpush3.bf16.msra.mxu1 %v7685_v20 }
 0x471   :  { %5558 = vmatprep.subr.bf16.mxu1 %v6007_v3 }
 0x474   :  { %5560 = vmatpush3.bf16.msra.mxu1 %v7695_v14 }
 0x475   :  { %5561 = vmatprep.subr.bf16.mxu1 %v6007_v3 }
 0x478   :  { %5563 = vmatpush3.bf16.msra.mxu1 %v7705_v18 }
 0x479   :  { %5596 = vmatprep.subr.bf16.mxu1 %v6007_v3 }
 0x503   :  { %v1927_v54 = vpop.f32.mrb[16].mxu0  ;;  %v1998_v10 = vpop.f32.mrb[16].mxu1 }
 0x504   :  { %v2002_v45 = vadd.f32 %v3864_v37, %v1927_v54  ;;  %v1929_v32 = vpop.f32.mrb[17].mxu0  ;;  %v4702_v58 = vpop.f32.mrb[17].mxu1  ;;  %v2022_v52 = vadd.f32 %v7389_v1, %v1998_v10  ;;  %v3871_v1 = vld [vmem:[%s8425_s0 + $0x110] sm:$0xff] }
 0x505   :  { %v2009_v34 = vadd.f32 %v3865_v46, %v1929_v32  ;;  %v3944_v32 = vld [vmem:[%s8424_s1 + $0x1c0] sm:$0xff]  ;;  %v3947_v58 = vld [vmem:[%s8424_s1 + $0x1d8] sm:$0xff] }
 0x506   :  { %v3867_v6 = vmul.f32 -1.442695, %v2002_v45  ;;  %v7732_v45 = vpack.c.bf16 %v3941_v42, %v3938_v43  ;;  %v2735_v43 = vld [vmem:[%s8424_s1 + $0xd8] sm:$0xff] }
 0x507   :  { %v3868_v33 = vmul.f32 -1.442695, %v2009_v34 }
 0x508   :  { %5927 = vpow2.f32 %v3867_v6 }
 0x509   :  { %5929 = vpow2.f32 %v3868_v33  ;;  %v3950_v33 = vld [vmem:[%s8424_s1 + $0x1f0] sm:$0xff] }
 0x512   :  { %v5928_v60 = vpop.eup %5927 }
 0x513   :  { %v2006_v50 = vadd.f32 1.0, %v5928_v60  ;;  %v5930_v29 = vpop.eup %5929  ;;  %v3953_v60 = vld [vmem:[%s8424_s1 + $0x208] sm:$0xff] }
 0x514   :  { %v2013_v57 = vadd.f32 1.0, %v5930_v29  ;;  %v3959_v29 = vld [vmem:[%s8424_s1 + $0x238] sm:$0xff] }
 0x515   :  { %5931 = vrcp.f32 %v2006_v50  ;;  %v3956_v50 = vld [vmem:[%s8424_s1 + $0x220] sm:$0xff] }
 0x516   :  { %5933 = vrcp.f32 %v2013_v57 }
 0x51f   :  { %v5932_v30 = vpop.eup %5931 }
 0x520   :  { %v2023_v62 = vmul.f32 %v5932_v30, %v2022_v52  ;;  %v5934_v7 = vpop.eup %5933  ;;  %v3965_v52 = vld [vmem:[%s8424_s1 + $0x268] sm:$0xff] }
 0x521   :  { %v2026_v36 = vsub.f32 1.0, %v5934_v7  ;;  %v2028_v10 = vmul.f32 %v5934_v7, %v7418_v2  ;;  %v7750_v2 = vpack.c.bf16 %v3947_v58, %v3944_v32  ;;  %v2736_v7 = vld [vmem:[%s8424_s1 + $0xe0] sm:$0xff]  ;;  %v2738_v32 = vld [vmem:[%s8424_s1 + $0xf0] sm:$0xff]  ;;  %v2741_v58 = vld [vmem:[%s8424_s1 + $0x108] sm:$0xff] }
 0x522   :  { %v2024_v26 = vadd.f32 %v3866_v24, %v2023_v62 }
 0x523   :  { %v2149_v53 = vpop.f32.mrb[18].mxu0  ;;  %v2220_v59 = vpop.f32.mrb[18].mxu1 }
 0x524   :  { %5935 = vtanh.f32 %v2024_v26  ;;  %v2224_v38 = vadd.f32 %v3870_v11, %v2149_v53  ;;  %v2151_v17 = vpop.f32.mrb[19].mxu0  ;;  %v4737_v48 = vpop.f32.mrb[19].mxu1  ;;  %v2244_v30 = vadd.f32 %v7486_v47, %v2220_v59  ;;  %v2723_v26 = vld [vmem:[%s8424_s1 + $0x78] sm:$0xff] }
 0x525   :  { %v2231_v23 = vadd.f32 %v3871_v1, %v2151_v17  ;;  %v2727_v59 = vld [vmem:[%s8424_s1 + $0x98] sm:$0xff]  ;;  %v2726_v17 = vld [vmem:[%s8424_s1 + $0x90] sm:$0xff]  ;;  %v2729_v48 = vld [vmem:[%s8424_s1 + $0xa8] sm:$0xff] }
 0x526   :  { %v3922_v8 = vmul.f32 -1.442695, %v2224_v38  ;;  %v2730_v38 = vld [vmem:[%s8424_s1 + $0xb0] sm:$0xff] }
 0x527   :  { %v3923_v27 = vmul.f32 -1.442695, %v2231_v23  ;;  %v7900_v1 = vpack.c.bf16 %v2730_v38, %v2727_v59  ;;  %v2733_v23 = vld [vmem:[%s8424_s1 + $0xc8] sm:$0xff] }
 0x528   :  { %5937 = vpow2.f32 %v3922_v8  ;;  %v7908_v8 = vpack.c.bf16 %v2729_v48, %v2726_v17  ;;  %v3929_v38 = vld [vmem:[%s8425_s0 + $0x88] sm:$0xff]  ;;  %v3933_v48 = vld [vmem:[%s8425_s0 + $0xf0] sm:$0xff] }
 0x529   :  { %5939 = vpow2.f32 %v3923_v27  ;;  %v7918_v27 = vpack.c.bf16 %v2736_v7, %v2733_v23 }
 0x52e   :  { %v5936_v37 = vpop.eup %5935 }
 0x52f   :  { %v2027_v54 = vmul.f32 %v5936_v37, %v2026_v36  ;;  %v2732_v36 = vld [vmem:[%s8424_s1 + $0xc0] sm:$0xff]  ;;  %v2739_v37 = vld [vmem:[%s8424_s1 + $0xf8] sm:$0xff] }
 0x530   :  { %v7926_v42 = vpack.c.bf16 %v2735_v43, %v2732_v36 }
 0x531   :  { %v7734_v46 = vadd.f32 %v2028_v10, %v2027_v54  ;;  %v2742_v54 = vld [vmem:[%s8424_s1 + $0x110] sm:$0xff] }
 0x532   :  { %v5938_v6 = vpop.eup %5937  ;;  %v7936_v10 = vpack.c.bf16 %v2742_v54, %v2739_v37  ;;  %v3934_v37 = vld [vmem:[%s8425_s0 + $0xf8] sm:$0xff] }
 0x533   :  { %v2228_v34 = vadd.f32 1.0, %v5938_v6  ;;  %3925 = vst [vmem:[%s8427_s3 + $0x20] sm:$0xff] %v7734_v46  ;;  %2374 = vmatmul.mubr.f32.vlgmr.msra.gmra.mrb[20].mxu0 %v7734_v46  ;;  %4771 = vmatmul.mubr.f32.vlgmr.msra.gmra.mrb[20].mxu1 %v7734_v46  ;;  %v7944_v6 = vpack.c.bf16 %v2741_v58, %v2738_v32 }
 0x534   :  { %5567 = vmatpush1.bf16.msra.mxu0 %v7416_v28  ;;  %5598 = vmatpush3.bf16.msra.mxu1 %v7732_v45  ;;  %v7765_v28 = vpack.c.bf16 %v3953_v60, %v3950_v33  ;;  %v2748_v33 = vld [vmem:[%s8424_s1 + $0x140] sm:$0xff] }
 0x535   :  { %5941 = vrcp.f32 %v2228_v34  ;;  %5569 = vmatprep.subr.bf16.mxu0 %v7420_v41  ;;  %5599 = vmatprep.subr.bf16.mxu1 %v6007_v3  ;;  %v5940_v41 = vpop.eup %5939  ;;  %v2745_v34 = vld [vmem:[%s8424_s1 + $0x128] sm:$0xff] }
 0x536   :  { %2595 = vmatprep.mubr.f32.mxu0 %v6008_v4  ;;  %4805 = vmatprep.mubr.msk.f32.mxu1 %vm6009_vm0, %v6008_v4  ;;  %v2235_v57 = vadd.f32 1.0, %v5940_v41  ;;  %v7954_v60 = vpack.c.bf16 %v2748_v33, %v2745_v34  ;;  %v2744_v41 = vld [vmem:[%s8424_s1 + $0x120] sm:$0xff] }
 0x538   :  { %5571 = vmatpush1.bf16.msra.mxu0 %v7442_v35  ;;  %5601 = vmatpush3.bf16.msra.mxu1 %v7750_v2  ;;  %v7777_v35 = vpack.c.bf16 %v3959_v29, %v3956_v50  ;;  %5943 = vrcp.f32 %v2235_v57  ;;  %v2747_v50 = vld [vmem:[%s8424_s1 + $0x138] sm:$0xff] }
 0x539   :  { %5573 = vmatprep.subr.bf16.mxu0 %v7446_v31  ;;  %5602 = vmatprep.subr.bf16.mxu1 %v6007_v3  ;;  %v3962_v31 = vld [vmem:[%s8424_s1 + $0x250] sm:$0xff]  ;;  %v7962_v29 = vpack.c.bf16 %v2747_v50, %v2744_v41  ;;  %v2751_v57 = vld [vmem:[%s8424_s1 + $0x158] sm:$0xff] }
 0x53c   :  { %5575 = vmatpush1.bf16.msra.mxu0 %v7465_v13  ;;  %5604 = vmatpush3.bf16.msra.mxu1 %v7765_v28  ;;  %v3872_v13 = vld [vmem:[%s8425_s0 + $0x118] sm:$0xff] }
 0x53d   :  { %5577 = vmatprep.subr.bf16.mxu0 %v7469_v55  ;;  %5605 = vmatprep.subr.bf16.mxu1 %v6007_v3  ;;  %v7793_v55 = vpack.c.bf16 %v3965_v52, %v3962_v31  ;;  %v2754_v31 = vld [vmem:[%s8424_s1 + $0x170] sm:$0xff] }
 0x53e   :  { %v7972_v52 = vpack.c.bf16 %v2754_v31, %v2751_v57  ;;  %v3999_v57 = vld [vmem:[%s8424_s1 + $0x180] sm:$0xff]  ;;  %v4002_v31 = vld [vmem:[%s8424_s1 + $0x198] sm:$0xff] }
 0x53f   :  { %v5942_v24 = vpop.eup %5941 }
 0x540   :  { %v2245_v62 = vmul.f32 %v5942_v24, %v2244_v30  ;;  %5579 = vmatpush1.bf16.msra.mxu0 %v7490_v61  ;;  %5607 = vmatpush3.bf16.msra.mxu1 %v7777_v35  ;;  %v2750_v30 = vld [vmem:[%s8424_s1 + $0x150] sm:$0xff]  ;;  %v2753_v24 = vld [vmem:[%s8424_s1 + $0x168] sm:$0xff] }
 0x541   :  { %5581 = vmatprep.subr.bf16.mxu0 %v7494_v56  ;;  %5608 = vmatprep.subr.bf16.mxu1 %v6007_v3 }
 0x542   :  { %v2246_v11 = vadd.f32 %v3872_v13, %v2245_v62  ;;  %v5944_v47 = vpop.eup %5943  ;;  %v7980_v13 = vpack.c.bf16 %v2753_v24, %v2750_v30  ;;  %v4000_v62 = vld [vmem:[%s8424_s1 + $0x188] sm:$0xff]  ;;  %v4006_v24 = vld [vmem:[%s8424_s1 + $0x1b8] sm:$0xff] }
 0x543   :  { %v2248_v61 = vsub.f32 1.0, %v5944_v47 }
 0x544   :  { %5945 = vtanh.f32 %v2246_v11  ;;  %5583 = vmatpush1.bf16.msra.mxu0 %v7515_v51  ;;  %5610 = vmatpush3.bf16.msra.mxu1 %v7793_v55  ;;  %v4003_v11 = vld [vmem:[%s8424_s1 + $0x1a0] sm:$0xff] }
 0x545   :  { %5585 = vmatprep.subr.bf16.mxu0 %v7522_v25  ;;  %5611 = vmatprep.subr.bf16.mxu1 %v6007_v3  ;;  %v2250_v25 = vmul.f32 %v5944_v47, %v7600_v21  ;;  %v2718_v21 = vld [vmem:[%s8424_s1 + $0x50] sm:$0xff]  ;;  %v7990_v47 = vpack.c.bf16 %v4003_v11, %v4000_v62 }
 0x546   :  { %v4009_v62 = vld [vmem:[%s8424_s1 + $0x1d0] sm:$0xff] }
 0x548   :  { %5587 = vmatpush1.bf16.msra.mxu0 %v7541_v16  ;;  %5613 = vmatpush3.bf16.msra.mxu1 %v7543_v39  ;;  %v2709_v39 = vld [vmem:[%s8424_s1 + $0x8] sm:$0xff] }
 0x549   :  { %5589 = vmatprep.subr.bf16.mxu0 %v7550_v44  ;;  %5614 = vmatprep.subr.bf16.mxu1 %v6007_v3  ;;  %v2712_v44 = vld [vmem:[%s8424_s1 + $0x20] sm:$0xff] }
 0x54c   :  { %5591 = vmatpush1.bf16.msra.mxu0 %v7569_v22  ;;  %5616 = vmatpush3.bf16.msra.mxu1 %v7571_v12  ;;  %v7846_v22 = vpack.c.bf16 %v2712_v44, %v2709_v39  ;;  %v2708_v12 = vld [vmem:[%s8424_s1] sm:$0xff] }
 0x54d   :  { %5593 = vmatprep.subr.bf16.mxu0 %v7578_v5  ;;  %5617 = vmatprep.subr.bf16.mxu1 %v6007_v3  ;;  %v2711_v5 = vld [vmem:[%s8424_s1 + $0x18] sm:$0xff]  ;;  %v3928_v39 = vld [vmem:[%s8425_s0 + $0x80] sm:$0xff] }
 0x54e   :  { %v5946_v56 = vpop.eup %5945 }
 0x54f   :  { %v2249_v51 = vmul.f32 %v5946_v56, %v2248_v61  ;;  %v3927_v61 = vld [vmem:[%s8425_s0 + $0x78] sm:$0xff] }
 0x550   :  { %5595 = vmatpush1.bf16.msra.mxu0 %v7591_v49  ;;  %5619 = vmatpush3.bf16.msra.mxu1 %v7593_v0  ;;  %v7854_v49 = vpack.c.bf16 %v2711_v5, %v2708_v12  ;;  %v2715_v0 = vld [vmem:[%s8424_s1 + $0x38] sm:$0xff] }
 0x551   :  { %v7812_v16 = vadd.f32 %v2250_v25, %v2249_v51  ;;  %5652 = vmatprep.subr.bf16.mxu1 %v6007_v3  ;;  %5621 = vmatprep.subr.bf16.mxu0 %v7846_v22 }
 0x553   :  { %3926 = vst [vmem:[%s8427_s3 + $0x58] sm:$0xff] %v7812_v16  ;;  %2596 = vmatmul.mubr.f32.vlgmr.msra.gmra.mrb[22].mxu0 %v7812_v16  ;;  %4806 = vmatmul.mubr.f32.vlgmr.msra.gmra.mrb[22].mxu1 %v7812_v16 }
 0x554   :  { %5654 = vmatpush3.bf16.msra.mxu1 %v7635_v9  ;;  %2821 = vmatprep.mubr.f32.mxu0 %v6008_v4  ;;  %v7864_v9 = vpack.c.bf16 %v2718_v21, %v2715_v0 }
 0x555   :  { %5655 = vmatprep.subr.bf16.mxu1 %v6007_v3  ;;  %4840 = vmatprep.mubr.msk.f32.mxu1 %vm6009_vm0, %v6008_v4 }
 0x556   :  { %5623 = vmatpush1.bf16.msra.mxu0 %v7854_v49 }
 0x557   :  { %5625 = vmatprep.subr.bf16.mxu0 %v7864_v9 }
 0x558   :  { %5657 = vmatpush3.bf16.msra.mxu1 %v7645_v40  ;;  %v2714_v40 = vld [vmem:[%s8424_s1 + $0x30] sm:$0xff] }
 0x559   :  { %5658 = vmatprep.subr.bf16.mxu1 %v6007_v3 }
 0x55c   :  { %5660 = vmatpush3.bf16.msra.mxu1 %v7655_v15  ;;  %v2717_v15 = vld [vmem:[%s8424_s1 + $0x48] sm:$0xff] }
 0x55d   :  { %5661 = vmatprep.subr.bf16.mxu1 %v6007_v3 }
 0x560   :  { %5663 = vmatpush3.bf16.msra.mxu1 %v7665_v63  ;;  %v7872_v63 = vpack.c.bf16 %v2717_v15, %v2714_v40 }
 0x561   :  { %5664 = vmatprep.subr.bf16.mxu1 %v6007_v3 }
 0x562   :  { %5627 = vmatpush1.bf16.msra.mxu0 %v7872_v63 }
 0x564   :  { %5666 = vmatpush3.bf16.msra.mxu1 %v7675_v19  ;;  %v2721_v19 = vld [vmem:[%s8424_s1 + $0x68] sm:$0xff] }
 0x565   :  { %5667 = vmatprep.subr.bf16.mxu1 %v6007_v3 }
 0x568   :  { %5669 = vmatpush3.bf16.msra.mxu1 %v7685_v20  ;;  %v2724_v20 = vld [vmem:[%s8424_s1 + $0x80] sm:$0xff] }
 0x569   :  { %5670 = vmatprep.subr.bf16.mxu1 %v6007_v3 }
 0x56c   :  { %5672 = vmatpush3.bf16.msra.mxu1 %v7695_v14  ;;  %v7882_v14 = vpack.c.bf16 %v2724_v20, %v2721_v19  ;;  %v8002_v20 = vld [vmem:[%s8426_s2] ss:$0 sm:$0xff] }
 0x56d   :  { %5673 = vmatprep.subr.bf16.mxu1 %v6007_v3 }
 0x56e   :  { %5629 = vmatprep.subr.bf16.mxu0 %v7882_v14 }
 0x570   :  { %5675 = vmatpush3.bf16.msra.mxu1 %v7705_v18  ;;  %v2720_v18 = vld [vmem:[%s8424_s1 + $0x60] sm:$0xff] }
 0x571   :  { %5708 = vmatprep.subr.bf16.mxu1 %v6007_v3  ;;  %v7890_v53 = vpack.c.bf16 %v2723_v26, %v2720_v18 }
 0x573   :  { %5631 = vmatpush1.bf16.msra.mxu0 %v7890_v53 }
 0x574   :  { %5633 = vmatprep.subr.bf16.mxu0 %v7900_v1 }
 0x577   :  { %5635 = vmatpush1.bf16.msra.mxu0 %v7908_v8 }
 0x578   :  { %5637 = vmatprep.subr.bf16.mxu0 %v7918_v27 }
 0x57b   :  { %5639 = vmatpush1.bf16.msra.mxu0 %v7926_v42 }
 0x57c   :  { %5641 = vmatprep.subr.bf16.mxu0 %v7936_v10 }
 0x57f   :  { %5643 = vmatpush1.bf16.msra.mxu0 %v7944_v6 }
 0x580   :  { %5645 = vmatprep.subr.bf16.mxu0 %v7954_v60 }
 0x583   :  { %5647 = vmatpush1.bf16.msra.mxu0 %v7962_v29 }
 0x584   :  { %5649 = vmatprep.subr.bf16.mxu0 %v7972_v52 }
 0x587   :  { %5651 = vmatpush1.bf16.msra.mxu0 %v7980_v13 }
 0x588   :  { %5677 = vmatprep.subr.bf16.mxu0 %v7990_v47 }
 0x606   :  { %v2375_v56 = vpop.f32.mrb[20].mxu0  ;;  %v2446_v51 = vpop.f32.mrb[20].mxu1 }
 0x607   :  { %v2450_v25 = vadd.f32 %v3927_v61, %v2375_v56  ;;  %v2377_v44 = vpop.f32.mrb[21].mxu0  ;;  %v4772_v12 = vpop.f32.mrb[21].mxu1  ;;  %v2470_v26 = vadd.f32 %v8002_v20, %v2446_v51  ;;  %v8029_v56 = vpack.c.bf16 %v4002_v31, %v3999_v57  ;;  %v4029_v31 = vld [vmem:[%s8424_s1 + $0x270] sm:$0xff] }
 0x608   :  { %v2457_v0 = vadd.f32 %v3928_v39, %v2377_v44  ;;  %v4005_v39 = vld [vmem:[%s8424_s1 + $0x1b0] sm:$0xff]  ;;  %v4008_v44 = vld [vmem:[%s8424_s1 + $0x1c8] sm:$0xff] }
 0x609   :  { %v3930_v5 = vmul.f32 -1.442695, %v2450_v25  ;;  %v8033_v25 = vpack.c.bf16 %v4009_v62, %v4006_v24  ;;  %v4032_v24 = vld [vmem:[%s8424_s1 + $0x288] sm:$0xff]  ;;  %v4034_v62 = vld [vmem:[%s8424_s1 + $0x298] sm:$0xff] }
 0x60a   :  { %v3931_v21 = vmul.f32 -1.442695, %v2457_v0 }
 0x60b   :  { %5947 = vpow2.f32 %v3930_v5  ;;  %v4012_v5 = vld [vmem:[%s8424_s1 + $0x1e8] sm:$0xff] }
 0x60c   :  { %5949 = vpow2.f32 %v3931_v21  ;;  %v8055_v21 = vpack.c.bf16 %v4008_v44, %v4005_v39  ;;  %v4039_v39 = vld [vmem:[%s8424_s1 + $0x2c0] sm:$0xff]  ;;  %v8154_v44 = vpack.c.bf16 %v4032_v24, %v4029_v31  ;;  %v3194_v31 = vld [vmem:[%s8424_s1 + $0x130] sm:$0xff]  ;;  %v3197_v24 = vld [vmem:[%s8424_s1 + $0x148] sm:$0xff] }
 0x615   :  { %v5948_v40 = vpop.eup %5947 }
 0x616   :  { %v2454_v15 = vadd.f32 1.0, %v5948_v40  ;;  %v5950_v19 = vpop.eup %5949 }
 0x617   :  { %v2461_v18 = vadd.f32 1.0, %v5950_v19  ;;  %v4014_v19 = vld [vmem:[%s8424_s1 + $0x1f8] sm:$0xff] }
 0x618   :  { %5951 = vrcp.f32 %v2454_v15  ;;  %v4011_v15 = vld [vmem:[%s8424_s1 + $0x1e0] sm:$0xff] }
 0x619   :  { %5953 = vrcp.f32 %v2461_v18  ;;  %v4021_v18 = vld [vmem:[%s8424_s1 + $0x230] sm:$0xff] }
 0x622   :  { %v5952_v59 = vpop.eup %5951 }
 0x623   :  { %v2471_v17 = vmul.f32 %v5952_v59, %v2470_v26  ;;  %v5954_v33 = vpop.eup %5953  ;;  %v8078_v26 = vpack.c.bf16 %v4014_v19, %v4011_v15  ;;  %v4040_v15 = vld [vmem:[%s8424_s1 + $0x2c8] sm:$0xff]  ;;  %v4042_v19 = vld [vmem:[%s8424_s1 + $0x2d8] sm:$0xff] }
 0x624   :  { %v2474_v50 = vsub.f32 1.0, %v5954_v33  ;;  %v2476_v61 = vmul.f32 %v5954_v33, %v7734_v46  ;;  %v4015_v46 = vld [vmem:[%s8424_s1 + $0x200] sm:$0xff]  ;;  %v4033_v33 = vld [vmem:[%s8424_s1 + $0x290] sm:$0xff] }
 0x625   :  { %v2472_v23 = vadd.f32 %v3929_v38, %v2471_v17  ;;  %v8059_v40 = vpack.c.bf16 %v4015_v46, %v4012_v5  ;;  %v4017_v17 = vld [vmem:[%s8424_s1 + $0x210] sm:$0xff]  ;;  %v4035_v5 = vld [vmem:[%s8424_s1 + $0x2a0] sm:$0xff] }
 0x626   :  { %v2597_v7 = vpop.f32.mrb[22].mxu0  ;;  %v8011_v36 = vpop.f32.mrb[22].mxu1 }
 0x627   :  { %5955 = vtanh.f32 %v2472_v23  ;;  %v2672_v43 = vadd.f32 %v3933_v48, %v2597_v7  ;;  %v2599_v54 = vpop.f32.mrb[23].mxu0  ;;  %v4807_v32 = vpop.f32.mrb[23].mxu1  ;;  %v4020_v48 = vld [vmem:[%s8424_s1 + $0x228] sm:$0xff]  ;;  %v4027_v23 = vld [vmem:[%s8424_s1 + $0x260] sm:$0xff] }
 0x628   :  { %v2679_v34 = vadd.f32 %v3934_v37, %v2599_v54  ;;  %v8099_v7 = vld [vmem:[%s8426_s2 + $0x1] ss:$0 sm:$0xff]  ;;  %v8103_v37 = vpack.c.bf16 %v4020_v48, %v4017_v17  ;;  %v4041_v17 = vld [vmem:[%s8424_s1 + $0x2d0] sm:$0xff] }
 0x629   :  { %v3985_v58 = vmul.f32 -1.442695, %v2672_v43  ;;  %v4023_v32 = vld [vmem:[%s8424_s1 + $0x240] sm:$0xff] }
 0x62a   :  { %v3986_v41 = vmul.f32 -1.442695, %v2679_v34  ;;  %v2692_v34 = vadd.f32 %v8099_v7, %v8011_v36 }
 0x62b   :  { %5957 = vpow2.f32 %v3985_v58  ;;  %v4026_v58 = vld [vmem:[%s8424_s1 + $0x258] sm:$0xff] }
 0x62c   :  { %5959 = vpow2.f32 %v3986_v41  ;;  %v8128_v36 = vpack.c.bf16 %v4026_v58, %v4023_v32 }
 0x631   :  { %v5956_v30 = vpop.eup %5955 }
 0x632   :  { %v2475_v11 = vmul.f32 %v5956_v30, %v2474_v50  ;;  %v3935_v50 = vld [vmem:[%s8425_s0 + $0x100] sm:$0xff] }
 0x634   :  { %v8031_v51 = vadd.f32 %v2476_v61, %v2475_v11  ;;  %v4036_v61 = vld [vmem:[%s8424_s1 + $0x2a8] sm:$0xff] }
 0x635   :  { %v5958_v12 = vpop.eup %5957  ;;  %v8163_v46 = vpack.c.bf16 %v4039_v39, %v4036_v61  ;;  %v3990_v39 = vld [vmem:[%s8425_s0 + $0x90] sm:$0xff] }
 0x636   :  { %v2676_v0 = vadd.f32 1.0, %v5958_v12  ;;  %3988 = vst [vmem:[%s8427_s3 + $0x28] sm:$0xff] %v8031_v51  ;;  %2822 = vmatmul.mubr.f32.vlgmr.msra.gmra.mrb[24].mxu0 %v8031_v51  ;;  %4841 = vmatmul.mubr.f32.vlgmr.msra.gmra.mrb[24].mxu1 %v8031_v51  ;;  %v5960_v59 = vpop.eup %5959 }
 0x637   :  { %5679 = vmatpush1.bf16.msra.mxu0 %v8029_v56  ;;  %5710 = vmatpush3.bf16.msra.mxu1 %v7732_v45  ;;  %v4018_v45 = vld [vmem:[%s8424_s1 + $0x218] sm:$0xff]  ;;  %v2683_v43 = vadd.f32 1.0, %v5960_v59 }
 0x638   :  { %5961 = vrcp.f32 %v2676_v0  ;;  %5681 = vmatprep.subr.bf16.mxu0 %v8033_v25  ;;  %5711 = vmatprep.subr.bf16.mxu1 %v6007_v3  ;;  %v8082_v38 = vpack.c.bf16 %v4021_v18, %v4018_v45  ;;  %v4038_v0 = vld [vmem:[%s8424_s1 + $0x2b8] sm:$0xff]  ;;  %v4045_v45 = vld [vmem:[%s8424_s1 + $0x2f0] sm:$0xff] }
 0x639   :  { %3043 = vmatprep.mubr.f32.mxu0 %v6008_v4  ;;  %4875 = vmatprep.mubr.msk.f32.mxu1 %vm6009_vm0, %v6008_v4  ;;  %5963 = vrcp.f32 %v2683_v43  ;;  %v8182_v18 = vpack.c.bf16 %v4038_v0, %v4035_v5  ;;  %v8191_v48 = vpack.c.bf16 %v4045_v45, %v4042_v19  ;;  %v4046_v43 = vld [vmem:[%s8424_s1 + $0x2f8] sm:$0xff] }
 0x63b   :  { %5683 = vmatpush1.bf16.msra.mxu0 %v8055_v21  ;;  %5713 = vmatpush3.bf16.msra.mxu1 %v7750_v2  ;;  %v4024_v2 = vld [vmem:[%s8424_s1 + $0x248] sm:$0xff] }
 0x63c   :  { %5685 = vmatprep.subr.bf16.mxu0 %v8059_v40  ;;  %5714 = vmatprep.subr.bf16.mxu1 %v6007_v3  ;;  %v8107_v54 = vpack.c.bf16 %v4027_v23, %v4024_v2  ;;  %v4044_v2 = vld [vmem:[%s8424_s1 + $0x2e8] sm:$0xff]  ;;  %v4043_v23 = vld [vmem:[%s8424_s1 + $0x2e0] sm:$0xff] }
 0x63d   :  { %v8204_v58 = vpack.c.bf16 %v4044_v2, %v4041_v17 }
 0x63f   :  { %5687 = vmatpush1.bf16.msra.mxu0 %v8078_v26  ;;  %5716 = vmatpush3.bf16.msra.mxu1 %v7765_v28  ;;  %v4030_v28 = vld [vmem:[%s8424_s1 + $0x278] sm:$0xff] }
 0x640   :  { %5689 = vmatprep.subr.bf16.mxu0 %v8082_v38  ;;  %5717 = vmatprep.subr.bf16.mxu1 %v6007_v3  ;;  %v8135_v30 = vpack.c.bf16 %v4033_v33, %v4030_v28 }
 0x642   :  { %v5962_v41 = vpop.eup %5961 }
 0x643   :  { %v2693_v57 = vmul.f32 %v5962_v41, %v2692_v34  ;;  %5691 = vmatpush1.bf16.msra.mxu0 %v8103_v37  ;;  %5719 = vmatpush3.bf16.msra.mxu1 %v7777_v35  ;;  %v4031_v35 = vld [vmem:[%s8424_s1 + $0x280] sm:$0xff]  ;;  %v5964_v32 = vpop.eup %5963  ;;  %v8206_v34 = vpack.c.bf16 %v4046_v43, %v4043_v23 }
 0x644   :  { %5693 = vmatprep.subr.bf16.mxu0 %v8107_v54  ;;  %5720 = vmatprep.subr.bf16.mxu1 %v6007_v3  ;;  %v8156_v12 = vpack.c.bf16 %v4034_v62, %v4031_v35  ;;  %v2696_v28 = vsub.f32 1.0, %v5964_v32  ;;  %v5783_v35 = vpack.c.bf16 %v3197_v24, %v3194_v31  ;;  %v3200_v62 = vld [vmem:[%s8424_s1 + $0x160] sm:$0xff] }
 0x645   :  { %v2694_v11 = vadd.f32 %v3935_v50, %v2693_v57  ;;  %v2698_v50 = vmul.f32 %v5964_v32, %v7812_v16  ;;  %v3158_v16 = vld [vmem:[%s8424_s1 + $0x10] sm:$0xff] }
 0x647   :  { %5965 = vtanh.f32 %v2694_v11  ;;  %5695 = vmatpush1.bf16.msra.mxu0 %v8128_v36  ;;  %5722 = vmatpush3.bf16.msra.mxu1 %v7793_v55  ;;  %v4037_v55 = vld [vmem:[%s8424_s1 + $0x2b0] sm:$0xff]  ;;  %v3203_v11 = vld [vmem:[%s8424_s1 + $0x178] sm:$0xff] }
 0x648   :  { %5697 = vmatprep.subr.bf16.mxu0 %v8135_v30  ;;  %5723 = vmatprep.subr.bf16.mxu1 %v6007_v3  ;;  %v8184_v59 = vpack.c.bf16 %v4040_v15, %v4037_v55  ;;  %v5786_v61 = vpack.c.bf16 %v3203_v11, %v3200_v62  ;;  %v3991_v15 = vld [vmem:[%s8425_s0 + $0x98] sm:$0xff]  ;;  %v4070_v62 = vld [vmem:[%s8424_s1 + $0x1c0] sm:$0xff] }
 0x649   :  { %v4073_v11 = vld [vmem:[%s8424_s1 + $0x1d8] sm:$0xff] }
 0x64b   :  { %5699 = vmatpush1.bf16.msra.mxu0 %v8154_v44  ;;  %5725 = vmatpush3.bf16.msra.mxu1 %v8156_v12 }
 0x64c   :  { %5701 = vmatprep.subr.bf16.mxu0 %v8163_v46  ;;  %5726 = vmatprep.subr.bf16.mxu1 %v6007_v3 }
 0x64f   :  { %5703 = vmatpush1.bf16.msra.mxu0 %v8182_v18  ;;  %5728 = vmatpush3.bf16.msra.mxu1 %v8184_v59 }
 0x650   :  { %5705 = vmatprep.subr.bf16.mxu0 %v8191_v48  ;;  %5729 = vmatprep.subr.bf16.mxu1 %v6007_v3 }
 0x651   :  { %v5966_v33 = vpop.eup %5965 }
 0x652   :  { %v2697_v41 = vmul.f32 %v5966_v33, %v2696_v28 }
 0x653   :  { %5707 = vmatpush1.bf16.msra.mxu0 %v8204_v58  ;;  %5731 = vmatpush3.bf16.msra.mxu1 %v8206_v34 }
 0x654   :  { %v8213_v57 = vadd.f32 %v2698_v50, %v2697_v41  ;;  %5733 = vmatprep.subr.bf16.mxu0 %v7846_v22  ;;  %5764 = vmatprep.subr.bf16.mxu1 %v6007_v3  ;;  %v3161_v22 = vld [vmem:[%s8424_s1 + $0x28] sm:$0xff] }
 0x656   :  { %3989 = vst [vmem:[%s8427_s3 + $0x50] sm:$0xff] %v8213_v57  ;;  %3044 = vmatmul.mubr.f32.vlgmr.msra.gmra.mrb[26].mxu0 %v8213_v57  ;;  %4876 = vmatmul.mubr.f32.vlgmr.msra.gmra.mrb[26].mxu1 %v8213_v57 }
 0x657   :  { %5735 = vmatpush1.bf16.msra.mxu0 %v7854_v49  ;;  %3269 = vmatprep.mubr.f32.mxu0 %v6008_v4  ;;  %v5765_v49 = vpack.c.bf16 %v3161_v22, %v3158_v16  ;;  %v3992_v16 = vld [vmem:[%s8425_s0 + $0xa0] sm:$0xff] }
 0x658   :  { %5737 = vmatprep.subr.bf16.mxu0 %v7864_v9  ;;  %4910 = vmatprep.mubr.msk.f32.mxu1 %vm6009_vm0, %v6008_v4  ;;  %v3164_v9 = vld [vmem:[%s8424_s1 + $0x40] sm:$0xff] }
 0x659   :  { %5766 = vmatpush3.bf16.msra.mxu1 %v5765_v49  ;;  %v3996_v49 = vld [vmem:[%s8425_s0 + $0xd8] sm:$0xff] }
 0x65a   :  { %5767 = vmatprep.subr.bf16.mxu1 %v6007_v3 }
 0x65b   :  { %5739 = vmatpush1.bf16.msra.mxu0 %v7872_v63  ;;  %v3167_v63 = vld [vmem:[%s8424_s1 + $0x58] sm:$0xff] }
 0x65c   :  { %5741 = vmatprep.subr.bf16.mxu0 %v7882_v14  ;;  %v5768_v14 = vpack.c.bf16 %v3167_v63, %v3164_v9 }
 0x65e   :  { %5769 = vmatpush3.bf16.msra.mxu1 %v5768_v14 }
 0x65f   :  { %5743 = vmatpush1.bf16.msra.mxu0 %v7890_v53  ;;  %5770 = vmatprep.subr.bf16.mxu1 %v6007_v3  ;;  %v3170_v53 = vld [vmem:[%s8424_s1 + $0x70] sm:$0xff] }
 0x660   :  { %5745 = vmatprep.subr.bf16.mxu0 %v7900_v1  ;;  %v3173_v1 = vld [vmem:[%s8424_s1 + $0x88] sm:$0xff] }
 0x663   :  { %5747 = vmatpush1.bf16.msra.mxu0 %v7908_v8  ;;  %v5771_v8 = vpack.c.bf16 %v3173_v1, %v3170_v53 }
 0x664   :  { %5749 = vmatprep.subr.bf16.mxu0 %v7918_v27  ;;  %v3176_v27 = vld [vmem:[%s8424_s1 + $0xa0] sm:$0xff] }
 0x665   :  { %5772 = vmatpush3.bf16.msra.mxu1 %v5771_v8 }
 0x666   :  { %5773 = vmatprep.subr.bf16.mxu1 %v6007_v3 }
 0x667   :  { %5751 = vmatpush1.bf16.msra.mxu0 %v7926_v42  ;;  %v3179_v42 = vld [vmem:[%s8424_s1 + $0xb8] sm:$0xff] }
 0x668   :  { %5753 = vmatprep.subr.bf16.mxu0 %v7936_v10  ;;  %v5774_v10 = vpack.c.bf16 %v3179_v42, %v3176_v27 }
 0x66a   :  { %5775 = vmatpush3.bf16.msra.mxu1 %v5774_v10 }
 0x66b   :  { %5755 = vmatpush1.bf16.msra.mxu0 %v7944_v6  ;;  %5776 = vmatprep.subr.bf16.mxu1 %v6007_v3  ;;  %v3182_v6 = vld [vmem:[%s8424_s1 + $0xd0] sm:$0xff] }
 0x66c   :  { %5757 = vmatprep.subr.bf16.mxu0 %v7954_v60  ;;  %v3185_v60 = vld [vmem:[%s8424_s1 + $0xe8] sm:$0xff] }
 0x66f   :  { %5759 = vmatpush1.bf16.msra.mxu0 %v7962_v29  ;;  %v5777_v29 = vpack.c.bf16 %v3185_v60, %v3182_v6 }
 0x670   :  { %5761 = vmatprep.subr.bf16.mxu0 %v7972_v52  ;;  %v3188_v52 = vld [vmem:[%s8424_s1 + $0x100] sm:$0xff] }
 0x671   :  { %5778 = vmatpush3.bf16.msra.mxu1 %v5777_v29  ;;  %v4064_v29 = vld [vmem:[%s8424_s1 + $0x190] sm:$0xff] }
 0x672   :  { %5779 = vmatprep.subr.bf16.mxu1 %v6007_v3 }
 0x673   :  { %5763 = vmatpush1.bf16.msra.mxu0 %v7980_v13  ;;  %v3191_v13 = vld [vmem:[%s8424_s1 + $0x118] sm:$0xff] }
 0x674   :  { %5789 = vmatprep.subr.bf16.mxu0 %v7990_v47  ;;  %v5780_v47 = vpack.c.bf16 %v3191_v13, %v3188_v52  ;;  %v4067_v52 = vld [vmem:[%s8424_s1 + $0x1a8] sm:$0xff] }
 0x675   :  { %v5821_v24 = vpack.c.bf16 %v4067_v52, %v4064_v29 }
 0x676   :  { %5781 = vmatpush3.bf16.msra.mxu1 %v5780_v47 }
 0x677   :  { %5782 = vmatprep.subr.bf16.mxu1 %v6007_v3 }
 0x67a   :  { %5784 = vmatpush3.bf16.msra.mxu1 %v5783_v35 }
 0x67b   :  { %5785 = vmatprep.subr.bf16.mxu1 %v6007_v3 }
 0x67e   :  { %5787 = vmatpush3.bf16.msra.mxu1 %v5786_v61 }
 0x67f   :  { %5820 = vmatprep.subr.bf16.mxu1 %v6007_v3 }
 0x709   :  { %v2823_v5 = vpop.f32.mrb[24].mxu0  ;;  %v2894_v0 = vpop.f32.mrb[24].mxu1 }
 0x70a   :  { %v2898_v55 = vadd.f32 %v3990_v39, %v2823_v5  ;;  %v2825_v19 = vpop.f32.mrb[25].mxu0  ;;  %v4842_v45 = vpop.f32.mrb[25].mxu1  ;;  %v2918_v41 = vadd.f32 %v8002_v20, %v2894_v0  ;;  %v3997_v20 = vld [vmem:[%s8425_s0 + $0xe0] sm:$0xff]  ;;  %v4076_v5 = vld [vmem:[%s8424_s1 + $0x1f0] sm:$0xff]  ;;  %v4079_v0 = vld [vmem:[%s8424_s1 + $0x208] sm:$0xff] }
 0x70b   :  { %v2905_v2 = vadd.f32 %v3991_v15, %v2825_v19  ;;  %v4085_v15 = vld [vmem:[%s8424_s1 + $0x238] sm:$0xff] }
 0x70c   :  { %v3993_v17 = vmul.f32 -1.442695, %v2898_v55  ;;  %v4082_v55 = vld [vmem:[%s8424_s1 + $0x220] sm:$0xff] }
 0x70d   :  { %v3994_v23 = vmul.f32 -1.442695, %v2905_v2 }
 0x70e   :  { %5967 = vpow2.f32 %v3993_v17 }
 0x70f   :  { %5969 = vpow2.f32 %v3994_v23 }
 0x718   :  { %v5968_v43 = vpop.eup %5967 }
 0x719   :  { %v2902_v32 = vadd.f32 1.0, %v5968_v43  ;;  %v5970_v28 = vpop.eup %5969 }
 0x71a   :  { %v2909_v33 = vadd.f32 1.0, %v5970_v28 }
 0x71b   :  { %5971 = vrcp.f32 %v2902_v32 }
 0x71c   :  { %5973 = vrcp.f32 %v2909_v33 }
 0x725   :  { %v5972_v50 = vpop.eup %5971 }
 0x726   :  { %v2919_v22 = vmul.f32 %v5972_v50, %v2918_v41  ;;  %v5974_v10 = vpop.eup %5973  ;;  %v4058_v50 = vld [vmem:[%s8426_s2] ss:$0 sm:$0xff] }
 0x727   :  { %v2922_v60 = vsub.f32 1.0, %v5974_v10  ;;  %v2924_v31 = vmul.f32 %v5974_v10, %v8031_v51  ;;  %v5824_v51 = vpack.c.bf16 %v4073_v11, %v4070_v62 }
 0x728   :  { %v2920_v9 = vadd.f32 %v3992_v16, %v2919_v22 }
 0x729   :  { %v3045_v63 = vpop.f32.mrb[26].mxu0  ;;  %v3116_v14 = vpop.f32.mrb[26].mxu1 }
 0x72a   :  { %5975 = vtanh.f32 %v2920_v9  ;;  %v3120_v53 = vadd.f32 %v3996_v49, %v3045_v63  ;;  %v3047_v1 = vpop.f32.mrb[27].mxu0  ;;  %v4877_v8 = vpop.f32.mrb[27].mxu1  ;;  %v3140_v45 = vadd.f32 %v8099_v7, %v3116_v14  ;;  %v4055_v9 = vld [vmem:[%s8425_s0 + $0xb8] sm:$0xff]  ;;  %v4059_v14 = vld [vmem:[%s8425_s0 + $0xc0] sm:$0xff] }
 0x72b   :  { %v3127_v42 = vadd.f32 %v3997_v20, %v3047_v1 }
 0x72c   :  { %v4048_v27 = vmul.f32 -1.442695, %v3120_v53 }
 0x72d   :  { %v4049_v6 = vmul.f32 -1.442695, %v3127_v42 }
 0x72e   :  { %5977 = vpow2.f32 %v4048_v27  ;;  %v4060_v27 = vld [vmem:[%s8425_s0 + $0xc8] sm:$0xff] }
 0x72f   :  { %5979 = vpow2.f32 %v4049_v6 }
 0x734   :  { %v5976_v13 = vpop.eup %5975 }
 0x735   :  { %v2923_v47 = vmul.f32 %v5976_v13, %v2922_v60 }
 0x737   :  { %v8321_v35 = vadd.f32 %v2924_v31, %v2923_v47 }
 0x738   :  { %v5978_v61 = vpop.eup %5977 }
 0x739   :  { %v3124_v39 = vadd.f32 1.0, %v5978_v61  ;;  %4051 = vst [vmem:[%s8427_s3 + $0x30] sm:$0xff] %v8321_v35  ;;  %3270 = vmatmul.mubr.f32.vlgmr.msra.gmra.mrb[28].mxu0 %v8321_v35  ;;  %4911 = vmatmul.mubr.f32.vlgmr.msra.gmra.mrb[28].mxu1 %v8321_v35 }
 0x73a   :  { %5791 = vmatpush1.bf16.msra.mxu0 %v8029_v56  ;;  %5822 = vmatpush3.bf16.msra.mxu1 %v5821_v24  ;;  %v5827_v56 = vpack.c.bf16 %v4079_v0, %v4076_v5 }
 0x73b   :  { %5981 = vrcp.f32 %v3124_v39  ;;  %5793 = vmatprep.subr.bf16.mxu0 %v8033_v25  ;;  %5823 = vmatprep.subr.bf16.mxu1 %v6007_v3  ;;  %v5980_v25 = vpop.eup %5979 }
 0x73c   :  { %3490 = vmatprep.mubr.f32.mxu0 %v6008_v4  ;;  %4945 = vmatprep.mubr.msk.f32.mxu1 %vm6009_vm0, %v6008_v4  ;;  %v3131_v19 = vadd.f32 1.0, %v5980_v25  ;;  %v5830_v4 = vpack.c.bf16 %v4085_v15, %v4082_v55 }
 0x73e   :  { %5795 = vmatpush1.bf16.msra.mxu0 %v8055_v21  ;;  %5825 = vmatpush3.bf16.msra.mxu1 %v5824_v51  ;;  %v4088_v21 = vld [vmem:[%s8424_s1 + $0x250] sm:$0xff]  ;;  %5983 = vrcp.f32 %v3131_v19 }
 0x73f   :  { %5797 = vmatprep.subr.bf16.mxu0 %v8059_v40  ;;  %5826 = vmatprep.subr.bf16.mxu1 %v6007_v3  ;;  %v4091_v40 = vld [vmem:[%s8424_s1 + $0x268] sm:$0xff] }
 0x742   :  { %5799 = vmatpush1.bf16.msra.mxu0 %v8078_v26  ;;  %5828 = vmatpush3.bf16.msra.mxu1 %v5827_v56  ;;  %v3998_v26 = vld [vmem:[%s8425_s0 + $0xe8] sm:$0xff]  ;;  %v4061_v56 = vld [vmem:[%s8425_s0 + $0xd0] sm:$0xff] }
 0x743   :  { %5801 = vmatprep.subr.bf16.mxu0 %v8082_v38  ;;  %5829 = vmatprep.subr.bf16.mxu1 %v6007_v3  ;;  %v5833_v38 = vpack.c.bf16 %v4091_v40, %v4088_v21 }
 0x745   :  { %v5982_v17 = vpop.eup %5981 }
 0x746   :  { %v3141_v2 = vmul.f32 %v5982_v17, %v3140_v45  ;;  %5803 = vmatpush1.bf16.msra.mxu0 %v8103_v37  ;;  %5831 = vmatpush3.bf16.msra.mxu1 %v5830_v4 }
 0x747   :  { %5805 = vmatprep.subr.bf16.mxu0 %v8107_v54  ;;  %5832 = vmatprep.subr.bf16.mxu1 %v6007_v3 }
 0x748   :  { %v3142_v23 = vadd.f32 %v3998_v26, %v3141_v2  ;;  %v5984_v37 = vpop.eup %5983 }
 0x749   :  { %v3144_v54 = vsub.f32 1.0, %v5984_v37 }
 0x74a   :  { %5985 = vtanh.f32 %v3142_v23  ;;  %5807 = vmatpush1.bf16.msra.mxu0 %v8128_v36  ;;  %5834 = vmatpush3.bf16.msra.mxu1 %v5833_v38 }
 0x74b   :  { %5809 = vmatprep.subr.bf16.mxu0 %v8135_v30  ;;  %5835 = vmatprep.subr.bf16.mxu1 %v6007_v3 }
 0x74e   :  { %5811 = vmatpush1.bf16.msra.mxu0 %v8154_v44  ;;  %5837 = vmatpush3.bf16.msra.mxu1 %v8156_v12  ;;  %v3146_v44 = vmul.f32 %v5984_v37, %v8213_v57 }
 0x74f   :  { %5813 = vmatprep.subr.bf16.mxu0 %v8163_v46  ;;  %5838 = vmatprep.subr.bf16.mxu1 %v6007_v3 }
 0x752   :  { %5815 = vmatpush1.bf16.msra.mxu0 %v8182_v18  ;;  %5840 = vmatpush3.bf16.msra.mxu1 %v8184_v59 }
 0x753   :  { %5817 = vmatprep.subr.bf16.mxu0 %v8191_v48  ;;  %5841 = vmatprep.subr.bf16.mxu1 %v6007_v3  ;;  %v4053_v3 = vld [vmem:[%s8425_s0 + $0xa8] sm:$0xff]  ;;  %v4054_v48 = vld [vmem:[%s8425_s0 + $0xb0] sm:$0xff] }
 0x754   :  { %v5986_v36 = vpop.eup %5985 }
 0x755   :  { %v3145_v30 = vmul.f32 %v5986_v36, %v3144_v54 }
 0x756   :  { %5819 = vmatpush1.bf16.msra.mxu0 %v8204_v58  ;;  %5843 = vmatpush3.bf16.msra.mxu1 %v8206_v34 }
 0x757   :  { %v8386_v12 = vadd.f32 %v3146_v44, %v3145_v30 }
 0x759   :  { %4052 = vst [vmem:[%s8427_s3 + $0x48] sm:$0xff] %v8386_v12  ;;  %3491 = vmatmul.mubr.f32.vlgmr.msra.gmra.mrb[30].mxu0 %v8386_v12  ;;  %4946 = vmatmul.mubr.f32.vlgmr.msra.gmra.mrb[30].mxu1 %v8386_v12 }
 0x80c   :  { %v3271_v46 = vpop.f32.mrb[28].mxu0  ;;  %v3342_v18 = vpop.f32.mrb[28].mxu1 }
 0x80d   :  { %v3346_v59 = vadd.f32 %v4053_v3, %v3271_v46  ;;  %v3273_v58 = vpop.f32.mrb[29].mxu0  ;;  %v4912_v34 = vpop.f32.mrb[29].mxu1  ;;  %v3366_v22 = vadd.f32 %v4058_v50, %v3342_v18 }
 0x80e   :  { %v3353_v43 = vadd.f32 %v4054_v48, %v3273_v58 }
 0x80f   :  { %v4056_v57 = vmul.f32 -1.442695, %v3346_v59 }
 0x810   :  { %v4057_v32 = vmul.f32 -1.442695, %v3353_v43 }
 0x811   :  { %5987 = vpow2.f32 %v4056_v57 }
 0x812   :  { %5989 = vpow2.f32 %v4057_v32 }
 0x81b   :  { %v5988_v28 = vpop.eup %5987 }
 0x81c   :  { %v3350_v33 = vadd.f32 1.0, %v5988_v28  ;;  %v5990_v41 = vpop.eup %5989 }
 0x81d   :  { %v3357_v16 = vadd.f32 1.0, %v5990_v41 }
 0x81e   :  { %5991 = vrcp.f32 %v3350_v33 }
 0x81f   :  { %5993 = vrcp.f32 %v3357_v16 }
 0x828   :  { %v5992_v49 = vpop.eup %5991 }
 0x829   :  { %v3367_v63 = vmul.f32 %v5992_v49, %v3366_v22  ;;  %v5994_v29 = vpop.eup %5993 }
 0x82a   :  { %v3370_v13 = vsub.f32 1.0, %v5994_v29  ;;  %v3372_v24 = vmul.f32 %v5994_v29, %v8321_v35 }
 0x82b   :  { %v3368_v53 = vadd.f32 %v4055_v9, %v3367_v63 }
 0x82c   :  { %v3492_v20 = vpop.f32.mrb[30].mxu0  ;;  %v3563_v1 = vpop.f32.mrb[30].mxu1 }
 0x82d   :  { %5995 = vtanh.f32 %v3368_v53  ;;  %v3567_v8 = vadd.f32 %v4059_v14, %v3492_v20  ;;  %v3494_v42 = vpop.f32.mrb[31].mxu0  ;;  %v4947_v10 = vpop.f32.mrb[31].mxu1  ;;  %v3587_v5 = vadd.f32 %v8099_v7, %v3563_v1 }
 0x82e   :  { %v3574_v60 = vadd.f32 %v4060_v27, %v3494_v42 }
 0x82f   :  { %v4111_v6 = vmul.f32 -1.442695, %v3567_v8 }
 0x830   :  { %v4112_v52 = vmul.f32 -1.442695, %v3574_v60 }
 0x831   :  { %5997 = vpow2.f32 %v4111_v6 }
 0x832   :  { %5999 = vpow2.f32 %v4112_v52 }
 0x837   :  { %v5996_v47 = vpop.eup %5995 }
 0x838   :  { %v3371_v31 = vmul.f32 %v5996_v47, %v3370_v13 }
 0x83a   :  { %v3373_v62 = vadd.f32 %v3372_v24, %v3371_v31 }
 0x83b   :  { %v5998_v11 = vpop.eup %5997 }
 0x83c   :  { %4114 = vst [vmem:[%s8427_s3 + $0x38] sm:$0xff] %v3373_v62  ;;  %v3571_v61 = vadd.f32 1.0, %v5998_v11  ;;  %v6000_v39 = vpop.eup %5999 }
 0x83d   :  { %v3578_v51 = vadd.f32 1.0, %v6000_v39 }
 0x83e   :  { %6001 = vrcp.f32 %v3571_v61 }
 0x83f   :  { %6003 = vrcp.f32 %v3578_v51 }
 0x848   :  { %v6002_v0 = vpop.eup %6001 }
 0x849   :  { %v3588_v25 = vmul.f32 %v6002_v0, %v3587_v5  ;;  %v6004_v55 = vpop.eup %6003 }
 0x84a   :  { %v3591_v15 = vsub.f32 1.0, %v6004_v55  ;;  %v3593_v21 = vmul.f32 %v6004_v55, %v8386_v12 }
 0x84b   :  { %v3589_v35 = vadd.f32 %v4061_v56, %v3588_v25 }
 0x84d   :  { %6005 = vtanh.f32 %v3589_v35 }
 0x857   :  { %v6006_v19 = vpop.eup %6005 }
 0x858   :  { %v3592_v4 = vmul.f32 %v6006_v19, %v3591_v15 }
 0x85a   :  { %v3594_v40 = vadd.f32 %v3593_v21, %v3592_v4 }
 0x85c   :  { %4115 = vst [vmem:[%s8427_s3 + $0x40] sm:$0xff] %v3594_v40 }

</bundles_post_ra>
